<compile_context>
chip_gen: v7x
topology: tpu7x:2x2x1
jax: 0.10.0
libtpu: 0.0.40
codegen_flags: <defaults>
</compile_context>

<pallas_src>
import functools

import jax
import jax.numpy as jnp
from jax.experimental import pallas as pl
from jax.experimental.pallas import tpu as pltpu

# ----------------------------------------------------------------------------- constants
EMB = 100      # conv kernel width / embedding dim (fixed by Conv2d(1, F, (fs, 100)))
H = 100        # LSTM hidden (module fixes self.n_hidden = 100)
HP = 128       # lane-padded hidden
EP = 128       # lane-padded embedding
FP = 128       # lane-padded pooled-feature width (>= n_filters * len(filter_sizes))
HD2 = 200      # head hidden_dim2 (BatchNorm / first Linear input)
HD3 = 50       # head hidden_dim3
H3P = 128      # lane-padded hidden_dim3
NCLS = 2
NCLSP = 128    # lane-padded class dim (lane-dense output store; sliced in wrapper)
NL = 4         # LSTM layers
NEG = -1e30    # bias for padded logits -> softmax prob exactly 0


# ----------------------------------------------------------------------------- fused kernel
def cnn_lstm_fused_kernel(x_ref, wc_ref, bc_ref, lw0_ref, lw_ref, lb_ref,
                          w1_ref, b1_ref, w2_ref, b2_ref, o_ref,
                          *, n_filters, filter_sizes):
    """Entire CNN_LSTM forward for one batch tile (everything stays in VMEM/vregs).

    x_ref:   (TB, S+maxfs-1, EP)   bf16  zero-padded input tile
    wc_ref:  (maxfs*EP, FP)        bf16  conv taps packed as one im2col weight
    bc_ref:  (1, FP)               f32   conv bias
    lw0_ref: (FP, 8*HP)            bf16  layer-0 fused fwd||bwd LSTM weight_ih
    lw_ref:  (NL-1, 2*HP, 8*HP)    bf16  layers 1..3 fused fwd||bwd LSTM weight_ih
    lb_ref:  (NL, 8*HP)            f32   fused bias_ih + bias_hh per layer
    w1_ref:  (2*HP, H3P)           bf16  BN-folded Linear(200,50)
    b1_ref:  (1, H3P)              f32
    w2_ref:  (H3P, NCLSP)          bf16  Linear(50,2), lane-padded columns
    b2_ref:  (1, NCLSP)            f32   padded columns = -1e30
    o_ref:   (TB, NCLSP)           f32   softmax probabilities (cols >= 2 are 0)
    """
    TB, SP, EPk = x_ref.shape
    maxfs = max(filter_sizes)
    T = SP - maxfs + 1
    FPk = wc_ref.shape[1]
    G = lw0_ref.shape[1]                                   # 8*HP
    HPk = G // 8

    # ---- TextCNN: im2col (one lane-concat) + single K=maxfs*EP matmul + ReLU + masked max-pool
    x = x_ref[...]                                         # (TB, SP, EP) bf16
    xim = jnp.concatenate([x[:, i:i + T, :] for i in range(maxfs)], axis=-1)
    xim = xim.reshape(TB * T, maxfs * EPk)                 # (TB*T, maxfs*EP) bf16
    z = jnp.dot(xim, wc_ref[...], preferred_element_type=jnp.float32) + bc_ref[...]
    z = jnp.maximum(z, 0.0)                                # ReLU

    # valid-window mask built in-kernel (no HBM mask tensor); exact because ReLU >= 0
    t_idx = jax.lax.broadcasted_iota(jnp.int32, (T, FPk), 0)
    col = jax.lax.broadcasted_iota(jnp.int32, (T, FPk), 1)
    thr = jnp.zeros((T, FPk), jnp.int32)
    for gi, fs in enumerate(filter_sizes):                 # static, tiny unroll
        grp = (col >= gi * n_filters) & (col < (gi + 1) * n_filters)
        thr = jnp.where(grp, T - fs + 1, thr)
    mask = (t_idx < thr).astype(jnp.float32)               # (T, FP)

    pooled = jnp.max(z.reshape(TB, T, FPk) * mask[None, :, :], axis=1)  # (TB, FP) f32

    # ---- 4-layer bidirectional LSTM, seq_len == 1, h0 = c0 = 0 ----
    def bilstm(gates):                                     # gates: (TB, 8*HP) f32
        hs = []
        for d in range(2):                                 # forward, reverse direction
            off = d * 4 * HPk
            i_g = jax.nn.sigmoid(gates[:, off + 0 * HPk: off + 1 * HPk])
            # forget gate skipped: it multiplies c0 == 0 (exact for seq_len == 1)
            g_g = jnp.tanh(gates[:, off + 2 * HPk: off + 3 * HPk])
            o_g = jax.nn.sigmoid(gates[:, off + 3 * HPk: off + 4 * HPk])
            hs.append(o_g * jnp.tanh(i_g * g_g))
        return jnp.concatenate(hs, axis=1)                 # (TB, 2*HP); padded lanes stay 0

    lb = lb_ref[...]                                       # (NL, 8*HP)
    gates = jnp.dot(pooled.astype(jnp.bfloat16), lw0_ref[...],
                    preferred_element_type=jnp.float32) + lb[0:1, :]
    xl = bilstm(gates)
    for l in range(1, NL):
        gates = jnp.dot(xl.astype(jnp.bfloat16), lw_ref[l - 1],
                        preferred_element_type=jnp.float32) + lb[l:l + 1, :]
        xl = bilstm(gates)

    # ---- prediction head: (BN folded into) Linear -> LeakyReLU(0.1) -> Linear -> Softmax
    h1 = jnp.dot(xl.astype(jnp.bfloat16), w1_ref[...],
                 preferred_element_type=jnp.float32) + b1_ref[...]
    h1 = jnp.where(h1 > 0, h1, 0.1 * h1)
    logits = jnp.dot(h1.astype(jnp.bfloat16), w2_ref[...],
                     preferred_element_type=jnp.float32) + b2_ref[...]
    m = jnp.max(logits, axis=1, keepdims=True)
    e = jnp.exp(logits - m)                                # padded cols underflow to 0
    o_ref[...] = e / jnp.sum(e, axis=1, keepdims=True)


# ----------------------------------------------------------------------------- wrapper
def cnn_lstm_forward(text, kp, *, n_filters, filter_sizes, tb=128):
    """text: (B, S, 100) f32 -> (B, 2) softmax probabilities."""
    B, S, E = text.shape
    maxfs = max(filter_sizes)
    assert E == EMB and S >= maxfs
    SP = S + maxfs - 1

    # batch tile: full batch if it fits, else 128-row tiles (out-block rows stay
    # either equal to the full dim or a multiple of 8)
    TB = min(B, tb)
    Bp = pl.cdiv(B, TB) * TB
    nb = Bp // TB

    # zero-pad: batch -> Bp, embedding 100 -> EP lanes, sequence by maxfs-1 (bf16 once)
    x_pad = jnp.zeros((Bp, SP, EP), jnp.bfloat16)
    x_pad = x_pad.at[:B, :S, :E].set(text.astype(jnp.bfloat16))

    kernel = functools.partial(cnn_lstm_fused_kernel,
                               n_filters=n_filters, filter_sizes=tuple(filter_sizes))

    # VMEM budget from the actual per-step footprint (weights x2 buffers, double-buffered
    # I/O tiles, in-kernel temporaries) + headroom, instead of a flat 32 MiB.
    weight_keys = ("wc", "bc", "lw0", "lw", "lb", "w1", "b1", "w2", "b2")
    weight_bytes = sum(int(kp[k].size) * kp[k].dtype.itemsize for k in weight_keys)
    io_bytes = 2 * (TB * SP * EP * 2 + TB * NCLSP * 4)
    tmp_bytes = (TB * S * maxfs * EP * 2          # im2col (bf16)
                 + 4 * TB * S * FP * 4            # conv activations / mask (f32)
                 + 8 * TB * 8 * HP * 4)           # LSTM gate / hidden temporaries (f32)
    vmem_limit = int(2 * weight_bytes + io_bytes + tmp_bytes + (8 << 20))

    def _resident(shape):
        nd = len(shape)
        return pl.BlockSpec(shape, lambda b: (0,) * nd)    # same block every step -> DMA'd once

    grid_spec = pltpu.PrefetchScalarGridSpec(
        num_scalar_prefetch=0,
        grid=(nb,),
        in_specs=[
            pl.BlockSpec((TB, SP, EP), lambda b: (b, 0, 0)),   # activation tile
            _resident(kp["wc"].shape), _resident(kp["bc"].shape),
            _resident(kp["lw0"].shape), _resident(kp["lw"].shape),
            _resident(kp["lb"].shape),
            _resident(kp["w1"].shape), _resident(kp["b1"].shape),
            _resident(kp["w2"].shape), _resident(kp["b2"].shape),
        ],
        out_specs=pl.BlockSpec((TB, NCLSP), lambda b: (b, 0)),
    )

    out = pl.pallas_call(
        kernel,
        out_shape=jax.ShapeDtypeStruct((Bp, NCLSP), jnp.float32),
        grid_spec=grid_spec,
        compiler_params=pltpu.CompilerParams(
            dimension_semantics=("parallel",),              # v7x: shard batch across 2 TCs
            vmem_limit_bytes=vmem_limit),
    )(x_pad, kp["wc"], kp["bc"], kp["lw0"], kp["lw"], kp["lb"],
      kp["w1"], kp["b1"], kp["w2"], kp["b2"])

    return out[:B, :NCLS]


# ----------------------------------------------------------------------------- parameter packing
def init_packed_params(key, n_filters, filter_sizes):
    """Create PyTorch-shaped random parameters and pack them into padded kernel layouts."""
    f_total = n_filters * len(filter_sizes)
    maxfs = max(filter_sizes)
    assert f_total <= FP and maxfs <= 16
    keys = iter(jax.random.split(key, 128))

    # --- conv: (F, 1, fs, 100) weights packed as one im2col weight (maxfs*EP, FP) ---
    wc = jnp.zeros((maxfs, EP, FP), jnp.float32)
    bc = jnp.zeros((1, FP), jnp.float32)
    for gi, fs in enumerate(filter_sizes):
        w = 0.1 * jax.random.normal(next(keys), (n_filters, 1, fs, EMB), jnp.float32)
        b = 0.1 * jax.random.normal(next(keys), (n_filters,), jnp.float32)
        c0 = gi * n_filters
        for i in range(fs):
            wc = wc.at[i, :EMB, c0:c0 + n_filters].set(w[:, 0, i, :].T)
        bc = bc.at[0, c0:c0 + n_filters].set(b)
    wc = wc.reshape(maxfs * EP, FP)

    # --- LSTM: fuse fwd/bwd directions, pad H 100 -> 128, gate order i,f,g,o ---
    gate_cols = jnp.concatenate([k * HP + jnp.arange(H) for k in range(4)])      # (4H,)
    rows_l0 = jnp.arange(f_total)                                                # layer-0 input dims
    rows_lk = jnp.concatenate([jnp.arange(H), HP + jnp.arange(H)])               # (2H,) fwd||bwd layout
    lw0 = jnp.zeros((FP, 8 * HP), jnp.float32)                                   # layer 0 (smaller slab)
    lw_layers, lb_layers = [], []
    for l in range(NL):
        din = f_total if l == 0 else 2 * H
        rows = rows_l0 if l == 0 else rows_lk
        slab = lw0 if l == 0 else jnp.zeros((2 * HP, 8 * HP), jnp.float32)
        bias = jnp.zeros((8 * HP,), jnp.float32)
        for d in range(2):                                  # 0 = forward, 1 = reverse
            w_ih = 0.1 * jax.random.normal(next(keys), (4 * H, din), jnp.float32)
            b_ih = 0.1 * jax.random.normal(next(keys), (4 * H,), jnp.float32)
            b_hh = 0.1 * jax.random.normal(next(keys), (4 * H,), jnp.float32)
            # weight_hh omitted: h0 == 0 with seq_len == 1 makes its contribution exactly 0
            cols = d * 4 * HP + gate_cols
            slab = slab.at[jnp.ix_(rows, cols)].set(w_ih.T)
            bias = bias.at[cols].set(b_ih + b_hh)
        if l == 0:
            lw0 = slab
        else:
            lw_layers.append(slab)
        lb_layers.append(bias)
    lw = jnp.stack(lw_layers)                               # (NL-1, 256, 1024)
    lb = jnp.stack(lb_layers)                               # (NL, 1024)

    # --- head: fold eval-mode BatchNorm1d(200) (running stats) into Linear(200, 50) ---
    gamma = jnp.ones((HD2,), jnp.float32)
    beta = jnp.zeros((HD2,), jnp.float32)
    mean = jnp.zeros((HD2,), jnp.float32)
    var = jnp.ones((HD2,), jnp.float32)
    scale = gamma / jnp.sqrt(var + 1e-5)
    shift = beta - mean * scale
    w1 = 0.1 * jax.random.normal(next(keys), (HD3, HD2), jnp.float32)
    b1 = 0.1 * jax.random.normal(next(keys), (HD3,), jnp.float32)
    w2 = 0.1 * jax.random.normal(next(keys), (NCLS, HD3), jnp.float32)
    b2 = 0.1 * jax.random.normal(next(keys), (NCLS,), jnp.float32)
    w1_eff = scale[:, None] * w1.T                          # (200, 50)
    b1_eff = shift @ w1.T + b1                              # (50,)
    w1p = jnp.zeros((2 * HP, H3P), jnp.float32).at[jnp.ix_(rows_lk, jnp.arange(HD3))].set(w1_eff)
    b1p = jnp.zeros((1, H3P), jnp.float32).at[0, :HD3].set(b1_eff)
    w2p = jnp.zeros((H3P, NCLSP), jnp.float32).at[:HD3, :NCLS].set(w2.T)
    b2p = jnp.full((1, NCLSP), NEG, jnp.float32).at[0, :NCLS].set(b2)   # padded logits -> prob 0

    return {
        "wc": wc.astype(jnp.bfloat16), "bc": bc,
        "lw0": lw0.astype(jnp.bfloat16), "lw": lw.astype(jnp.bfloat16), "lb": lb,
        "w1": w1p.astype(jnp.bfloat16), "b1": b1p,
        "w2": w2p.astype(jnp.bfloat16), "b2": b2p,
    }


# -----------------------------------------------------------------------------
if __name__ == "__main__":
    batch, seq_len = 2, 16
    n_filters, filter_sizes = 8, (3, 4, 5)

    key = jax.random.PRNGKey(0)
    k_x, k_p = jax.random.split(key)
    text = jax.random.normal(k_x, (batch, seq_len, EMB), jnp.float32)
    params = init_packed_params(k_p, n_filters, filter_sizes)

    fwd = jax.jit(functools.partial(cnn_lstm_forward,
                                    n_filters=n_filters, filter_sizes=filter_sizes))
    probs = jax.block_until_ready(fwd(text, params))

    assert probs.shape == (batch, NCLS)
    assert bool(jnp.all(jnp.isfinite(probs)))
    assert bool(jnp.allclose(jnp.sum(probs, axis=1), 1.0, atol=1e-5))
    print("KERNEL_OK")
</pallas_src>

<mosaic_0001>
module attributes {stable_mosaic.version = 11 : i64} {
  func.func @cnn_lstm_fused_kernel(%arg0: i32, %arg1: memref<2x20x128xbf16, #tpu.memory_space<vmem>>, %arg2: memref<640x128xbf16, #tpu.memory_space<vmem>>, %arg3: memref<1x128xf32, #tpu.memory_space<vmem>>, %arg4: memref<128x1024xbf16, #tpu.memory_space<vmem>>, %arg5: memref<3x256x1024xbf16, #tpu.memory_space<vmem>>, %arg6: memref<4x1024xf32, #tpu.memory_space<vmem>>, %arg7: memref<256x128xbf16, #tpu.memory_space<vmem>>, %arg8: memref<1x128xf32, #tpu.memory_space<vmem>>, %arg9: memref<128x128xbf16, #tpu.memory_space<vmem>>, %arg10: memref<1x128xf32, #tpu.memory_space<vmem>>, %arg11: memref<2x128xf32, #tpu.memory_space<vmem>>) attributes {dimension_semantics = [#tpu.dimension_semantics<parallel>], iteration_bounds = array<i64: 1>, scalar_prefetch = 0 : i64, scratch_operands = 0 : i64, tpu.core_type = #tpu.core_type<tc>, window_params = [{transform_indices = @transform_0, window_bounds = array<i64: 2, 20, 128>}, {pipeline_mode = #tpu.pipeline_mode<synchronous>, transform_indices = @transform_1, window_bounds = array<i64: 640, 128>}, {pipeline_mode = #tpu.pipeline_mode<synchronous>, transform_indices = @transform_2, window_bounds = array<i64: 1, 128>}, {pipeline_mode = #tpu.pipeline_mode<synchronous>, transform_indices = @transform_3, window_bounds = array<i64: 128, 1024>}, {pipeline_mode = #tpu.pipeline_mode<synchronous>, transform_indices = @transform_4, window_bounds = array<i64: 3, 256, 1024>}, {pipeline_mode = #tpu.pipeline_mode<synchronous>, transform_indices = @transform_5, window_bounds = array<i64: 4, 1024>}, {pipeline_mode = #tpu.pipeline_mode<synchronous>, transform_indices = @transform_6, window_bounds = array<i64: 256, 128>}, {pipeline_mode = #tpu.pipeline_mode<synchronous>, transform_indices = @transform_7, window_bounds = array<i64: 1, 128>}, {pipeline_mode = #tpu.pipeline_mode<synchronous>, transform_indices = @transform_8, window_bounds = array<i64: 128, 128>}, {pipeline_mode = #tpu.pipeline_mode<synchronous>, transform_indices = @transform_9, window_bounds = array<i64: 1, 128>}, {transform_indices = @transform_10, window_bounds = array<i64: 2, 128>}]} {
    %c0 = arith.constant 0 : index
    %c0_0 = arith.constant 0 : index
    %c0_1 = arith.constant 0 : index
    %0 = vector.load %arg1[%c0, %c0_0, %c0_1] : memref<2x20x128xbf16, #tpu.memory_space<vmem>>, vector<2x20x128xbf16>
    %1 = vector.extract_strided_slice %0 {offsets = [0, 0, 0], sizes = [2, 16, 128], strides = [1, 1, 1]} : vector<2x20x128xbf16> to vector<2x16x128xbf16>
    %2 = vector.extract_strided_slice %0 {offsets = [0, 1, 0], sizes = [2, 16, 128], strides = [1, 1, 1]} : vector<2x20x128xbf16> to vector<2x16x128xbf16>
    %3 = vector.extract_strided_slice %0 {offsets = [0, 2, 0], sizes = [2, 16, 128], strides = [1, 1, 1]} : vector<2x20x128xbf16> to vector<2x16x128xbf16>
    %4 = vector.extract_strided_slice %0 {offsets = [0, 3, 0], sizes = [2, 16, 128], strides = [1, 1, 1]} : vector<2x20x128xbf16> to vector<2x16x128xbf16>
    %5 = vector.extract_strided_slice %0 {offsets = [0, 4, 0], sizes = [2, 16, 128], strides = [1, 1, 1]} : vector<2x20x128xbf16> to vector<2x16x128xbf16>
    %6 = tpu.concatenate %1, %2, %3, %4, %5 in 2 : vector<2x16x128xbf16>, vector<2x16x128xbf16>, vector<2x16x128xbf16>, vector<2x16x128xbf16>, vector<2x16x128xbf16> -> vector<2x16x640xbf16>
    %7 = vector.shape_cast %6 : vector<2x16x640xbf16> to vector<32x640xbf16>
    %c0_2 = arith.constant 0 : index
    %c0_3 = arith.constant 0 : index
    %8 = vector.load %arg2[%c0_2, %c0_3] : memref<640x128xbf16, #tpu.memory_space<vmem>>, vector<640x128xbf16>
    %cst = arith.constant dense<0.000000e+00> : vector<32x128xf32>
    %9 = tpu.matmul %7, %8, %cst {dimension_numbers = #tpu.dot_dimension_numbers<[1], [0], [0], [1], [0, 0, 1, 1], [], []>} : vector<32x640xbf16>, vector<640x128xbf16>, vector<32x128xf32> -> vector<32x128xf32>
    %c0_4 = arith.constant 0 : index
    %c0_5 = arith.constant 0 : index
    %10 = vector.load %arg3[%c0_4, %c0_5] : memref<1x128xf32, #tpu.memory_space<vmem>>, vector<1x128xf32>
    %11 = vector.broadcast %10 : vector<1x128xf32> to vector<32x128xf32>
    %12 = arith.addf %9, %11 : vector<32x128xf32>
    %cst_6 = arith.constant 0.000000e+00 : f32
    %13 = vector.broadcast %cst_6 : f32 to vector<32x128xf32>
    %14 = arith.maximumf %12, %13 : vector<32x128xf32>
    %15 = tpu.iota {dimensions = array<i32: 0>} : vector<16x128xi32>
    %16 = tpu.iota {dimensions = array<i32: 1>} : vector<16x128xi32>
    %c0_i32 = arith.constant 0 : i32
    %17 = vector.broadcast %c0_i32 : i32 to vector<16x128xi32>
    %c0_i32_7 = arith.constant 0 : i32
    %18 = vector.broadcast %c0_i32_7 : i32 to vector<16x128xi32>
    %19 = arith.cmpi sge, %16, %18 : vector<16x128xi32>
    %c8_i32 = arith.constant 8 : i32
    %20 = vector.broadcast %c8_i32 : i32 to vector<16x128xi32>
    %21 = arith.cmpi slt, %16, %20 : vector<16x128xi32>
    %22 = arith.andi %19, %21 : vector<16x128xi1>
    %c14_i32 = arith.constant 14 : i32
    %23 = vector.broadcast %c14_i32 : i32 to vector<16x128xi32>
    %24 = arith.select %22, %23, %17 : vector<16x128xi1>, vector<16x128xi32>
    %c8_i32_8 = arith.constant 8 : i32
    %25 = vector.broadcast %c8_i32_8 : i32 to vector<16x128xi32>
    %26 = arith.cmpi sge, %16, %25 : vector<16x128xi32>
    %c16_i32 = arith.constant 16 : i32
    %27 = vector.broadcast %c16_i32 : i32 to vector<16x128xi32>
    %28 = arith.cmpi slt, %16, %27 : vector<16x128xi32>
    %29 = arith.andi %26, %28 : vector<16x128xi1>
    %c13_i32 = arith.constant 13 : i32
    %30 = vector.broadcast %c13_i32 : i32 to vector<16x128xi32>
    %31 = arith.select %29, %30, %24 : vector<16x128xi1>, vector<16x128xi32>
    %c16_i32_9 = arith.constant 16 : i32
    %32 = vector.broadcast %c16_i32_9 : i32 to vector<16x128xi32>
    %33 = arith.cmpi sge, %16, %32 : vector<16x128xi32>
    %c24_i32 = arith.constant 24 : i32
    %34 = vector.broadcast %c24_i32 : i32 to vector<16x128xi32>
    %35 = arith.cmpi slt, %16, %34 : vector<16x128xi32>
    %36 = arith.andi %33, %35 : vector<16x128xi1>
    %c12_i32 = arith.constant 12 : i32
    %37 = vector.broadcast %c12_i32 : i32 to vector<16x128xi32>
    %38 = arith.select %36, %37, %31 : vector<16x128xi1>, vector<16x128xi32>
    %39 = arith.cmpi slt, %15, %38 : vector<16x128xi32>
    %40 = arith.extui %39 : vector<16x128xi1> to vector<16x128xi32>
    %41 = arith.sitofp %40 : vector<16x128xi32> to vector<16x128xf32>
    %42 = vector.shape_cast %14 : vector<32x128xf32> to vector<2x16x128xf32>
    %43 = vector.shape_cast %41 : vector<16x128xf32> to vector<1x16x128xf32>
    %44 = vector.broadcast %43 : vector<1x16x128xf32> to vector<2x16x128xf32>
    %45 = arith.mulf %42, %44 : vector<2x16x128xf32>
    %cst_10 = arith.constant dense<0xFF800000> : vector<2x128xf32>
    %46 = vector.multi_reduction <maximumf>, %45, %cst_10 [1] : vector<2x16x128xf32> to vector<2x128xf32>
    %c0_11 = arith.constant 0 : index
    %c0_12 = arith.constant 0 : index
    %47 = vector.load %arg6[%c0_11, %c0_12] : memref<4x1024xf32, #tpu.memory_space<vmem>>, vector<4x1024xf32>
    %48 = arith.truncf %46 : vector<2x128xf32> to vector<2x128xbf16>
    %c0_13 = arith.constant 0 : index
    %c0_14 = arith.constant 0 : index
    %49 = vector.load %arg4[%c0_13, %c0_14] : memref<128x1024xbf16, #tpu.memory_space<vmem>>, vector<128x1024xbf16>
    %cst_15 = arith.constant dense<0.000000e+00> : vector<2x1024xf32>
    %50 = tpu.matmul %48, %49, %cst_15 {dimension_numbers = #tpu.dot_dimension_numbers<[1], [0], [0], [1], [0, 0, 1, 1], [], []>} : vector<2x128xbf16>, vector<128x1024xbf16>, vector<2x1024xf32> -> vector<2x1024xf32>
    %51 = vector.extract_strided_slice %47 {offsets = [0, 0], sizes = [1, 1024], strides = [1, 1]} : vector<4x1024xf32> to vector<1x1024xf32>
    %52 = vector.broadcast %51 : vector<1x1024xf32> to vector<2x1024xf32>
    %53 = arith.addf %50, %52 : vector<2x1024xf32>
    %54 = vector.extract_strided_slice %53 {offsets = [0, 0], sizes = [2, 128], strides = [1, 1]} : vector<2x1024xf32> to vector<2x128xf32>
    %55 = arith.negf %54 : vector<2x128xf32>
    %56 = math.exp %55 : vector<2x128xf32>
    %cst_16 = arith.constant 1.000000e+00 : f32
    %57 = vector.broadcast %cst_16 : f32 to vector<2x128xf32>
    %58 = arith.addf %57, %56 : vector<2x128xf32>
    %59 = arith.divf %57, %58 : vector<2x128xf32>
    %60 = vector.extract_strided_slice %53 {offsets = [0, 256], sizes = [2, 128], strides = [1, 1]} : vector<2x1024xf32> to vector<2x128xf32>
    %61 = math.tanh %60 : vector<2x128xf32>
    %62 = vector.extract_strided_slice %53 {offsets = [0, 384], sizes = [2, 128], strides = [1, 1]} : vector<2x1024xf32> to vector<2x128xf32>
    %63 = arith.negf %62 : vector<2x128xf32>
    %64 = math.exp %63 : vector<2x128xf32>
    %cst_17 = arith.constant 1.000000e+00 : f32
    %65 = vector.broadcast %cst_17 : f32 to vector<2x128xf32>
    %66 = arith.addf %65, %64 : vector<2x128xf32>
    %67 = arith.divf %65, %66 : vector<2x128xf32>
    %68 = arith.mulf %59, %61 : vector<2x128xf32>
    %69 = math.tanh %68 : vector<2x128xf32>
    %70 = arith.mulf %67, %69 : vector<2x128xf32>
    %71 = vector.extract_strided_slice %53 {offsets = [0, 512], sizes = [2, 128], strides = [1, 1]} : vector<2x1024xf32> to vector<2x128xf32>
    %72 = arith.negf %71 : vector<2x128xf32>
    %73 = math.exp %72 : vector<2x128xf32>
    %cst_18 = arith.constant 1.000000e+00 : f32
    %74 = vector.broadcast %cst_18 : f32 to vector<2x128xf32>
    %75 = arith.addf %74, %73 : vector<2x128xf32>
    %76 = arith.divf %74, %75 : vector<2x128xf32>
    %77 = vector.extract_strided_slice %53 {offsets = [0, 768], sizes = [2, 128], strides = [1, 1]} : vector<2x1024xf32> to vector<2x128xf32>
    %78 = math.tanh %77 : vector<2x128xf32>
    %79 = vector.extract_strided_slice %53 {offsets = [0, 896], sizes = [2, 128], strides = [1, 1]} : vector<2x1024xf32> to vector<2x128xf32>
    %80 = arith.negf %79 : vector<2x128xf32>
    %81 = math.exp %80 : vector<2x128xf32>
    %cst_19 = arith.constant 1.000000e+00 : f32
    %82 = vector.broadcast %cst_19 : f32 to vector<2x128xf32>
    %83 = arith.addf %82, %81 : vector<2x128xf32>
    %84 = arith.divf %82, %83 : vector<2x128xf32>
    %85 = arith.mulf %76, %78 : vector<2x128xf32>
    %86 = math.tanh %85 : vector<2x128xf32>
    %87 = arith.mulf %84, %86 : vector<2x128xf32>
    %88 = tpu.concatenate %70, %87 in 1 : vector<2x128xf32>, vector<2x128xf32> -> vector<2x256xf32>
    %89 = arith.truncf %88 : vector<2x256xf32> to vector<2x256xbf16>
    %c0_20 = arith.constant 0 : index
    %c0_21 = arith.constant 0 : index
    %c0_22 = arith.constant 0 : index
    %90 = vector.load %arg5[%c0_20, %c0_21, %c0_22] : memref<3x256x1024xbf16, #tpu.memory_space<vmem>>, vector<1x256x1024xbf16>
    %91 = vector.shape_cast %90 : vector<1x256x1024xbf16> to vector<256x1024xbf16>
    %cst_23 = arith.constant dense<0.000000e+00> : vector<2x1024xf32>
    %92 = tpu.matmul %89, %91, %cst_23 {dimension_numbers = #tpu.dot_dimension_numbers<[1], [0], [0], [1], [0, 0, 1, 1], [], []>} : vector<2x256xbf16>, vector<256x1024xbf16>, vector<2x1024xf32> -> vector<2x1024xf32>
    %93 = vector.extract_strided_slice %47 {offsets = [1, 0], sizes = [1, 1024], strides = [1, 1]} : vector<4x1024xf32> to vector<1x1024xf32>
    %94 = vector.broadcast %93 : vector<1x1024xf32> to vector<2x1024xf32>
    %95 = arith.addf %92, %94 : vector<2x1024xf32>
    %96 = vector.extract_strided_slice %95 {offsets = [0, 0], sizes = [2, 128], strides = [1, 1]} : vector<2x1024xf32> to vector<2x128xf32>
    %97 = arith.negf %96 : vector<2x128xf32>
    %98 = math.exp %97 : vector<2x128xf32>
    %cst_24 = arith.constant 1.000000e+00 : f32
    %99 = vector.broadcast %cst_24 : f32 to vector<2x128xf32>
    %100 = arith.addf %99, %98 : vector<2x128xf32>
    %101 = arith.divf %99, %100 : vector<2x128xf32>
    %102 = vector.extract_strided_slice %95 {offsets = [0, 256], sizes = [2, 128], strides = [1, 1]} : vector<2x1024xf32> to vector<2x128xf32>
    %103 = math.tanh %102 : vector<2x128xf32>
    %104 = vector.extract_strided_slice %95 {offsets = [0, 384], sizes = [2, 128], strides = [1, 1]} : vector<2x1024xf32> to vector<2x128xf32>
    %105 = arith.negf %104 : vector<2x128xf32>
    %106 = math.exp %105 : vector<2x128xf32>
    %cst_25 = arith.constant 1.000000e+00 : f32
    %107 = vector.broadcast %cst_25 : f32 to vector<2x128xf32>
    %108 = arith.addf %107, %106 : vector<2x128xf32>
    %109 = arith.divf %107, %108 : vector<2x128xf32>
    %110 = arith.mulf %101, %103 : vector<2x128xf32>
    %111 = math.tanh %110 : vector<2x128xf32>
    %112 = arith.mulf %109, %111 : vector<2x128xf32>
    %113 = vector.extract_strided_slice %95 {offsets = [0, 512], sizes = [2, 128], strides = [1, 1]} : vector<2x1024xf32> to vector<2x128xf32>
    %114 = arith.negf %113 : vector<2x128xf32>
    %115 = math.exp %114 : vector<2x128xf32>
    %cst_26 = arith.constant 1.000000e+00 : f32
    %116 = vector.broadcast %cst_26 : f32 to vector<2x128xf32>
    %117 = arith.addf %116, %115 : vector<2x128xf32>
    %118 = arith.divf %116, %117 : vector<2x128xf32>
    %119 = vector.extract_strided_slice %95 {offsets = [0, 768], sizes = [2, 128], strides = [1, 1]} : vector<2x1024xf32> to vector<2x128xf32>
    %120 = math.tanh %119 : vector<2x128xf32>
    %121 = vector.extract_strided_slice %95 {offsets = [0, 896], sizes = [2, 128], strides = [1, 1]} : vector<2x1024xf32> to vector<2x128xf32>
    %122 = arith.negf %121 : vector<2x128xf32>
    %123 = math.exp %122 : vector<2x128xf32>
    %cst_27 = arith.constant 1.000000e+00 : f32
    %124 = vector.broadcast %cst_27 : f32 to vector<2x128xf32>
    %125 = arith.addf %124, %123 : vector<2x128xf32>
    %126 = arith.divf %124, %125 : vector<2x128xf32>
    %127 = arith.mulf %118, %120 : vector<2x128xf32>
    %128 = math.tanh %127 : vector<2x128xf32>
    %129 = arith.mulf %126, %128 : vector<2x128xf32>
    %130 = tpu.concatenate %112, %129 in 1 : vector<2x128xf32>, vector<2x128xf32> -> vector<2x256xf32>
    %131 = arith.truncf %130 : vector<2x256xf32> to vector<2x256xbf16>
    %c1 = arith.constant 1 : index
    %c0_28 = arith.constant 0 : index
    %c0_29 = arith.constant 0 : index
    %132 = vector.load %arg5[%c1, %c0_28, %c0_29] : memref<3x256x1024xbf16, #tpu.memory_space<vmem>>, vector<1x256x1024xbf16>
    %133 = vector.shape_cast %132 : vector<1x256x1024xbf16> to vector<256x1024xbf16>
    %cst_30 = arith.constant dense<0.000000e+00> : vector<2x1024xf32>
    %134 = tpu.matmul %131, %133, %cst_30 {dimension_numbers = #tpu.dot_dimension_numbers<[1], [0], [0], [1], [0, 0, 1, 1], [], []>} : vector<2x256xbf16>, vector<256x1024xbf16>, vector<2x1024xf32> -> vector<2x1024xf32>
    %135 = vector.extract_strided_slice %47 {offsets = [2, 0], sizes = [1, 1024], strides = [1, 1]} : vector<4x1024xf32> to vector<1x1024xf32>
    %136 = vector.broadcast %135 : vector<1x1024xf32> to vector<2x1024xf32>
    %137 = arith.addf %134, %136 : vector<2x1024xf32>
    %138 = vector.extract_strided_slice %137 {offsets = [0, 0], sizes = [2, 128], strides = [1, 1]} : vector<2x1024xf32> to vector<2x128xf32>
    %139 = arith.negf %138 : vector<2x128xf32>
    %140 = math.exp %139 : vector<2x128xf32>
    %cst_31 = arith.constant 1.000000e+00 : f32
    %141 = vector.broadcast %cst_31 : f32 to vector<2x128xf32>
    %142 = arith.addf %141, %140 : vector<2x128xf32>
    %143 = arith.divf %141, %142 : vector<2x128xf32>
    %144 = vector.extract_strided_slice %137 {offsets = [0, 256], sizes = [2, 128], strides = [1, 1]} : vector<2x1024xf32> to vector<2x128xf32>
    %145 = math.tanh %144 : vector<2x128xf32>
    %146 = vector.extract_strided_slice %137 {offsets = [0, 384], sizes = [2, 128], strides = [1, 1]} : vector<2x1024xf32> to vector<2x128xf32>
    %147 = arith.negf %146 : vector<2x128xf32>
    %148 = math.exp %147 : vector<2x128xf32>
    %cst_32 = arith.constant 1.000000e+00 : f32
    %149 = vector.broadcast %cst_32 : f32 to vector<2x128xf32>
    %150 = arith.addf %149, %148 : vector<2x128xf32>
    %151 = arith.divf %149, %150 : vector<2x128xf32>
    %152 = arith.mulf %143, %145 : vector<2x128xf32>
    %153 = math.tanh %152 : vector<2x128xf32>
    %154 = arith.mulf %151, %153 : vector<2x128xf32>
    %155 = vector.extract_strided_slice %137 {offsets = [0, 512], sizes = [2, 128], strides = [1, 1]} : vector<2x1024xf32> to vector<2x128xf32>
    %156 = arith.negf %155 : vector<2x128xf32>
    %157 = math.exp %156 : vector<2x128xf32>
    %cst_33 = arith.constant 1.000000e+00 : f32
    %158 = vector.broadcast %cst_33 : f32 to vector<2x128xf32>
    %159 = arith.addf %158, %157 : vector<2x128xf32>
    %160 = arith.divf %158, %159 : vector<2x128xf32>
    %161 = vector.extract_strided_slice %137 {offsets = [0, 768], sizes = [2, 128], strides = [1, 1]} : vector<2x1024xf32> to vector<2x128xf32>
    %162 = math.tanh %161 : vector<2x128xf32>
    %163 = vector.extract_strided_slice %137 {offsets = [0, 896], sizes = [2, 128], strides = [1, 1]} : vector<2x1024xf32> to vector<2x128xf32>
    %164 = arith.negf %163 : vector<2x128xf32>
    %165 = math.exp %164 : vector<2x128xf32>
    %cst_34 = arith.constant 1.000000e+00 : f32
    %166 = vector.broadcast %cst_34 : f32 to vector<2x128xf32>
    %167 = arith.addf %166, %165 : vector<2x128xf32>
    %168 = arith.divf %166, %167 : vector<2x128xf32>
    %169 = arith.mulf %160, %162 : vector<2x128xf32>
    %170 = math.tanh %169 : vector<2x128xf32>
    %171 = arith.mulf %168, %170 : vector<2x128xf32>
    %172 = tpu.concatenate %154, %171 in 1 : vector<2x128xf32>, vector<2x128xf32> -> vector<2x256xf32>
    %173 = arith.truncf %172 : vector<2x256xf32> to vector<2x256xbf16>
    %c2 = arith.constant 2 : index
    %c0_35 = arith.constant 0 : index
    %c0_36 = arith.constant 0 : index
    %174 = vector.load %arg5[%c2, %c0_35, %c0_36] : memref<3x256x1024xbf16, #tpu.memory_space<vmem>>, vector<1x256x1024xbf16>
    %175 = vector.shape_cast %174 : vector<1x256x1024xbf16> to vector<256x1024xbf16>
    %cst_37 = arith.constant dense<0.000000e+00> : vector<2x1024xf32>
    %176 = tpu.matmul %173, %175, %cst_37 {dimension_numbers = #tpu.dot_dimension_numbers<[1], [0], [0], [1], [0, 0, 1, 1], [], []>} : vector<2x256xbf16>, vector<256x1024xbf16>, vector<2x1024xf32> -> vector<2x1024xf32>
    %177 = vector.extract_strided_slice %47 {offsets = [3, 0], sizes = [1, 1024], strides = [1, 1]} : vector<4x1024xf32> to vector<1x1024xf32>
    %178 = vector.broadcast %177 : vector<1x1024xf32> to vector<2x1024xf32>
    %179 = arith.addf %176, %178 : vector<2x1024xf32>
    %180 = vector.extract_strided_slice %179 {offsets = [0, 0], sizes = [2, 128], strides = [1, 1]} : vector<2x1024xf32> to vector<2x128xf32>
    %181 = arith.negf %180 : vector<2x128xf32>
    %182 = math.exp %181 : vector<2x128xf32>
    %cst_38 = arith.constant 1.000000e+00 : f32
    %183 = vector.broadcast %cst_38 : f32 to vector<2x128xf32>
    %184 = arith.addf %183, %182 : vector<2x128xf32>
    %185 = arith.divf %183, %184 : vector<2x128xf32>
    %186 = vector.extract_strided_slice %179 {offsets = [0, 256], sizes = [2, 128], strides = [1, 1]} : vector<2x1024xf32> to vector<2x128xf32>
    %187 = math.tanh %186 : vector<2x128xf32>
    %188 = vector.extract_strided_slice %179 {offsets = [0, 384], sizes = [2, 128], strides = [1, 1]} : vector<2x1024xf32> to vector<2x128xf32>
    %189 = arith.negf %188 : vector<2x128xf32>
    %190 = math.exp %189 : vector<2x128xf32>
    %cst_39 = arith.constant 1.000000e+00 : f32
    %191 = vector.broadcast %cst_39 : f32 to vector<2x128xf32>
    %192 = arith.addf %191, %190 : vector<2x128xf32>
    %193 = arith.divf %191, %192 : vector<2x128xf32>
    %194 = arith.mulf %185, %187 : vector<2x128xf32>
    %195 = math.tanh %194 : vector<2x128xf32>
    %196 = arith.mulf %193, %195 : vector<2x128xf32>
    %197 = vector.extract_strided_slice %179 {offsets = [0, 512], sizes = [2, 128], strides = [1, 1]} : vector<2x1024xf32> to vector<2x128xf32>
    %198 = arith.negf %197 : vector<2x128xf32>
    %199 = math.exp %198 : vector<2x128xf32>
    %cst_40 = arith.constant 1.000000e+00 : f32
    %200 = vector.broadcast %cst_40 : f32 to vector<2x128xf32>
    %201 = arith.addf %200, %199 : vector<2x128xf32>
    %202 = arith.divf %200, %201 : vector<2x128xf32>
    %203 = vector.extract_strided_slice %179 {offsets = [0, 768], sizes = [2, 128], strides = [1, 1]} : vector<2x1024xf32> to vector<2x128xf32>
    %204 = math.tanh %203 : vector<2x128xf32>
    %205 = vector.extract_strided_slice %179 {offsets = [0, 896], sizes = [2, 128], strides = [1, 1]} : vector<2x1024xf32> to vector<2x128xf32>
    %206 = arith.negf %205 : vector<2x128xf32>
    %207 = math.exp %206 : vector<2x128xf32>
    %cst_41 = arith.constant 1.000000e+00 : f32
    %208 = vector.broadcast %cst_41 : f32 to vector<2x128xf32>
    %209 = arith.addf %208, %207 : vector<2x128xf32>
    %210 = arith.divf %208, %209 : vector<2x128xf32>
    %211 = arith.mulf %202, %204 : vector<2x128xf32>
    %212 = math.tanh %211 : vector<2x128xf32>
    %213 = arith.mulf %210, %212 : vector<2x128xf32>
    %214 = tpu.concatenate %196, %213 in 1 : vector<2x128xf32>, vector<2x128xf32> -> vector<2x256xf32>
    %215 = arith.truncf %214 : vector<2x256xf32> to vector<2x256xbf16>
    %c0_42 = arith.constant 0 : index
    %c0_43 = arith.constant 0 : index
    %216 = vector.load %arg7[%c0_42, %c0_43] : memref<256x128xbf16, #tpu.memory_space<vmem>>, vector<256x128xbf16>
    %cst_44 = arith.constant dense<0.000000e+00> : vector<2x128xf32>
    %217 = tpu.matmul %215, %216, %cst_44 {dimension_numbers = #tpu.dot_dimension_numbers<[1], [0], [0], [1], [0, 0, 1, 1], [], []>} : vector<2x256xbf16>, vector<256x128xbf16>, vector<2x128xf32> -> vector<2x128xf32>
    %c0_45 = arith.constant 0 : index
    %c0_46 = arith.constant 0 : index
    %218 = vector.load %arg8[%c0_45, %c0_46] : memref<1x128xf32, #tpu.memory_space<vmem>>, vector<1x128xf32>
    %219 = vector.broadcast %218 : vector<1x128xf32> to vector<2x128xf32>
    %220 = arith.addf %217, %219 : vector<2x128xf32>
    %cst_47 = arith.constant 0.000000e+00 : f32
    %221 = vector.broadcast %cst_47 : f32 to vector<2x128xf32>
    %222 = arith.cmpf ogt, %220, %221 : vector<2x128xf32>
    %cst_48 = arith.constant 1.000000e-01 : f32
    %223 = vector.broadcast %cst_48 : f32 to vector<2x128xf32>
    %224 = arith.mulf %223, %220 : vector<2x128xf32>
    %225 = arith.select %222, %220, %224 : vector<2x128xi1>, vector<2x128xf32>
    %226 = arith.truncf %225 : vector<2x128xf32> to vector<2x128xbf16>
    %c0_49 = arith.constant 0 : index
    %c0_50 = arith.constant 0 : index
    %227 = vector.load %arg9[%c0_49, %c0_50] : memref<128x128xbf16, #tpu.memory_space<vmem>>, vector<128x128xbf16>
    %cst_51 = arith.constant dense<0.000000e+00> : vector<2x128xf32>
    %228 = tpu.matmul %226, %227, %cst_51 {dimension_numbers = #tpu.dot_dimension_numbers<[1], [0], [0], [1], [0, 0, 1, 1], [], []>} : vector<2x128xbf16>, vector<128x128xbf16>, vector<2x128xf32> -> vector<2x128xf32>
    %c0_52 = arith.constant 0 : index
    %c0_53 = arith.constant 0 : index
    %229 = vector.load %arg10[%c0_52, %c0_53] : memref<1x128xf32, #tpu.memory_space<vmem>>, vector<1x128xf32>
    %230 = vector.broadcast %229 : vector<1x128xf32> to vector<2x128xf32>
    %231 = arith.addf %228, %230 : vector<2x128xf32>
    %cst_54 = arith.constant dense<0xFF800000> : vector<2xf32>
    %232 = vector.multi_reduction <maximumf>, %231, %cst_54 [1] : vector<2x128xf32> to vector<2xf32>
    %233 = vector.shape_cast %232 : vector<2xf32> to vector<2x1xf32>
    %234 = vector.broadcast %233 : vector<2x1xf32> to vector<2x128xf32>
    %235 = arith.subf %231, %234 : vector<2x128xf32>
    %236 = math.exp %235 : vector<2x128xf32>
    %cst_55 = arith.constant dense<0.000000e+00> : vector<2xf32>
    %237 = vector.multi_reduction <add>, %236, %cst_55 [1] : vector<2x128xf32> to vector<2xf32>
    %238 = vector.shape_cast %237 : vector<2xf32> to vector<2x1xf32>
    %239 = vector.broadcast %238 : vector<2x1xf32> to vector<2x128xf32>
    %240 = arith.divf %236, %239 : vector<2x128xf32>
    %c0_56 = arith.constant 0 : index
    %c0_57 = arith.constant 0 : index
    %241 = vector.load %arg11[%c0_56, %c0_57] : memref<2x128xf32, #tpu.memory_space<vmem>>, vector<2x128xf32>
    tpu.vector_store %arg11[%c0_56, %c0_57], %240 {strides = array<i32>} : memref<2x128xf32, #tpu.memory_space<vmem>>, vector<2x128xf32>,
    return
  }
  func.func @transform_0(%arg0: i32) -> (i32, i32, i32) {
    %c0_i32 = arith.constant 0 : i32
    %c0_i32_0 = arith.constant 0 : i32
    %c0_i32_1 = arith.constant 0 : i32
    return %arg0, %c0_i32, %c0_i32_0 : i32, i32, i32
  }
  func.func @transform_1(%arg0: i32) -> (i32, i32) {
    %c0_i32 = arith.constant 0 : i32
    %c0_i32_0 = arith.constant 0 : i32
    %c0_i32_1 = arith.constant 0 : i32
    return %c0_i32, %c0_i32_0 : i32, i32
  }
  func.func @transform_2(%arg0: i32) -> (i32, i32) {
    %c0_i32 = arith.constant 0 : i32
    %c0_i32_0 = arith.constant 0 : i32
    %c0_i32_1 = arith.constant 0 : i32
    return %c0_i32, %c0_i32_0 : i32, i32
  }
  func.func @transform_3(%arg0: i32) -> (i32, i32) {
    %c0_i32 = arith.constant 0 : i32
    %c0_i32_0 = arith.constant 0 : i32
    %c0_i32_1 = arith.constant 0 : i32
    return %c0_i32, %c0_i32_0 : i32, i32
  }
  func.func @transform_4(%arg0: i32) -> (i32, i32, i32) {
    %c0_i32 = arith.constant 0 : i32
    %c0_i32_0 = arith.constant 0 : i32
    %c0_i32_1 = arith.constant 0 : i32
    %c0_i32_2 = arith.constant 0 : i32
    return %c0_i32, %c0_i32_0, %c0_i32_1 : i32, i32, i32
  }
  func.func @transform_5(%arg0: i32) -> (i32, i32) {
    %c0_i32 = arith.constant 0 : i32
    %c0_i32_0 = arith.constant 0 : i32
    %c0_i32_1 = arith.constant 0 : i32
    return %c0_i32, %c0_i32_0 : i32, i32
  }
  func.func @transform_6(%arg0: i32) -> (i32, i32) {
    %c0_i32 = arith.constant 0 : i32
    %c0_i32_0 = arith.constant 0 : i32
    %c0_i32_1 = arith.constant 0 : i32
    return %c0_i32, %c0_i32_0 : i32, i32
  }
  func.func @transform_7(%arg0: i32) -> (i32, i32) {
    %c0_i32 = arith.constant 0 : i32
    %c0_i32_0 = arith.constant 0 : i32
    %c0_i32_1 = arith.constant 0 : i32
    return %c0_i32, %c0_i32_0 : i32, i32
  }
  func.func @transform_8(%arg0: i32) -> (i32, i32) {
    %c0_i32 = arith.constant 0 : i32
    %c0_i32_0 = arith.constant 0 : i32
    %c0_i32_1 = arith.constant 0 : i32
    return %c0_i32, %c0_i32_0 : i32, i32
  }
  func.func @transform_9(%arg0: i32) -> (i32, i32) {
    %c0_i32 = arith.constant 0 : i32
    %c0_i32_0 = arith.constant 0 : i32
    %c0_i32_1 = arith.constant 0 : i32
    return %c0_i32, %c0_i32_0 : i32, i32
  }
  func.func @transform_10(%arg0: i32) -> (i32, i32) {
    %c0_i32 = arith.constant 0 : i32
    %c0_i32_0 = arith.constant 0 : i32
    return %arg0, %c0_i32 : i32, i32
  }
}

</mosaic_0001>

<bundles_post_ra>
// kernel: cnn_lstm_forward.1
= control target key start
LH: loop header
LB: loop body
LE: loop exit
PB: predicated region body
PF: predicated region fallthrough
CT: control target
= control target key end

     0   :  { %15 = vsyncpa [#allocation3], 0  ;;  %s6331_s0 = inlined_call_operand.vmem [shape: bf16[2,20,128], index: 0, kind: input, shape index: {}]   ;;  %s6332_s1 = inlined_call_operand.hbm [shape: bf16[640,128], index: 1, kind: input, shape index: {}]   ;;  %s6333_s2 = inlined_call_operand.hbm [shape: f32[1,128], index: 2, kind: input, shape index: {}]   ;;  %s6334_s3 = inlined_call_operand.hbm [shape: bf16[128,1024], index: 3, kind: input, shape index: {}]   ;;  %s6335_s4 = inlined_call_operand.hbm [shape: bf16[3,256,1024], index: 4, kind: input, shape index: {}]   ;;  %s6336_s5 = inlined_call_operand.hbm [shape: f32[4,1024], index: 5, kind: input, shape index: {}]   ;;  %s6337_s6 = inlined_call_operand.hbm [shape: bf16[256,128], index: 6, kind: input, shape index: {}]   ;;  %s6338_s7 = inlined_call_operand.hbm [shape: f32[1,128], index: 7, kind: input, shape index: {}]   ;;  %s6339_s8 = inlined_call_operand.hbm [shape: bf16[128,128], index: 8, kind: input, shape index: {}]   ;;  %s6340_s9 = inlined_call_operand.hbm [shape: f32[1,128], index: 9, kind: input, shape index: {}]   ;;  %s6341_s10 = inlined_call_operand.hbm [shape: f32[2,128], index: 10, kind: output, shape index: {}]  }
   0x1   :  { %16 = vsyncpa [#allocation6], 0 }
   0x2   :  { %17 = vsyncpa [#allocation9], 0 }
   0x3   :  { %18 = vsyncpa [#allocation12], 0 }
   0x4   :  { %19 = vsyncpa [#allocation15], 0 }
   0x5   :  { %20 = vsyncpa [#allocation4], 0  ;;  %s5885_s13 = smov [#allocation5]   ;;  %s5653_s17 = scalar_lea.hbm %s6333_s2, 16 }
   0x6   :  { %s41_s14 = sshll.u32 %s5885_s13, 4  ;;  %p5654_p0 = scmp.ne.s32.totalorder %s6333_s2, %s5653_s17  ;;  %s42_s14 = int_to_ptr.vmem [resolvable:$true] %s41_s14 }
   0x7   :  { %p5657_p1 = scmp.lt.u32.totalorder %s5653_s17, %s6333_s2 }
   0x9   :  { %p5659_p2 = pnand %p5657_p1, %p5654_p0 }
   0xb   :  { %5662 = shalt.err (!%p5659_p2)
}
   0xc   :  { %s5663_s22 = scalar_lea.vmem %s42_s14, 16  ;;  %s5667_s23 = scalar_lea.vmem %s42_s14, 32 }
   0xd   :  { %p5664_p3 = scmp.ne.s32.totalorder %s42_s14, %s5663_s22  ;;  %p5668_p4 = scmp.lt.s32.totalorder %s42_s14, %s42_s14 }
   0xe   :  { %p5669_p5 = scmp.lt.s32.totalorder %s5667_s23, %s5663_s22 }
  0x10   :  { %p5670_p6 = por %p5669_p5, %p5668_p4 }
  0x12   :  { %p5671_p7 = pnand %p5670_p6, %p5664_p3 }
  0x14   :  { %5674 = shalt.err (!%p5671_p7)
}
  0x15   :  { %44 = dma.hbm_to_vmem [thread:$0]  %s6333_s2, 16, %s42_s14, [#allocation6]  }
  0x16   :  { %s5886_s26 = smov [#allocation8]   ;;  %s5675_s30 = scalar_lea.hbm %s6335_s4, 49152 }
  0x17   :  { %s62_s27 = sshll.u32 %s5886_s26, 4  ;;  %p5676_p8 = scmp.ne.s32.totalorder %s6335_s4, %s5675_s30  ;;  %s63_s27 = int_to_ptr.vmem [resolvable:$true] %s62_s27 }
  0x18   :  { %p5679_p9 = scmp.lt.u32.totalorder %s5675_s30, %s6335_s4 }
  0x1a   :  { %p5681_p10 = pnand %p5679_p9, %p5676_p8 }
  0x1c   :  { %5684 = shalt.err (!%p5681_p10)
}
  0x1d   :  { %s5685_s16 = scalar_lea.vmem %s63_s27, 49152  ;;  %p5690_p12 = scmp.lt.s32.totalorder %s63_s27, %s63_s27 }
  0x1e   :  { %p5686_p11 = scmp.ne.s32.totalorder %s63_s27, %s5685_s16  ;;  %p5691_p13 = scmp.lt.s32.totalorder %s5685_s16, %s5685_s16 }
  0x20   :  { %p5692_p0 = por %p5691_p13, %p5690_p12 }
  0x22   :  { %p5693_p1 = pnand %p5692_p0, %p5686_p11 }
  0x24   :  { %5696 = shalt.err (!%p5693_p1)
}
  0x25   :  { %s5887_s2 = smov 512   ;;  %s5888_s14 = smov 32  }
  0x26   :  { %68 = dma.hbm_to_vmem [thread:$0]  %s6335_s4, 49152, %s63_s27, [#allocation9], %s5887_s2, %s5887_s2, %s5888_s14  }
  0x27   :  { %s5889_s19 = smov [#allocation11]   ;;  %s5890_s21 = smov [#allocation14]  }
  0x28   :  { %s84_s20 = sshll.u32 %s5889_s19, 4  ;;  %s106_s22 = sshll.u32 %s5890_s21, 4  ;;  %s85_s20 = int_to_ptr.vmem [resolvable:$true] %s84_s20  ;;  %s5984_s22 = int_to_ptr.vmem [resolvable:$true] %s106_s22 }
  0x29   :  { %s5697_s25 = scalar_lea.hbm %s6337_s6, 2048 }
  0x2a   :  { %p5698_p2 = scmp.ne.s32.totalorder %s6337_s6, %s5697_s25  ;;  %p5701_p3 = scmp.lt.u32.totalorder %s5697_s25, %s6337_s6 }
  0x2c   :  { %p5703_p4 = pnand %p5701_p3, %p5698_p2 }
  0x2e   :  { %5706 = shalt.err (!%p5703_p4)
}
  0x2f   :  { %s5707_s4 = scalar_lea.vmem %s85_s20, 2048  ;;  %p5712_p6 = scmp.lt.s32.totalorder %s85_s20, %s85_s20 }
  0x30   :  { %p5708_p5 = scmp.ne.s32.totalorder %s85_s20, %s5707_s4  ;;  %p5713_p7 = scmp.lt.s32.totalorder %s5707_s4, %s5707_s4 }
  0x32   :  { %p5714_p8 = por %p5713_p7, %p5712_p6 }
  0x34   :  { %p5715_p9 = pnand %p5714_p8, %p5708_p5 }
  0x36   :  { %5718 = shalt.err (!%p5715_p9)
}
  0x37   :  { %s5891_s27 = smov 64   ;;  %s5892_s11 = smov 4  }
  0x38   :  { %90 = dma.hbm_to_vmem [thread:$0]  %s6337_s6, 2048, %s85_s20, [#allocation12], %s5891_s27, %s5891_s27, %s5892_s11  }
  0x39   :  { %s5719_s17 = scalar_lea.hbm %s6339_s8, 1024 }
  0x3a   :  { %p5720_p10 = scmp.ne.s32.totalorder %s6339_s8, %s5719_s17  ;;  %p5723_p11 = scmp.lt.u32.totalorder %s5719_s17, %s6339_s8 }
  0x3c   :  { %p5725_p12 = pnand %p5723_p11, %p5720_p10 }
  0x3e   :  { %5728 = shalt.err (!%p5725_p12)
}
  0x3f   :  { %s5729_s24 = scalar_lea.vmem %s5984_s22, 1024  ;;  %p5734_p0 = scmp.lt.s32.totalorder %s5984_s22, %s5984_s22 }
  0x40   :  { %p5730_p13 = scmp.ne.s32.totalorder %s5984_s22, %s5729_s24  ;;  %p5735_p1 = scmp.lt.s32.totalorder %s5729_s24, %s5729_s24 }
  0x42   :  { %p5736_p2 = por %p5735_p1, %p5734_p0 }
  0x44   :  { %p5737_p3 = pnand %p5736_p2, %p5730_p13 }
  0x46   :  { %5740 = shalt.err (!%p5737_p3)
}
  0x47   :  { %112 = dma.hbm_to_vmem [thread:$0]  %s6339_s8, 1024, %s5984_s22, [#allocation15], %s5891_s27, %s5891_s27, %s5892_s11  }
  0x48   :  { %s5893_s25 = smov [#allocation2]   ;;  %s5894_s28 = smov [#allocation7]  }
  0x49   :  { %s28_s26 = sshll.u32 %s5893_s25, 4  ;;  %s50_s29 = sshll.u32 %s5894_s28, 4  ;;  %s29_s26 = int_to_ptr.vmem [resolvable:$true] %s28_s26  ;;  %s6021_s29 = int_to_ptr.vmem [resolvable:$true] %s50_s29 }
  0x4a   :  { %s5741_s12 = scalar_lea.hbm %s6332_s1, 5120 }
  0x4b   :  { %p5742_p4 = scmp.ne.s32.totalorder %s6332_s1, %s5741_s12  ;;  %p5745_p5 = scmp.lt.u32.totalorder %s5741_s12, %s6332_s1 }
  0x4d   :  { %p5747_p6 = pnand %p5745_p5, %p5742_p4 }
  0x4f   :  { %5750 = shalt.err (!%p5747_p6)
}
  0x50   :  { %s5751_s8 = scalar_lea.vmem %s29_s26, 5120  ;;  %p5756_p8 = scmp.lt.s32.totalorder %s29_s26, %s29_s26 }
  0x51   :  { %p5752_p7 = scmp.ne.s32.totalorder %s29_s26, %s5751_s8  ;;  %p5757_p9 = scmp.lt.s32.totalorder %s5751_s8, %s5751_s8 }
  0x53   :  { %p5758_p10 = por %p5757_p9, %p5756_p8 }
  0x55   :  { %p5759_p11 = pnand %p5758_p10, %p5752_p7 }
  0x57   :  { %5762 = shalt.err (!%p5759_p11)
}
  0x58   :  { %34 = dma.hbm_to_vmem [thread:$0]  %s6332_s1, 5120, %s29_s26, [#allocation3], %s5891_s27, %s5891_s27, %s5892_s11  }
  0x59   :  { %s5763_s23 = scalar_lea.hbm %s6334_s3, 8192 }
  0x5a   :  { %p5764_p12 = scmp.ne.s32.totalorder %s6334_s3, %s5763_s23  ;;  %p5767_p13 = scmp.lt.u32.totalorder %s5763_s23, %s6334_s3 }
  0x5c   :  { %p5769_p0 = pnand %p5767_p13, %p5764_p12 }
  0x5e   :  { %5772 = shalt.err (!%p5769_p0)
}
  0x5f   :  { %s5773_s28 = scalar_lea.vmem %s6021_s29, 8192  ;;  %p5778_p2 = scmp.lt.s32.totalorder %s6021_s29, %s6021_s29 }
  0x60   :  { %p5774_p1 = scmp.ne.s32.totalorder %s6021_s29, %s5773_s28  ;;  %p5779_p3 = scmp.lt.s32.totalorder %s5773_s28, %s5773_s28 }
  0x62   :  { %p5780_p4 = por %p5779_p3, %p5778_p2 }
  0x64   :  { %p5781_p5 = pnand %p5780_p4, %p5774_p1 }
  0x66   :  { %5784 = shalt.err (!%p5781_p5)
}
  0x67   :  { %56 = dma.hbm_to_vmem [thread:$0]  %s6334_s3, 8192, %s6021_s29, [#allocation6], %s5887_s2, %s5887_s2, %s5888_s14  }
  0x68   :  { %s5895_s11 = smov [#allocation10]   ;;  %s5896_s30 = smov [#allocation13]  }
  0x69   :  { %s75_s26 = sshll.u32 %s5895_s11, 4  ;;  %s97_s4 = sshll.u32 %s5896_s30, 4  ;;  %s76_s26 = int_to_ptr.vmem [resolvable:$true] %s75_s26  ;;  %s98_s4 = int_to_ptr.vmem [resolvable:$true] %s97_s4 }
  0x6a   :  { %s5785_s15 = scalar_lea.hbm %s6336_s5, 512 }
  0x6b   :  { %p5786_p6 = scmp.ne.s32.totalorder %s6336_s5, %s5785_s15  ;;  %p5789_p7 = scmp.lt.u32.totalorder %s5785_s15, %s6336_s5 }
  0x6d   :  { %p5791_p8 = pnand %p5789_p7, %p5786_p6 }
  0x6f   :  { %5794 = shalt.err (!%p5791_p8)
}
  0x70   :  { %s5795_s3 = scalar_lea.vmem %s76_s26, 512  ;;  %p5800_p10 = scmp.lt.s32.totalorder %s76_s26, %s76_s26 }
  0x71   :  { %p5796_p9 = scmp.ne.s32.totalorder %s76_s26, %s5795_s3  ;;  %p5801_p11 = scmp.lt.s32.totalorder %s5795_s3, %s5795_s3 }
  0x73   :  { %p5802_p12 = por %p5801_p11, %p5800_p10 }
  0x75   :  { %p5803_p13 = pnand %p5802_p12, %p5796_p9 }
  0x77   :  { %5806 = shalt.err (!%p5803_p13)
}
  0x78   :  { %78 = dma.hbm_to_vmem [thread:$0]  %s6336_s5, 512, %s76_s26, [#allocation9]  }
  0x79   :  { %s5807_s19 = scalar_lea.hbm %s6338_s7, 16 }
  0x7a   :  { %p5808_p0 = scmp.ne.s32.totalorder %s6338_s7, %s5807_s19  ;;  %p5811_p1 = scmp.lt.u32.totalorder %s5807_s19, %s6338_s7 }
  0x7c   :  { %p5813_p2 = pnand %p5811_p1, %p5808_p0 }
  0x7e   :  { %5816 = shalt.err (!%p5813_p2)
}
  0x7f   :  { %s5817_s20 = scalar_lea.vmem %s98_s4, 16  ;;  %s5821_s25 = scalar_lea.vmem %s98_s4, 32 }
  0x80   :  { %p5818_p3 = scmp.ne.s32.totalorder %s98_s4, %s5817_s20  ;;  %p5822_p4 = scmp.lt.s32.totalorder %s98_s4, %s98_s4 }
  0x81   :  { %p5823_p5 = scmp.lt.s32.totalorder %s5821_s25, %s5817_s20 }
  0x83   :  { %p5824_p6 = por %p5823_p5, %p5822_p4 }
  0x85   :  { %p5825_p7 = pnand %p5824_p6, %p5818_p3 }
  0x87   :  { %5828 = shalt.err (!%p5825_p7)
}
  0x88   :  { %100 = dma.hbm_to_vmem [thread:$0]  %s6338_s7, 16, %s98_s4, [#allocation12]  }
  0x89   :  { %s5897_s1 = smov [#allocation16]   ;;  %s5829_s30 = scalar_lea.hbm %s6340_s9, 16 }
  0x8a   :  { %s119_s27 = sshll.u32 %s5897_s1, 4  ;;  %p5830_p8 = scmp.ne.s32.totalorder %s6340_s9, %s5829_s30  ;;  %s120_s27 = int_to_ptr.vmem [resolvable:$true] %s119_s27 }
  0x8b   :  { %p5833_p9 = scmp.lt.u32.totalorder %s5829_s30, %s6340_s9 }
  0x8d   :  { %p5835_p10 = pnand %p5833_p9, %p5830_p8 }
  0x8f   :  { %5838 = shalt.err (!%p5835_p10)
}
  0x90   :  { %s5839_s17 = scalar_lea.vmem %s120_s27, 16  ;;  %s5843_s7 = scalar_lea.vmem %s120_s27, 32 }
  0x91   :  { %p5840_p11 = scmp.ne.s32.totalorder %s120_s27, %s5839_s17  ;;  %p5844_p12 = scmp.lt.s32.totalorder %s120_s27, %s120_s27 }
  0x92   :  { %p5845_p13 = scmp.lt.s32.totalorder %s5843_s7, %s5839_s17 }
  0x94   :  { %p5846_p0 = por %p5845_p13, %p5844_p12 }
  0x96   :  { %p5847_p1 = pnand %p5846_p0, %p5840_p11 }
  0x98   :  { %5850 = shalt.err (!%p5847_p1)
}
  0x99   :  { %122 = dma.hbm_to_vmem [thread:$0]  %s6340_s9, 16, %s120_s27, [#allocation15]  }
  0x9a   :  { %5873 = dma.done.wait [#allocation3], 5120  }
  0x9b   :  { %5874 = vsyncadd [#allocation3], 4294962176 }
  0x9c   :  { %5875 = dma.done.wait [#allocation6], 8208  }
  0x9d   :  { %5876 = vsyncadd [#allocation6], 4294959088 }
  0x9e   :  { %5877 = dma.done.wait [#allocation9], 49664  }
  0x9f   :  { %5878 = vsyncadd [#allocation9], 4294917632 }
  0xa0   :  { %5879 = dma.done.wait [#allocation12], 2064  }
  0xa1   :  { %5880 = vsyncadd [#allocation12], 4294965232 }
  0xa2   :  { %5881 = dma.done.wait [#allocation15], 1040  }
  0xa3   :  { %5882 = vsyncadd [#allocation15], 4294966256  ;;  %v5481_v0 = vld [vmem:[#allocation2 + $0x40] sm:$0xff]   ;;  %v5485_v4 = vld [vmem:[#allocation2 + $0x48] sm:$0xff]   ;;  %vm175_vm0 = vsmask.f32 7424 }
  0xa4   :  { %v5482_v1 = vld [vmem:[#allocation2] sm:$0xff]   ;;  %5327 = vmatprep.subr.bf16.mxu0 %v5481_v0  ;;  %v5486_v5 = vld [vmem:[#allocation2 + $0x8] sm:$0xff]   ;;  %v5489_v8 = vld [vmem:[#allocation2 + $0x50] sm:$0xff]   ;;  %vm202_vm1 = vcmask 1046528   ;;  %vm211_vm2 = vsmask.f32 6400 }
  0xa5   :  { %v5483_v2 = vld [vmem:[#allocation2 + $0xc0] sm:$0xff]   ;;  %5328 = vmatpush3.bf16.msra.mxu0 %v5482_v1  ;;  %v5487_v6 = vld [vmem:[#allocation2 + $0xc8] sm:$0xff]   ;;  %v5490_v9 = vld [vmem:[#allocation2 + $0x10] sm:$0xff]   ;;  %vm232_vm3 = vcmask 1045504   ;;  %vm892_vm13 = vcmask 1041409   ;;  %vm5900_vm14 = vmmov 0  }
  0xa6   :  { %v5484_v3 = vld [vmem:[#allocation2 + $0x80] sm:$0xff]   ;;  %5355 = vmatprep.subr.bf16.mxu1 %v5483_v2  ;;  %5329 = vmatprep.subr.bf16.mxu0 %v5485_v4  ;;  %v5488_v7 = vld [vmem:[#allocation2 + $0x88] sm:$0xff]   ;;  %v5491_v10 = vld [vmem:[#allocation2 + $0xd0] sm:$0xff]  }
  0xa7   :  { %5356 = vmatpush3.bf16.msra.mxu1 %v5484_v3  ;;  %v5492_v11 = vld [vmem:[#allocation2 + $0x90] sm:$0xff]   ;;  %v5493_v12 = vld [vmem:[#allocation2 + $0x58] sm:$0xff]   ;;  %v5497_v16 = vld [vmem:[#allocation2 + $0x60] sm:$0xff]  }
  0xa8   :  { %5357 = vmatprep.subr.bf16.mxu1 %v5487_v6  ;;  %v5494_v13 = vld [vmem:[#allocation2 + $0x18] sm:$0xff]   ;;  %v5498_v17 = vld [vmem:[#allocation2 + $0x20] sm:$0xff]   ;;  %v5501_v20 = vld [vmem:[#allocation2 + $0x68] sm:$0xff]  }
  0xa9   :  { %5330 = vmatpush3.bf16.msra.mxu0 %v5486_v5  ;;  %v5495_v14 = vld [vmem:[#allocation2 + $0xd8] sm:$0xff]   ;;  %v5499_v18 = vld [vmem:[#allocation2 + $0xe0] sm:$0xff]   ;;  %v5502_v21 = vld [vmem:[#allocation2 + $0x28] sm:$0xff]  }
  0xaa   :  { %5331 = vmatprep.subr.bf16.mxu0 %v5489_v8  ;;  %v5496_v15 = vld [vmem:[#allocation2 + $0x98] sm:$0xff]   ;;  %v5500_v19 = vld [vmem:[#allocation2 + $0xa0] sm:$0xff]   ;;  %v5503_v22 = vld [vmem:[#allocation2 + $0xe8] sm:$0xff]  }
  0xab   :  { %5358 = vmatpush3.bf16.msra.mxu1 %v5488_v7  ;;  %v5504_v23 = vld [vmem:[#allocation2 + $0xa8] sm:$0xff]   ;;  %v5505_v24 = vld [vmem:[#allocation2 + $0x70] sm:$0xff]   ;;  %v5509_v28 = vld [vmem:[#allocation2 + $0x78] sm:$0xff]  }
  0xac   :  { %5359 = vmatprep.subr.bf16.mxu1 %v5491_v10  ;;  %v5506_v25 = vld [vmem:[#allocation2 + $0x30] sm:$0xff]   ;;  %v5510_v29 = vld [vmem:[#allocation2 + $0x38] sm:$0xff]   ;;  %v6097_v31 = vld [vmem:[%s6331_s0] sm:$0xff]  }
  0xad   :  { %5332 = vmatpush3.bf16.msra.mxu0 %v5490_v9  ;;  %v5507_v26 = vld [vmem:[#allocation2 + $0xf0] sm:$0xff]   ;;  %v5511_v30 = vld [vmem:[#allocation2 + $0xf8] sm:$0xff]   ;;  %v6102_v32 = vld [vmem:[%s6331_s0 + $0x8] ss:$0 sps:$4 sm:$0x33]   ;;  %v177_v34 = vshrl.u32 %v6097_v31, 16 }
  0xae   :  { %5333 = vmatprep.subr.bf16.mxu0 %v5493_v12  ;;  %v5508_v27 = vld [vmem:[#allocation2 + $0xb0] sm:$0xff]   ;;  %v5514_v33 = vld [vmem:[#allocation2 + $0xb8] sm:$0xff]   ;;  %v179_v35 = vshll.u32 %v6097_v31, 16  ;;  %v184_v36 = vshll.u32 %v6102_v32, 16  ;;  %v5515_v37 = vld [vmem:[#allocation2 + $0x100] sm:$0xff]   ;;  %v215_v38 = vshrl.u32 %v6102_v32, 16 }
  0xaf   :  { %5360 = vmatpush3.bf16.msra.mxu1 %v5492_v11  ;;  %v203_v39 = vrot.slane %v6097_v31, 1  ;;  %v204_v40 = vrot.slane %v6102_v32, 1  ;;  %v212_v43 = vrot.slane %v177_v34, 1  ;;  %v5516_v52 = vld [vmem:[#allocation2 + $0x108] sm:$0xff]   ;;  %v5517_v60 = vld [vmem:[#allocation2 + $0x110] sm:$0xff]   ;;  %v233_v61 = vrot.slane %v6097_v31, 2 }
  0xb0   :  { %5361 = vmatprep.subr.bf16.mxu1 %v5495_v14  ;;  %v181_v41 = vrot.slane %v179_v35, 1  ;;  %v186_v42 = vrot.slane %v184_v36, 1  ;;  %v213_v44 = vrot.slane %v179_v35, 2  ;;  %v217_v45 = vrot.slane %v215_v38, 1  ;;  %v5520_v54 = vld [vmem:[%s6331_s0 + $0xc] sm:$0xff]   ;;  %v5518_v7 = vld [vmem:[#allocation2 + $0x118] sm:$0xff]  }
  0xb1   :  { %5334 = vmatpush3.bf16.msra.mxu0 %v5494_v13  ;;  %v218_v46 = vrot.slane %v184_v36, 2  ;;  %v205_v51 = vsel %vm202_vm1, %v203_v39, %v204_v40  ;;  %v5521_v55 = vld [vmem:[%s6331_s0 + $0x14] ss:$0 sps:$4 sm:$0x33]   ;;  %v189_v56 = vshrl.u32 %v5520_v54, 16  ;;  %v191_v57 = vshll.u32 %v5520_v54, 16 }
  0xb2   :  { %5335 = vmatprep.subr.bf16.mxu0 %v5497_v16  ;;  %v182_v47 = vor.u32 %v181_v41, %v177_v34  ;;  %v214_v48 = vor.u32 %v213_v44, %v212_v43  ;;  %v196_v58 = vshll.u32 %v5521_v55, 16  ;;  %v224_v59 = vshrl.u32 %v5521_v55, 16  ;;  %v5519_v12 = vld [vmem:[#allocation2 + $0x120] sm:$0xff]   ;;  %v5522_v16 = vld [vmem:[#allocation2 + $0x128] sm:$0xff]   ;;  %s5901_s0 = smov [#allocation17]  }
  0xb3   :  { %5362 = vmatpush3.bf16.msra.mxu1 %v5496_v15  ;;  %v219_v49 = vor.u32 %v218_v46, %v217_v45  ;;  %v234_v62 = vrot.slane %v6102_v32, 2  ;;  %v193_v63 = vrot.slane %v191_v57, 1  ;;  %v221_v1 = vrot.slane %v189_v56, 1  ;;  %v779_v34 = vld [vmem:[#allocation7 + $0x68] sm:$0xff]  ;;  %v782_v39 = vld [vmem:[#allocation7 + $0x80] sm:$0xff]  ;;  %s4777_s21 = sshll.u32 %s5901_s0, 4  ;;  %s4778_s21 = int_to_ptr.vmem [resolvable:$true] %s4777_s21 }
  0xb4   :  { %5363 = vmatprep.subr.bf16.mxu1 %v5499_v18  ;;  %v187_v50 = vsel %vm175_vm0, %v182_v47, %v186_v42  ;;  %v198_v0 = vrot.slane %v196_v58, 1  ;;  %v222_v2 = vrot.slane %v191_v57, 2  ;;  %v226_v3 = vrot.slane %v224_v59, 1  ;;  %v5524_v18 = vld [vmem:[#allocation2 + $0x138] sm:$0xff]   ;;  %v786_v40 = vld [vmem:[#allocation7 + $0xa0] sm:$0xff]  ;;  %v783_v41 = vld [vmem:[#allocation7 + $0x88] sm:$0xff]  ;;  %p5856_p3 = scmp.lt.s32.totalorder %s4778_s21, %s4778_s21 }
  0xb5   :  { %5336 = vmatpush3.bf16.msra.mxu0 %v5498_v17  ;;  %600 = vmatprep.mubr.bf16.mxu0 %v187_v50  ;;  %v220_v53 = vsel %vm211_vm2, %v214_v48, %v219_v49  ;;  %v227_v4 = vrot.slane %v196_v58, 2  ;;  %v206_v5 = vrot.slane %v5520_v54, 1  ;;  %v207_v6 = vrot.slane %v5521_v55, 1  ;;  %v5523_v17 = vld [vmem:[#allocation2 + $0x130] sm:$0xff]   ;;  %v790_v47 = vld [vmem:[#allocation7 + $0xc0] sm:$0xff]  ;;  %s5851_s23 = scalar_lea.vmem %s4778_s21, 32 }
  0xb6   :  { %5337 = vmatprep.subr.bf16.mxu0 %v5501_v20  ;;  %649 = vmatprep.mubr.bf16.mxu1 %v220_v53  ;;  %v194_v8 = vor.u32 %v193_v63, %v189_v56  ;;  %v223_v9 = vor.u32 %v222_v2, %v221_v1  ;;  %v235_v15 = vsel %vm232_vm3, %v233_v61, %v234_v62  ;;  %v237_v20 = vrot.slane %v5521_v55, 2  ;;  %v787_v43 = vld [vmem:[#allocation7 + $0xa8] sm:$0xff]  ;;  %v794_v48 = vld [vmem:[#allocation7 + $0xe0] sm:$0xff]  ;;  %p5852_p2 = scmp.ne.s32.totalorder %s4778_s21, %s5851_s23  ;;  %p5857_p4 = scmp.lt.s32.totalorder %s5851_s23, %s5851_s23 }
  0xb7   :  { %5364 = vmatpush3.bf16.msra.mxu1 %v5500_v19  ;;  %v228_v10 = vor.u32 %v227_v4, %v226_v3  ;;  %v208_v14 = vsel %vm202_vm1, %v206_v5, %v207_v6  ;;  %v236_v19 = vrot.slane %v5520_v54, 2  ;;  %v5898_v35 = vmov 0   ;;  %v791_v49 = vld [vmem:[#allocation7 + $0xc8] sm:$0xff]  ;;  %v798_v55 = vld [vmem:[#allocation7 + $0x100] sm:$0xff] }
  0xb8   :  { %5365 = vmatprep.subr.bf16.mxu1 %v5503_v22  ;;  %v199_v11 = vsel %vm175_vm0, %v194_v8, %v198_v0  ;;  %v766_v22 = vld [vmem:[#allocation7] sm:$0xff]  ;;  %v4854_v42 = vcombine.high %v782_v39, %v786_v40  ;;  %v4853_v44 = vcombine.low %v782_v39, %v786_v40  ;;  %v4855_v45 = vcombine.low %v783_v41, %v787_v43  ;;  %v799_v57 = vld [vmem:[#allocation7 + $0x108] sm:$0xff]  ;;  %p5858_p5 = por %p5857_p4, %p5856_p3 }
  0xb9   :  { %5338 = vmatpush3.bf16.msra.mxu0 %v5502_v21  ;;  %v229_v13 = vsel %vm211_vm2, %v223_v9, %v228_v10  ;;  %v238_v21 = vsel %vm232_vm3, %v236_v19, %v237_v20  ;;  %v4856_v46 = vcombine.high %v783_v41, %v787_v43  ;;  %v4862_v50 = vcombine.high %v790_v47, %v794_v48  ;;  %v802_v56 = vld [vmem:[#allocation7 + $0x120] sm:$0xff]  ;;  %v803_v59 = vld [vmem:[#allocation7 + $0x128] sm:$0xff] }
  0xba   :  { %5339 = vmatprep.subr.bf16.mxu0 %v5505_v24  ;;  %v767_v24 = vld [vmem:[#allocation7 + $0x8] sm:$0xff]  ;;  %v4870_v58 = vcombine.high %v798_v55, %v802_v56  ;;  %v4871_v61 = vcombine.low %v799_v57, %v803_v59  ;;  %v4872_v62 = vcombine.high %v799_v57, %v803_v59  ;;  %v806_v63 = vld [vmem:[#allocation7 + $0x140] sm:$0xff]  ;;  %vm4758_vm0 = vcmask 1041408   ;;  %p5859_p6 = pnand %p5858_p5, %p5852_p2 }
  0xbb   :  { %5366 = vmatpush3.bf16.msra.mxu1 %v5504_v23  ;;  %v770_v23 = vld [vmem:[#allocation7 + $0x20] sm:$0xff]  ;;  %v807_v1 = vld [vmem:[#allocation7 + $0x148] sm:$0xff] }
  0xbc   :  { %5367 = vmatprep.subr.bf16.mxu1 %v5507_v26  ;;  %v4838_v26 = vcombine.high %v766_v22, %v770_v23  ;;  %v810_v0 = vld [vmem:[#allocation7 + $0x160] sm:$0xff]  ;;  %v811_v3 = vld [vmem:[#allocation7 + $0x168] sm:$0xff] }
  0xbd   :  { %5340 = vmatpush3.bf16.msra.mxu0 %v5506_v25  ;;  %v4837_v25 = vcombine.low %v766_v22, %v770_v23  ;;  %v4878_v2 = vcombine.high %v806_v63, %v810_v0  ;;  %v4877_v4 = vcombine.low %v806_v63, %v810_v0  ;;  %v4879_v5 = vcombine.low %v807_v1, %v811_v3  ;;  %v818_v8 = vld [vmem:[#allocation7 + $0x1a0] sm:$0xff]  ;;  %v815_v9 = vld [vmem:[#allocation7 + $0x188] sm:$0xff]  ;;  %v6129_v23 = vld [vmem:[#allocation7 + $0x10] sm:$0xff] }
  0xbe   :  { %5341 = vmatprep.subr.bf16.mxu0 %v5509_v28  ;;  %v4880_v6 = vcombine.high %v807_v1, %v811_v3  ;;  %v827_v19 = vld [vmem:[#allocation7 + $0x1e8] sm:$0xff] }
  0xbf   :  { %5368 = vmatpush3.bf16.msra.mxu1 %v5508_v27  ;;  %v771_v27 = vld [vmem:[#allocation7 + $0x28] sm:$0xff] }
  0xc0   :  { %5369 = vmatprep.subr.bf16.mxu1 %v5511_v30  ;;  %v4839_v28 = vcombine.low %v767_v24, %v771_v27  ;;  %v774_v30 = vld [vmem:[#allocation7 + $0x40] sm:$0xff] }
  0xc1   :  { %5342 = vmatpush3.bf16.msra.mxu0 %v5510_v29  ;;  %v4840_v29 = vcombine.high %v767_v24, %v771_v27  ;;  %v6131_v24 = vld [vmem:[#allocation7 + $0x30] sm:$0xff] }
  0xc2   :  { %5424 = vmatprep.subr.bf16.mxu0 %v5515_v37  ;;  %v4842_v27 = vcombine.high %v6129_v23, %v6131_v24 }
  0xc3   :  { %5370 = vmatpush3.bf16.msra.mxu1 %v5514_v33  ;;  %v775_v33 = vld [vmem:[#allocation7 + $0x48] sm:$0xff] }
  0xc4   :  { %601 = vmatmul.mubr.bf16.vlgmr.msra.gmra.mrb[0].mxu0 %v6097_v31  ;;  %1216 = vmatprep.subr.bf16.mxu1 %v4838_v26  ;;  %v778_v31 = vld [vmem:[#allocation7 + $0x60] sm:$0xff]  ;;  %v4848_v38 = vcombine.high %v775_v33, %v779_v34  ;;  %v4841_v26 = vcombine.low %v6129_v23, %v6131_v24 }
  0xc5   :  { %5425 = vmatpush3.bf16.msra.mxu0 %v5515_v37  ;;  %608 = vmatprep.mubr.bf16.mxu0 %v199_v11  ;;  %v4846_v32 = vcombine.high %v774_v30, %v778_v31  ;;  %v4845_v36 = vcombine.low %v774_v30, %v778_v31  ;;  %v4847_v37 = vcombine.low %v775_v33, %v779_v34  ;;  %v819_v11 = vld [vmem:[#allocation7 + $0x1a8] sm:$0xff] }
  0xc6   :  { %650 = vmatmul.mubr.bf16.vlgmr.msra.gmra.mrb[0].mxu1 %v205_v51  ;;  %5426 = vmatprep.subr.bf16.mxu0 %v5516_v52  ;;  %v795_v51 = vld [vmem:[#allocation7 + $0xe8] sm:$0xff] }
  0xc7   :  { %657 = vmatprep.mubr.bf16.mxu1 %v229_v13  ;;  %1217 = vmatpush1.bf16.msra.mxu1 %v4837_v25  ;;  %v4863_v53 = vcombine.low %v791_v49, %v795_v51  ;;  %v4887_v13 = vcombine.low %v815_v9, %v819_v11  ;;  %v6133_v25 = vld [vmem:[#allocation7 + $0x18] sm:$0xff] }
  0xc8   :  { %1218 = vmatprep.subr.bf16.mxu1 %v4846_v32  ;;  %v4794_v32 = vld [vmem:[#allocation5] ss:$0 sm:$0xff] }
  0xc9   :  { %5427 = vmatpush3.bf16.msra.mxu0 %v5516_v52  ;;  %v4861_v52 = vcombine.low %v790_v47, %v794_v48 }
  0xca   :  { %5428 = vmatprep.subr.bf16.mxu0 %v5517_v60 }
  0xcb   :  { %1219 = vmatpush1.bf16.msra.mxu1 %v4845_v36 }
  0xcc   :  { %609 = vmatmul.mubr.bf16.gmra.mrb[4].mxu0 %v5520_v54  ;;  %1220 = vmatprep.subr.bf16.mxu1 %v4854_v42  ;;  %v4864_v54 = vcombine.high %v791_v49, %v795_v51 }
  0xcd   :  { %5429 = vmatpush3.bf16.msra.mxu0 %v5517_v60  ;;  %5440 = vmatprep.mubr.bf16.mxu0 %v235_v15  ;;  %v4869_v60 = vcombine.low %v798_v55, %v802_v56  ;;  %v822_v15 = vld [vmem:[#allocation7 + $0x1c0] sm:$0xff] }
  0xce   :  { %5430 = vmatprep.subr.bf16.mxu0 %v5518_v7  ;;  %658 = vmatmul.mubr.bf16.gmra.mrb[4].mxu1 %v208_v14  ;;  %v4888_v14 = vcombine.high %v815_v9, %v819_v11 }
  0xcf   :  { %1248 = vmatprep.mubr.bf16.mxu1 %v5898_v35  ;;  %1221 = vmatpush1.bf16.msra.mxu1 %v4853_v44 }
  0xd0   :  { %1222 = vmatprep.subr.bf16.mxu1 %v4862_v50 }
  0xd1   :  { %5431 = vmatpush3.bf16.msra.mxu0 %v5518_v7  ;;  %v814_v7 = vld [vmem:[#allocation7 + $0x180] sm:$0xff] }
  0xd2   :  { %5432 = vmatprep.subr.bf16.mxu0 %v5519_v12  ;;  %v4886_v10 = vcombine.high %v814_v7, %v818_v8 }
  0xd3   :  { %1223 = vmatpush1.bf16.msra.mxu1 %v4861_v52 }
  0xd4   :  { %1224 = vmatprep.subr.bf16.mxu1 %v4870_v58  ;;  %v719_v58 = vlaneseq }
  0xd5   :  { %5433 = vmatpush3.bf16.msra.mxu0 %v5519_v12  ;;  %v4885_v12 = vcombine.low %v814_v7, %v818_v8 }
  0xd6   :  { %5434 = vmatprep.subr.bf16.mxu0 %v5522_v16  ;;  %v723_v1 = vand.u32 127, %v719_v58 }
  0xd7   :  { %1225 = vmatpush1.bf16.msra.mxu1 %v4869_v60 }
  0xd8   :  { %1226 = vmatprep.subr.bf16.mxu1 %v4878_v2  ;;  %vm725_vm4 = vcmp.lt.s32.totalorder %v723_v1, 8  ;;  %vm728_vm5 = vcmp.ge.s32.totalorder %v723_v1, 8  ;;  %vm729_vm6 = vcmp.lt.s32.totalorder %v723_v1, 16  ;;  %vm732_vm8 = vcmp.ge.s32.totalorder %v723_v1, 16 }
  0xd9   :  { %5435 = vmatpush3.bf16.msra.mxu0 %v5522_v16  ;;  %v826_v16 = vld [vmem:[#allocation7 + $0x1e0] sm:$0xff]  ;;  %v727_v3 = vsel %vm725_vm4, 14, %v5898_v35  ;;  %vm730_vm7 = vmand %vm728_vm5, %vm729_vm6  ;;  %vm733_vm9 = vcmp.lt.s32.totalorder %v723_v1, 24 }
  0xda   :  { %5436 = vmatprep.subr.bf16.mxu0 %v5523_v17  ;;  %v4893_v20 = vcombine.low %v822_v15, %v826_v16  ;;  %vm734_vm10 = vmand %vm732_vm8, %vm733_vm9 }
  0xdb   :  { %1227 = vmatpush1.bf16.msra.mxu1 %v4877_v4  ;;  %v6146_v4 = vshrl.u32 %v719_v58, 7 }
  0xdc   :  { %1228 = vmatprep.subr.bf16.mxu1 %v4886_v10 }
  0xdd   :  { %5437 = vmatpush3.bf16.msra.mxu0 %v5523_v17  ;;  %v823_v17 = vld [vmem:[#allocation7 + $0x1c8] sm:$0xff] }
  0xde   :  { %5438 = vmatprep.subr.bf16.mxu0 %v5524_v18  ;;  %v4896_v22 = vcombine.high %v823_v17, %v827_v19 }
  0xdf   :  { %1229 = vmatpush1.bf16.msra.mxu1 %v4885_v12 }
  0xe1   :  { %5439 = vmatpush3.bf16.msra.mxu0 %v5524_v18  ;;  %v4894_v18 = vcombine.high %v822_v15, %v826_v16  ;;  %v5899_v16 = vmov 0.0  }
  0xe2   :  { %1256 = vmatprep.subr.bf16.mxu0 %v4840_v29 }
  0xe3   :  { %1230 = vmatprep.subr.bf16.mxu1 %v4894_v18 }
  0xe4   :  { %5441 = vmatmul.mubr.bf16.vlgmr.msra.gmra.mrb[8].mxu0 %v238_v21  ;;  %v4895_v21 = vcombine.low %v823_v17, %v827_v19  ;;  %1231 = vmatpush1.bf16.msra.mxu1 %v4893_v20 }
  0xe5   :  { %1257 = vmatpush1.bf16.msra.mxu0 %v4839_v28  ;;  %1288 = vmatprep.mubr.bf16.mxu0 %v5898_v35  ;;  %v6139_v28 = vld [vmem:[#allocation7 + $0x38] sm:$0xff] }
  0xe6   :  { %1258 = vmatprep.subr.bf16.mxu0 %v4848_v38  ;;  %v4843_v29 = vcombine.low %v6133_v25, %v6139_v28  ;;  %v4844_v30 = vcombine.high %v6133_v25, %v6139_v28  ;;  %1297 = vmatprep.subr.bf16.mxu1 %v4842_v27  ;;  %v800_v28 = vld [vmem:[#allocation7 + $0x110] sm:$0xff] }
  0xe9   :  { %1259 = vmatpush1.bf16.msra.mxu0 %v4847_v37 }
  0xea   :  { %1260 = vmatprep.subr.bf16.mxu0 %v4856_v46 }
  0xed   :  { %1261 = vmatpush1.bf16.msra.mxu0 %v4855_v45 }
  0xee   :  { %1262 = vmatprep.subr.bf16.mxu0 %v4864_v54 }
  0xf1   :  { %1263 = vmatpush1.bf16.msra.mxu0 %v4863_v53 }
  0xf2   :  { %1264 = vmatprep.subr.bf16.mxu0 %v4872_v62 }
  0xf5   :  { %1265 = vmatpush1.bf16.msra.mxu0 %v4871_v61 }
  0xf6   :  { %1266 = vmatprep.subr.bf16.mxu0 %v4880_v6  ;;  %v721_v6 = vadd.s32 8, %v6146_v4 }
  0xf9   :  { %1267 = vmatpush1.bf16.msra.mxu0 %v4879_v5  ;;  %v731_v5 = vsel %vm730_vm7, 13, %v727_v3 }
  0xfa   :  { %1268 = vmatprep.subr.bf16.mxu0 %v4888_v14  ;;  %v735_v7 = vsel %vm734_vm10, 12, %v731_v5  ;;  %v792_v5 = vld [vmem:[#allocation7 + $0xd0] sm:$0xff] }
  0xfb   :  { %vm736_vm11 = vcmp.lt.s32.totalorder %v6146_v4, %v735_v7  ;;  %vm737_vm12 = vcmp.lt.s32.totalorder %v721_v6, %v735_v7  ;;  %v796_v6 = vld [vmem:[#allocation7 + $0xf0] sm:$0xff]  ;;  %v793_v7 = vld [vmem:[#allocation7 + $0xd8] sm:$0xff] }
  0xfc   :  { %v4835_v17 = vsel %vm736_vm11, 1.0, %v5899_v16  ;;  %v4836_v19 = vsel %vm737_vm12, 1.0, %v5899_v16  ;;  %v4866_v25 = vcombine.high %v792_v5, %v796_v6 }
  0xfd   :  { %1269 = vmatpush1.bf16.msra.mxu0 %v4887_v13 }
  0xfe   :  { %1270 = vmatprep.subr.bf16.mxu0 %v4896_v22 }
 0x101   :  { %1271 = vmatpush1.bf16.msra.mxu0 %v4895_v21 }
 0x102   :  { %1337 = vmatprep.subr.bf16.mxu0 %v4844_v30 }
 0x197   :  { %v5343_v31 = vpop.f32.mrb[0].mxu0 }
 0x198   :  { %v5344_v33 = vpop.f32.mrb[1].mxu0 }
 0x199   :  { %v5371_v34 = vpop.f32.mrb[0].mxu1  ;;  %v5345_v36 = vadd.f32 %v5344_v33, %v5343_v31  ;;  %v5346_v37 = vpop.f32.mrb[2].mxu0 }
 0x19a   :  { %v5372_v38 = vpop.f32.mrb[1].mxu1  ;;  %v5347_v39 = vpop.f32.mrb[3].mxu0 }
 0x19b   :  { %v5373_v40 = vadd.f32 %v5372_v38, %v5371_v34  ;;  %v5374_v41 = vpop.f32.mrb[2].mxu1  ;;  %v603_v42 = vadd.f32 %v5345_v36, %v4794_v32  ;;  %v5348_v43 = vadd.f32 %v5347_v39, %v5346_v37 }
 0x19c   :  { %v5375_v44 = vpop.f32.mrb[3].mxu1 }
 0x19d   :  { %v5376_v45 = vadd.f32 %v5375_v44, %v5374_v41  ;;  %v606_v46 = vadd.f32 %v5348_v43, %v4794_v32  ;;  %v652_v47 = vadd.f32 %v5373_v40, %v603_v42 }
 0x19f   :  { %v655_v48 = vadd.f32 %v5376_v45, %v606_v46  ;;  %v5349_v49 = vpop.f32.mrb[4].mxu0 }
 0x1a0   :  { %v5350_v50 = vpop.f32.mrb[5].mxu0 }
 0x1a1   :  { %v5377_v51 = vpop.f32.mrb[4].mxu1  ;;  %v5351_v52 = vadd.f32 %v5350_v50, %v5349_v49  ;;  %v5352_v53 = vpop.f32.mrb[6].mxu0 }
 0x1a2   :  { %v5378_v54 = vpop.f32.mrb[5].mxu1  ;;  %v5353_v55 = vpop.f32.mrb[7].mxu0 }
 0x1a3   :  { %v5379_v56 = vadd.f32 %v5378_v54, %v5377_v51  ;;  %v5380_v57 = vpop.f32.mrb[6].mxu1  ;;  %v611_v59 = vadd.f32 %v5351_v52, %v4794_v32  ;;  %v5354_v60 = vadd.f32 %v5353_v55, %v5352_v53  ;;  %v776_v51 = vld [vmem:[#allocation7 + $0x50] sm:$0xff]  ;;  %v777_v54 = vld [vmem:[#allocation7 + $0x58] sm:$0xff] }
 0x1a4   :  { %v5381_v61 = vpop.f32.mrb[7].mxu1  ;;  %v780_v53 = vld [vmem:[#allocation7 + $0x70] sm:$0xff]  ;;  %v781_v55 = vld [vmem:[#allocation7 + $0x78] sm:$0xff] }
 0x1a5   :  { %v5382_v62 = vadd.f32 %v5381_v61, %v5380_v57  ;;  %v614_v63 = vadd.f32 %v5354_v60, %v4794_v32  ;;  %v660_v0 = vadd.f32 %v5379_v56, %v611_v59  ;;  %v4850_v58 = vcombine.high %v776_v51, %v780_v53  ;;  %v784_v60 = vld [vmem:[#allocation7 + $0x90] sm:$0xff] }
 0x1a6   :  { %v4852_v59 = vcombine.high %v777_v54, %v781_v55  ;;  %v788_v61 = vld [vmem:[#allocation7 + $0xb0] sm:$0xff]  ;;  %v4851_v1 = vcombine.low %v777_v54, %v781_v55 }
 0x1a7   :  { %v663_v2 = vadd.f32 %v5382_v62, %v614_v63  ;;  %v785_v62 = vld [vmem:[#allocation7 + $0x98] sm:$0xff]  ;;  %v4857_v23 = vcombine.low %v784_v60, %v788_v61 }
 0x1a8   :  { %v789_v63 = vld [vmem:[#allocation7 + $0xb8] sm:$0xff] }
 0x1a9   :  { %v4860_v3 = vcombine.high %v785_v62, %v789_v63  ;;  %v4859_v24 = vcombine.low %v785_v62, %v789_v63 }
 0x1b7   :  { %v5442_v8 = vpop.f32.mrb[8].mxu0 }
 0x1b8   :  { %v709_v9 = vadd.f32 %v5442_v8, %v660_v0  ;;  %v700_v10 = vpop.f32.mrb[9].mxu0  ;;  %v4849_v0 = vcombine.low %v776_v51, %v780_v53  ;;  %v797_v8 = vld [vmem:[#allocation7 + $0xf8] sm:$0xff] }
 0x1b9   :  { %v701_v11 = vadd.f32 %v700_v10, %v652_v47  ;;  %v5443_v12 = vpop.f32.mrb[10].mxu0  ;;  %v805_v10 = vld [vmem:[#allocation7 + $0x138] sm:$0xff] }
 0x1ba   :  { %v717_v13 = vmax.f32 %v709_v9, 0.0  ;;  %v712_v14 = vadd.f32 %v5443_v12, %v663_v2  ;;  %v703_v15 = vpop.f32.mrb[11].mxu0  ;;  %v4858_v2 = vcombine.high %v784_v60, %v788_v61  ;;  %v801_v9 = vld [vmem:[#allocation7 + $0x118] sm:$0xff]  ;;  %v4867_v12 = vcombine.low %v793_v7, %v797_v8  ;;  %v1425_v61 = vld [vmem:[#allocation8 + $0x68] sm:$0xff] }
 0x1bb   :  { %v715_v18 = vmax.f32 %v701_v11, 0.0  ;;  %v704_v20 = vadd.f32 %v703_v15, %v655_v48  ;;  %v4865_v11 = vcombine.low %v792_v5, %v796_v6  ;;  %v812_v15 = vld [vmem:[#allocation7 + $0x170] sm:$0xff]  ;;  %v1433_v5 = vld [vmem:[#allocation8 + $0xa8] sm:$0xff] }
 0x1bc   :  { %v718_v21 = vmax.f32 %v712_v14, 0.0  ;;  %v744_v27 = vmul.f32 %v4835_v17, %v717_v13  ;;  %v808_v14 = vld [vmem:[#allocation7 + $0x150] sm:$0xff] }
 0x1bd   :  { %v716_v22 = vmax.f32 %v704_v20, 0.0  ;;  %v742_v31 = vmul.f32 %v4835_v17, %v715_v18  ;;  %v809_v17 = vld [vmem:[#allocation7 + $0x158] sm:$0xff]  ;;  %v4875_v20 = vcombine.low %v801_v9, %v805_v10 }
 0x1be   :  { %v745_v30 = vmul.f32 %v4836_v19, %v718_v21  ;;  %v813_v18 = vld [vmem:[#allocation7 + $0x178] sm:$0xff]  ;;  %v4882_v21 = vcombine.high %v808_v14, %v812_v15 }
 0x1bf   :  { %v743_v32 = vmul.f32 %v4836_v19, %v716_v22  ;;  %v4884_v22 = vcombine.high %v809_v17, %v813_v18 }
 0x1c0   :  { %v753_v33 = vmax.f32 %v744_v27, %v745_v30  ;;  %v816_v27 = vld [vmem:[#allocation7 + $0x190] sm:$0xff] }
 0x1c1   :  { %v746_v34 = vmax.f32 %v742_v31, %v743_v32  ;;  %v820_v30 = vld [vmem:[#allocation7 + $0x1b0] sm:$0xff]  ;;  %v817_v31 = vld [vmem:[#allocation7 + $0x198] sm:$0xff] }
 0x1c2   :  { %v754_v36 = vrot.slane %v753_v33, 4  ;;  %v821_v32 = vld [vmem:[#allocation7 + $0x1b8] sm:$0xff] }
 0x1c3   :  { %v747_v37 = vrot.slane %v746_v34, 4 }
 0x1c4   :  { %v755_v38 = vmax.f32 %v753_v33, %v754_v36  ;;  %v4881_v33 = vcombine.low %v808_v14, %v812_v15  ;;  %v4890_v36 = vcombine.high %v816_v27, %v820_v30  ;;  %v1449_v14 = vld [vmem:[#allocation8 + $0x128] sm:$0xff] }
 0x1c5   :  { %v748_v39 = vmax.f32 %v746_v34, %v747_v37  ;;  %v4883_v34 = vcombine.low %v809_v17, %v813_v18  ;;  %v4892_v37 = vcombine.high %v817_v31, %v821_v32 }
 0x1c6   :  { %v756_v40 = vrot.slane %v755_v38, 2 }
 0x1c7   :  { %v749_v41 = vrot.slane %v748_v39, 2 }
 0x1c8   :  { %v757_v42 = vmax.f32 %v755_v38, %v756_v40  ;;  %v824_v38 = vld [vmem:[#allocation7 + $0x1d0] sm:$0xff]  ;;  %v825_v40 = vld [vmem:[#allocation7 + $0x1d8] sm:$0xff] }
 0x1c9   :  { %v750_v43 = vmax.f32 %v748_v39, %v749_v41  ;;  %v828_v39 = vld [vmem:[#allocation7 + $0x1f0] sm:$0xff]  ;;  %v829_v41 = vld [vmem:[#allocation7 + $0x1f8] sm:$0xff] }
 0x1ca   :  { %v758_v44 = vrot.slane %v757_v42, 1 }
 0x1cb   :  { %v751_v45 = vrot.slane %v750_v43, 1 }
 0x1cc   :  { %v759_v46 = vmax.f32 %v757_v42, %v758_v44  ;;  %v4889_v42 = vcombine.low %v816_v27, %v820_v30  ;;  %v4898_v44 = vcombine.high %v824_v38, %v828_v39  ;;  %v1457_v27 = vld [vmem:[#allocation8 + $0x168] sm:$0xff] }
 0x1cd   :  { %v752_v47 = vmax.f32 %v750_v43, %v751_v45  ;;  %v4891_v43 = vcombine.low %v817_v31, %v821_v32  ;;  %v4900_v45 = vcombine.high %v825_v40, %v829_v41 }
 0x1ce   :  { %v765_v48 = vpack.c.bf16 %v759_v46, %v759_v46  ;;  %v4897_v46 = vcombine.low %v824_v38, %v828_v39  ;;  %v1465_v38 = vld [vmem:[#allocation8 + $0x1a8] sm:$0xff] }
 0x1cf   :  { %v764_v49 = vpack.c.bf16 %v752_v47, %v752_v47  ;;  %v4899_v47 = vcombine.low %v825_v40, %v829_v41 }
 0x1d0   :  { %v891_v50 = vunpack.c.l.b16 %v765_v48  ;;  %v1412_v48 = vld [vmem:[#allocation8] sm:$0xff] }
 0x1d1   :  { %v890_v52 = vunpack.c.l.b16 %v764_v49  ;;  %v1416_v49 = vld [vmem:[#allocation8 + $0x20] sm:$0xff] }
 0x1d2   :  { %v4906_v51 = vcombine.high %v1412_v48, %v1416_v49  ;;  %v4905_v53 = vcombine.low %v1412_v48, %v1416_v49 }
 0x1d3   :  { %v893_v56 = vsel %vm892_vm13, %v891_v50, %v890_v52  ;;  %v1413_v50 = vld [vmem:[#allocation8 + $0x8] sm:$0xff] }
 0x1d4   :  { %v6152_v57 = vpack.c.b16 %v893_v56, %v893_v56  ;;  %v1417_v52 = vld [vmem:[#allocation8 + $0x28] sm:$0xff]  ;;  %v1420_v56 = vld [vmem:[#allocation8 + $0x40] sm:$0xff] }
 0x1d5   :  { %v4907_v54 = vcombine.low %v1413_v50, %v1417_v52  ;;  %v4908_v55 = vcombine.high %v1413_v50, %v1417_v52  ;;  %v1476_v50 = vld [vmem:[#allocation8 + $0x200] sm:$0xff]  ;;  %v1477_v52 = vld [vmem:[#allocation8 + $0x208] sm:$0xff] }
 0x1d6   :  { %1249 = vmatmul.mubr.bf16.vlgmr.msra.gmra.mrb[8].mxu1 %v6152_v57  ;;  %1289 = vmatmul.mubr.bf16.vlgmr.msra.gmra.mrb[12].mxu0 %v6152_v57 }
 0x1d7   :  { %1298 = vmatpush1.bf16.msra.mxu1 %v4841_v26  ;;  %1338 = vmatpush1.bf16.msra.mxu0 %v4843_v29  ;;  %v4868_v26 = vcombine.high %v793_v7, %v797_v8  ;;  %v804_v29 = vld [vmem:[#allocation7 + $0x130] sm:$0xff] }
 0x1d8   :  { %1299 = vmatprep.subr.bf16.mxu1 %v4850_v58  ;;  %1339 = vmatprep.subr.bf16.mxu0 %v4852_v59  ;;  %v4874_v13 = vcombine.high %v800_v28, %v804_v29  ;;  %v4873_v19 = vcombine.low %v800_v28, %v804_v29  ;;  %v1424_v58 = vld [vmem:[#allocation8 + $0x60] sm:$0xff]  ;;  %v1421_v59 = vld [vmem:[#allocation8 + $0x48] sm:$0xff] }
 0x1d9   :  { %1329 = vmatprep.mubr.bf16.mxu1 %v5898_v35  ;;  %1369 = vmatprep.mubr.bf16.mxu0 %v5898_v35  ;;  %v4876_v35 = vcombine.high %v801_v9, %v805_v10  ;;  %v4914_v60 = vcombine.high %v1420_v56, %v1424_v58  ;;  %v4913_v62 = vcombine.low %v1420_v56, %v1424_v58  ;;  %v1441_v28 = vld [vmem:[#allocation8 + $0xe8] sm:$0xff] }
 0x1da   :  { %v4915_v63 = vcombine.low %v1421_v59, %v1425_v61 }
 0x1db   :  { %1300 = vmatpush1.bf16.msra.mxu1 %v4849_v0  ;;  %1340 = vmatpush1.bf16.msra.mxu0 %v4851_v1  ;;  %v1428_v0 = vld [vmem:[#allocation8 + $0x80] sm:$0xff] }
 0x1dc   :  { %1301 = vmatprep.subr.bf16.mxu1 %v4858_v2  ;;  %1341 = vmatprep.subr.bf16.mxu0 %v4860_v3  ;;  %v1432_v1 = vld [vmem:[#allocation8 + $0xa0] sm:$0xff]  ;;  %v1429_v2 = vld [vmem:[#allocation8 + $0x88] sm:$0xff] }
 0x1dd   :  { %v4922_v3 = vcombine.high %v1428_v0, %v1432_v1  ;;  %v4921_v6 = vcombine.low %v1428_v0, %v1432_v1  ;;  %v4923_v7 = vcombine.low %v1429_v2, %v1433_v5  ;;  %v4924_v8 = vcombine.high %v1429_v2, %v1433_v5  ;;  %v1492_v2 = vld [vmem:[#allocation8 + $0x280] sm:$0xff]  ;;  %v1493_v5 = vld [vmem:[#allocation8 + $0x288] sm:$0xff] }
 0x1df   :  { %1302 = vmatpush1.bf16.msra.mxu1 %v4857_v23  ;;  %1342 = vmatpush1.bf16.msra.mxu0 %v4859_v24  ;;  %v1436_v23 = vld [vmem:[#allocation8 + $0xc0] sm:$0xff] }
 0x1e0   :  { %1303 = vmatprep.subr.bf16.mxu1 %v4866_v25  ;;  %1343 = vmatprep.subr.bf16.mxu0 %v4868_v26  ;;  %v1440_v24 = vld [vmem:[#allocation8 + $0xe0] sm:$0xff]  ;;  %v1437_v25 = vld [vmem:[#allocation8 + $0xc8] sm:$0xff] }
 0x1e1   :  { %v4930_v26 = vcombine.high %v1436_v23, %v1440_v24  ;;  %v4929_v29 = vcombine.low %v1436_v23, %v1440_v24  ;;  %v4931_v9 = vcombine.low %v1437_v25, %v1441_v28  ;;  %v4932_v10 = vcombine.high %v1437_v25, %v1441_v28  ;;  %v1500_v25 = vld [vmem:[#allocation8 + $0x2c0] sm:$0xff]  ;;  %v1501_v28 = vld [vmem:[#allocation8 + $0x2c8] sm:$0xff] }
 0x1e3   :  { %1304 = vmatpush1.bf16.msra.mxu1 %v4865_v11  ;;  %1344 = vmatpush1.bf16.msra.mxu0 %v4867_v12  ;;  %v1444_v11 = vld [vmem:[#allocation8 + $0x100] sm:$0xff] }
 0x1e4   :  { %1305 = vmatprep.subr.bf16.mxu1 %v4874_v13  ;;  %1345 = vmatprep.subr.bf16.mxu0 %v4876_v35  ;;  %v1448_v12 = vld [vmem:[#allocation8 + $0x120] sm:$0xff]  ;;  %v1445_v13 = vld [vmem:[#allocation8 + $0x108] sm:$0xff] }
 0x1e5   :  { %v4938_v35 = vcombine.high %v1444_v11, %v1448_v12  ;;  %v4937_v15 = vcombine.low %v1444_v11, %v1448_v12  ;;  %v4939_v17 = vcombine.low %v1445_v13, %v1449_v14  ;;  %v4940_v18 = vcombine.high %v1445_v13, %v1449_v14  ;;  %v1508_v13 = vld [vmem:[#allocation8 + $0x300] sm:$0xff]  ;;  %v1509_v14 = vld [vmem:[#allocation8 + $0x308] sm:$0xff] }
 0x1e7   :  { %1306 = vmatpush1.bf16.msra.mxu1 %v4873_v19  ;;  %1346 = vmatpush1.bf16.msra.mxu0 %v4875_v20  ;;  %v1452_v19 = vld [vmem:[#allocation8 + $0x140] sm:$0xff] }
 0x1e8   :  { %1307 = vmatprep.subr.bf16.mxu1 %v4882_v21  ;;  %1347 = vmatprep.subr.bf16.mxu0 %v4884_v22  ;;  %v1456_v20 = vld [vmem:[#allocation8 + $0x160] sm:$0xff]  ;;  %v1453_v21 = vld [vmem:[#allocation8 + $0x148] sm:$0xff] }
 0x1e9   :  { %v4946_v22 = vcombine.high %v1452_v19, %v1456_v20  ;;  %v4945_v30 = vcombine.low %v1452_v19, %v1456_v20  ;;  %v4947_v31 = vcombine.low %v1453_v21, %v1457_v27  ;;  %v4948_v32 = vcombine.high %v1453_v21, %v1457_v27  ;;  %v1516_v21 = vld [vmem:[#allocation8 + $0x340] sm:$0xff]  ;;  %v1517_v27 = vld [vmem:[#allocation8 + $0x348] sm:$0xff] }
 0x1eb   :  { %1308 = vmatpush1.bf16.msra.mxu1 %v4881_v33  ;;  %1348 = vmatpush1.bf16.msra.mxu0 %v4883_v34  ;;  %v1460_v33 = vld [vmem:[#allocation8 + $0x180] sm:$0xff] }
 0x1ec   :  { %1309 = vmatprep.subr.bf16.mxu1 %v4890_v36  ;;  %1349 = vmatprep.subr.bf16.mxu0 %v4892_v37  ;;  %v1464_v34 = vld [vmem:[#allocation8 + $0x1a0] sm:$0xff]  ;;  %v1461_v36 = vld [vmem:[#allocation8 + $0x188] sm:$0xff] }
 0x1ed   :  { %v4954_v37 = vcombine.high %v1460_v33, %v1464_v34  ;;  %v4953_v39 = vcombine.low %v1460_v33, %v1464_v34  ;;  %v4955_v40 = vcombine.low %v1461_v36, %v1465_v38  ;;  %v4956_v41 = vcombine.high %v1461_v36, %v1465_v38  ;;  %v1524_v33 = vld [vmem:[#allocation8 + $0x380] sm:$0xff] }
 0x1ee   :  { %v1528_v34 = vld [vmem:[#allocation8 + $0x3a0] sm:$0xff] }
 0x1ef   :  { %1310 = vmatpush1.bf16.msra.mxu1 %v4889_v42  ;;  %1350 = vmatpush1.bf16.msra.mxu0 %v4891_v43  ;;  %v1468_v42 = vld [vmem:[#allocation8 + $0x1c0] sm:$0xff]  ;;  %v5018_v38 = vcombine.high %v1524_v33, %v1528_v34 }
 0x1f0   :  { %1311 = vmatprep.subr.bf16.mxu1 %v4898_v44  ;;  %1351 = vmatprep.subr.bf16.mxu0 %v4900_v45  ;;  %v1472_v43 = vld [vmem:[#allocation8 + $0x1e0] sm:$0xff]  ;;  %v1469_v44 = vld [vmem:[#allocation8 + $0x1c8] sm:$0xff] }
 0x1f1   :  { %v4962_v45 = vcombine.high %v1468_v42, %v1472_v43 }
 0x1f3   :  { %1312 = vmatpush1.bf16.msra.mxu1 %v4897_v46  ;;  %1352 = vmatpush1.bf16.msra.mxu0 %v4899_v47  ;;  %v1473_v46 = vld [vmem:[#allocation8 + $0x1e8] sm:$0xff]  ;;  %v4961_v47 = vcombine.low %v1468_v42, %v1472_v43  ;;  %v1536_v43 = vld [vmem:[#allocation8 + $0x3e0] sm:$0xff] }
 0x1f4   :  { %2234 = vmatprep.subr.bf16.mxu1 %v4906_v51  ;;  %2274 = vmatprep.subr.bf16.mxu0 %v4908_v55  ;;  %v4963_v48 = vcombine.low %v1469_v44, %v1473_v46  ;;  %v4964_v49 = vcombine.high %v1469_v44, %v1473_v46  ;;  %v1480_v51 = vld [vmem:[#allocation8 + $0x220] sm:$0xff]  ;;  %v1533_v44 = vld [vmem:[#allocation8 + $0x3c8] sm:$0xff]  ;;  %v5017_v46 = vcombine.low %v1524_v33, %v1528_v34 }
 0x1f5   :  { %v4969_v55 = vcombine.low %v1476_v50, %v1480_v51 }
 0x1f6   :  { %1330 = vmatmul.mubr.bf16.vlgmr.msra.gmra.mrb[12].mxu1 %v6152_v57  ;;  %1370 = vmatmul.mubr.bf16.vlgmr.msra.gmra.mrb[16].mxu0 %v6152_v57  ;;  %v4916_v57 = vcombine.high %v1421_v59, %v1425_v61  ;;  %v1484_v59 = vld [vmem:[#allocation8 + $0x240] sm:$0xff]  ;;  %v1485_v61 = vld [vmem:[#allocation8 + $0x248] sm:$0xff] }
 0x1f7   :  { %2235 = vmatpush1.bf16.msra.mxu1 %v4905_v53  ;;  %2275 = vmatpush1.bf16.msra.mxu0 %v4907_v54  ;;  %v4970_v53 = vcombine.high %v1476_v50, %v1480_v51  ;;  %v1481_v54 = vld [vmem:[#allocation8 + $0x228] sm:$0xff] }
 0x1f8   :  { %2236 = vmatprep.subr.bf16.mxu1 %v4914_v60  ;;  %2276 = vmatprep.subr.bf16.mxu0 %v4916_v57  ;;  %v4971_v56 = vcombine.low %v1477_v52, %v1481_v54  ;;  %v4972_v58 = vcombine.high %v1477_v52, %v1481_v54  ;;  %v1488_v60 = vld [vmem:[#allocation8 + $0x260] sm:$0xff]  ;;  %v6166_v52 = vld [vmem:[#allocation8 + $0x10] sm:$0xff]  ;;  %v6170_v54 = vld [vmem:[#allocation8 + $0x18] sm:$0xff] }
 0x1f9   :  { %v4977_v57 = vcombine.low %v1484_v59, %v1488_v60 }
 0x1fb   :  { %2237 = vmatpush1.bf16.msra.mxu1 %v4913_v62  ;;  %2277 = vmatpush1.bf16.msra.mxu0 %v4915_v63  ;;  %v4978_v62 = vcombine.high %v1484_v59, %v1488_v60  ;;  %v1489_v63 = vld [vmem:[#allocation8 + $0x268] sm:$0xff] }
 0x1fc   :  { %2238 = vmatprep.subr.bf16.mxu1 %v4922_v3  ;;  %2278 = vmatprep.subr.bf16.mxu0 %v4924_v8  ;;  %v4979_v0 = vcombine.low %v1485_v61, %v1489_v63  ;;  %v4980_v1 = vcombine.high %v1485_v61, %v1489_v63  ;;  %v1496_v3 = vld [vmem:[#allocation8 + $0x2a0] sm:$0xff]  ;;  %v836_v61 = vsub.s32 0, %v6146_v4 }
 0x1fd   :  { %v4985_v8 = vcombine.low %v1492_v2, %v1496_v3 }
 0x1ff   :  { %2239 = vmatpush1.bf16.msra.mxu1 %v4921_v6  ;;  %2279 = vmatpush1.bf16.msra.mxu0 %v4923_v7  ;;  %v4986_v6 = vcombine.high %v1492_v2, %v1496_v3  ;;  %v1497_v7 = vld [vmem:[#allocation8 + $0x2a8] sm:$0xff] }
 0x200   :  { %2240 = vmatprep.subr.bf16.mxu1 %v4930_v26  ;;  %2280 = vmatprep.subr.bf16.mxu0 %v4932_v10  ;;  %v4987_v23 = vcombine.low %v1493_v5, %v1497_v7  ;;  %v4988_v24 = vcombine.high %v1493_v5, %v1497_v7  ;;  %v1504_v26 = vld [vmem:[#allocation8 + $0x2e0] sm:$0xff] }
 0x201   :  { %v4993_v10 = vcombine.low %v1500_v25, %v1504_v26 }
 0x203   :  { %2241 = vmatpush1.bf16.msra.mxu1 %v4929_v29  ;;  %2281 = vmatpush1.bf16.msra.mxu0 %v4931_v9  ;;  %v4994_v29 = vcombine.high %v1500_v25, %v1504_v26  ;;  %v1505_v9 = vld [vmem:[#allocation8 + $0x2e8] sm:$0xff] }
 0x204   :  { %2242 = vmatprep.subr.bf16.mxu1 %v4938_v35  ;;  %2282 = vmatprep.subr.bf16.mxu0 %v4940_v18  ;;  %v4995_v11 = vcombine.low %v1501_v28, %v1505_v9  ;;  %v4996_v12 = vcombine.high %v1501_v28, %v1505_v9  ;;  %v1512_v35 = vld [vmem:[#allocation8 + $0x320] sm:$0xff] }
 0x205   :  { %v5001_v18 = vcombine.low %v1508_v13, %v1512_v35 }
 0x207   :  { %2243 = vmatpush1.bf16.msra.mxu1 %v4937_v15  ;;  %2283 = vmatpush1.bf16.msra.mxu0 %v4939_v17  ;;  %v5002_v15 = vcombine.high %v1508_v13, %v1512_v35  ;;  %v1513_v17 = vld [vmem:[#allocation8 + $0x328] sm:$0xff] }
 0x208   :  { %2244 = vmatprep.subr.bf16.mxu1 %v4946_v22  ;;  %2284 = vmatprep.subr.bf16.mxu0 %v4948_v32  ;;  %v5003_v19 = vcombine.low %v1509_v14, %v1513_v17  ;;  %v5004_v20 = vcombine.high %v1509_v14, %v1513_v17  ;;  %v1520_v22 = vld [vmem:[#allocation8 + $0x360] sm:$0xff]  ;;  %v1521_v32 = vld [vmem:[#allocation8 + $0x368] sm:$0xff] }
 0x209   :  { %v5011_v36 = vcombine.low %v1517_v27, %v1521_v32 }
 0x20b   :  { %2245 = vmatpush1.bf16.msra.mxu1 %v4945_v30  ;;  %2285 = vmatpush1.bf16.msra.mxu0 %v4947_v31  ;;  %v5009_v30 = vcombine.low %v1516_v21, %v1520_v22  ;;  %v5010_v31 = vcombine.high %v1516_v21, %v1520_v22 }
 0x20c   :  { %2246 = vmatprep.subr.bf16.mxu1 %v4954_v37  ;;  %2286 = vmatprep.subr.bf16.mxu0 %v4956_v41  ;;  %v5012_v37 = vcombine.high %v1517_v27, %v1521_v32  ;;  %v1532_v41 = vld [vmem:[#allocation8 + $0x3c0] sm:$0xff] }
 0x20d   :  { %v5025_v50 = vcombine.low %v1532_v41, %v1536_v43 }
 0x20f   :  { %2247 = vmatpush1.bf16.msra.mxu1 %v4953_v39  ;;  %2287 = vmatpush1.bf16.msra.mxu0 %v4955_v40  ;;  %v1525_v39 = vld [vmem:[#allocation8 + $0x388] sm:$0xff] }
 0x210   :  { %2248 = vmatprep.subr.bf16.mxu1 %v4962_v45  ;;  %2288 = vmatprep.subr.bf16.mxu0 %v4964_v49  ;;  %v1529_v40 = vld [vmem:[#allocation8 + $0x3a8] sm:$0xff] }
 0x211   :  { %v5020_v42 = vcombine.high %v1525_v39, %v1529_v40  ;;  %v1537_v45 = vld [vmem:[#allocation8 + $0x3e8] sm:$0xff] }
 0x212   :  { %v5028_v49 = vcombine.high %v1533_v44, %v1537_v45  ;;  %v5027_v51 = vcombine.low %v1533_v44, %v1537_v45 }
 0x213   :  { %2249 = vmatpush1.bf16.msra.mxu1 %v4961_v47  ;;  %2289 = vmatpush1.bf16.msra.mxu0 %v4963_v48  ;;  %v5019_v47 = vcombine.low %v1525_v39, %v1529_v40  ;;  %v5026_v48 = vcombine.high %v1532_v41, %v1536_v43 }
 0x214   :  { %2250 = vmatprep.subr.bf16.mxu1 %v4970_v53  ;;  %2290 = vmatprep.subr.bf16.mxu0 %v4972_v58  ;;  %v6168_v53 = vld [vmem:[#allocation8 + $0x30] sm:$0xff] }
 0x215   :  { %v4909_v58 = vcombine.low %v6166_v52, %v6168_v53 }
 0x217   :  { %2251 = vmatpush1.bf16.msra.mxu1 %v4969_v55  ;;  %2291 = vmatpush1.bf16.msra.mxu0 %v4971_v56  ;;  %v4910_v55 = vcombine.high %v6166_v52, %v6168_v53  ;;  %v6174_v56 = vld [vmem:[#allocation8 + $0x38] sm:$0xff] }
 0x218   :  { %2252 = vmatprep.subr.bf16.mxu1 %v4978_v62  ;;  %2292 = vmatprep.subr.bf16.mxu0 %v4980_v1  ;;  %v4911_v59 = vcombine.low %v6170_v54, %v6174_v56  ;;  %v4912_v60 = vcombine.high %v6170_v54, %v6174_v56  ;;  %v6183_v62 = vld [vmem:[#allocation10] sm:$0xff] }
 0x219   :  { %v837_v63 = vrot.slane %v6183_v62, %v836_v61 }
 0x21b   :  { %2253 = vmatpush1.bf16.msra.mxu1 %v4977_v57  ;;  %2293 = vmatpush1.bf16.msra.mxu0 %v4979_v0  ;;  %v844_v57 = vsub.s32 4, %v6146_v4  ;;  %v6187_v0 = vld [vmem:[#allocation10 + $0x8] sm:$0xff]  ;;  %v867_v1 = vrot.slane %v837_v63, %v836_v61 }
 0x21c   :  { %2254 = vmatprep.subr.bf16.mxu1 %v4986_v6  ;;  %2294 = vmatprep.subr.bf16.mxu0 %v4988_v24  ;;  %v841_v9 = vrot.slane %v6187_v0, %v836_v61 }
 0x21d   :  { %v845_v2 = vrot.slane %v6187_v0, %v844_v57 }
 0x21f   :  { %2255 = vmatpush1.bf16.msra.mxu1 %v4985_v8  ;;  %2295 = vmatpush1.bf16.msra.mxu0 %v4987_v23  ;;  %v875_v8 = vrot.slane %v845_v2, %v836_v61 }
 0x220   :  { %2256 = vmatprep.subr.bf16.mxu1 %v4994_v29  ;;  %2296 = vmatprep.subr.bf16.mxu0 %v4996_v12 }
 0x223   :  { %2257 = vmatpush1.bf16.msra.mxu1 %v4993_v10  ;;  %2297 = vmatpush1.bf16.msra.mxu0 %v4995_v11  ;;  %v871_v11 = vrot.slane %v841_v9, %v836_v61 }
 0x224   :  { %2258 = vmatprep.subr.bf16.mxu1 %v5002_v15  ;;  %2298 = vmatprep.subr.bf16.mxu0 %v5004_v20  ;;  %v6191_v15 = vld [vmem:[#allocation10 + $0x10] sm:$0xff]  ;;  %v6194_v20 = vld [vmem:[#allocation10 + $0x18] sm:$0xff] }
 0x225   :  { %v853_v44 = vrot.slane %v6194_v20, %v836_v61 }
 0x227   :  { %2259 = vmatpush1.bf16.msra.mxu1 %v5001_v18  ;;  %2299 = vmatpush1.bf16.msra.mxu0 %v5003_v19  ;;  %v849_v18 = vrot.slane %v6191_v15, %v836_v61 }
 0x228   :  { %2260 = vmatprep.subr.bf16.mxu1 %v5010_v31  ;;  %2300 = vmatprep.subr.bf16.mxu0 %v5012_v37  ;;  %v857_v31 = vrot.slane %v6194_v20, %v844_v57 }
 0x22a   :  { %v887_v37 = vrot.slane %v857_v31, %v836_v61 }
 0x22b   :  { %2261 = vmatpush1.bf16.msra.mxu1 %v5009_v30  ;;  %2301 = vmatpush1.bf16.msra.mxu0 %v5011_v36  ;;  %v879_v30 = vrot.slane %v849_v18, %v836_v61  ;;  %v1438_v18 = vld [vmem:[#allocation8 + $0xd0] sm:$0xff] }
 0x22c   :  { %2262 = vmatprep.subr.bf16.mxu1 %v5018_v38  ;;  %2302 = vmatprep.subr.bf16.mxu0 %v5020_v42 }
 0x22f   :  { %2263 = vmatpush1.bf16.msra.mxu1 %v5017_v46  ;;  %2303 = vmatpush1.bf16.msra.mxu0 %v5019_v47 }
 0x230   :  { %2264 = vmatprep.subr.bf16.mxu1 %v5026_v48  ;;  %2304 = vmatprep.subr.bf16.mxu0 %v5028_v49  ;;  %v883_v48 = vrot.slane %v853_v44, %v836_v61  ;;  %v1426_v61 = vld [vmem:[#allocation8 + $0x70] sm:$0xff] }
 0x231   :  { %v1462_v44 = vld [vmem:[#allocation8 + $0x190] sm:$0xff] }
 0x233   :  { %2265 = vmatpush1.bf16.msra.mxu1 %v5025_v50  ;;  %2305 = vmatpush1.bf16.msra.mxu0 %v5027_v51 }
 0x234   :  { %2315 = vmatprep.subr.bf16.mxu1 %v4910_v55  ;;  %2355 = vmatprep.subr.bf16.mxu0 %v4912_v60 }
 0x2a9   :  { %v1250_v3 = vpop.f32.mrb[8].mxu1  ;;  %v1290_v5 = vpop.f32.mrb[12].mxu0 }
 0x2aa   :  { %v1251_v6 = vadd.f32 %v1250_v3, %v867_v1  ;;  %v1252_v7 = vpop.f32.mrb[9].mxu1  ;;  %v1292_v23 = vpop.f32.mrb[13].mxu0  ;;  %v1291_v13 = vadd.f32 %v1290_v5, %v871_v11  ;;  %v1431_v11 = vld [vmem:[#allocation8 + $0x98] sm:$0xff] }
 0x2ab   :  { %v1253_v24 = vpop.f32.mrb[10].mxu1  ;;  %v1294_v25 = vpop.f32.mrb[14].mxu0  ;;  %v1293_v10 = vadd.f32 %v1292_v23, %v875_v8  ;;  %v1422_v8 = vld [vmem:[#allocation8 + $0x50] sm:$0xff]  ;;  %v1423_v23 = vld [vmem:[#allocation8 + $0x58] sm:$0xff] }
 0x2ac   :  { %v4901_v26 = vmul.f32 -1.442695, %v1251_v6  ;;  %v1254_v28 = vpop.f32.mrb[11].mxu1  ;;  %v1295_v29 = vpop.f32.mrb[15].mxu0  ;;  %v1427_v24 = vld [vmem:[#allocation8 + $0x78] sm:$0xff] }
 0x2ad   :  { %v4902_v12 = vmul.f32 -1.442695, %v1293_v10  ;;  %v1430_v28 = vld [vmem:[#allocation8 + $0x90] sm:$0xff]  ;;  %v4918_v29 = vcombine.high %v1422_v8, %v1426_v61  ;;  %v4920_v9 = vcombine.high %v1423_v23, %v1427_v24 }
 0x2ae   :  { %5549 = vpow2.f32 %v4901_v26  ;;  %v1434_v10 = vld [vmem:[#allocation8 + $0xb0] sm:$0xff] }
 0x2af   :  { %5551 = vpow2.f32 %v4902_v12  ;;  %v1435_v12 = vld [vmem:[#allocation8 + $0xb8] sm:$0xff]  ;;  %v4925_v52 = vcombine.low %v1430_v28, %v1434_v10 }
 0x2b0   :  { %5553 = vtanh.f32 %v1291_v13  ;;  %v4917_v13 = vcombine.low %v1422_v8, %v1426_v61  ;;  %v4927_v53 = vcombine.low %v1431_v11, %v1435_v12  ;;  %v1479_v8 = vld [vmem:[#allocation8 + $0x218] sm:$0xff] }
 0x2b1   :  { %v1483_v61 = vld [vmem:[#allocation8 + $0x238] sm:$0xff] }
 0x2b8   :  { %v5550_v35 = vpop.eup %5549 }
 0x2b9   :  { %v1381_v14 = vadd.f32 1.0, %v5550_v35  ;;  %v5552_v17 = vpop.eup %5551  ;;  %v4919_v35 = vcombine.low %v1423_v23, %v1427_v24 }
 0x2ba   :  { %v1388_v19 = vadd.f32 1.0, %v5552_v17  ;;  %v5554_v21 = vpop.eup %5553  ;;  %v4928_v17 = vcombine.high %v1431_v11, %v1435_v12  ;;  %v1491_v11 = vld [vmem:[#allocation8 + $0x278] sm:$0xff] }
 0x2bb   :  { %5555 = vrcp.f32 %v1381_v14  ;;  %v4926_v14 = vcombine.high %v1430_v28, %v1434_v10  ;;  %v4976_v28 = vcombine.high %v1479_v8, %v1483_v61  ;;  %v1487_v10 = vld [vmem:[#allocation8 + $0x258] sm:$0xff] }
 0x2bc   :  { %5557 = vrcp.f32 %v1388_v19  ;;  %v1442_v19 = vld [vmem:[#allocation8 + $0xf0] sm:$0xff] }
 0x2bd   :  { %v4934_v54 = vcombine.high %v1438_v18, %v1442_v19  ;;  %v4933_v31 = vcombine.low %v1438_v18, %v1442_v19  ;;  %v1498_v18 = vld [vmem:[#allocation8 + $0x2b0] sm:$0xff]  ;;  %v1495_v19 = vld [vmem:[#allocation8 + $0x298] sm:$0xff] }
 0x2c5   :  { %v5556_v22 = vpop.eup %5555 }
 0x2c6   :  { %v1391_v27 = vmul.f32 %v5556_v22, %v5554_v21  ;;  %v5558_v46 = vpop.eup %5557  ;;  %v1439_v21 = vld [vmem:[#allocation8 + $0xd8] sm:$0xff] }
 0x2c7   :  { %v1443_v22 = vld [vmem:[#allocation8 + $0xf8] sm:$0xff] }
 0x2c8   :  { %5559 = vtanh.f32 %v1391_v27  ;;  %v4936_v56 = vcombine.high %v1439_v21, %v1443_v22  ;;  %v1447_v27 = vld [vmem:[#allocation8 + $0x118] sm:$0xff] }
 0x2c9   :  { %v1331_v32 = vpop.f32.mrb[12].mxu1  ;;  %v1371_v33 = vpop.f32.mrb[16].mxu0 }
 0x2ca   :  { %v1332_v34 = vadd.f32 %v1331_v32, %v879_v30  ;;  %v1333_v36 = vpop.f32.mrb[13].mxu1  ;;  %v1373_v38 = vpop.f32.mrb[17].mxu0  ;;  %v1372_v51 = vadd.f32 %v1371_v33, %v883_v48  ;;  %v1451_v30 = vld [vmem:[#allocation8 + $0x138] sm:$0xff]  ;;  %v4935_v32 = vcombine.low %v1439_v21, %v1443_v22 }
 0x2cb   :  { %v1334_v39 = vpop.f32.mrb[14].mxu1  ;;  %v1375_v40 = vpop.f32.mrb[18].mxu0  ;;  %v1374_v45 = vadd.f32 %v1373_v38, %v887_v37  ;;  %v1454_v36 = vld [vmem:[#allocation8 + $0x150] sm:$0xff]  ;;  %v1455_v38 = vld [vmem:[#allocation8 + $0x158] sm:$0xff] }
 0x2cc   :  { %v4903_v41 = vmul.f32 -1.442695, %v1332_v34  ;;  %v1335_v42 = vpop.f32.mrb[15].mxu1  ;;  %v1376_v43 = vpop.f32.mrb[19].mxu0  ;;  %v4944_v34 = vcombine.high %v1447_v27, %v1451_v30  ;;  %v1458_v37 = vld [vmem:[#allocation8 + $0x170] sm:$0xff]  ;;  %v1459_v39 = vld [vmem:[#allocation8 + $0x178] sm:$0xff] }
 0x2cd   :  { %v4904_v49 = vmul.f32 -1.442695, %v1374_v45  ;;  %v4950_v42 = vcombine.high %v1454_v36, %v1458_v37  ;;  %v4952_v43 = vcombine.high %v1455_v38, %v1459_v39  ;;  %v1466_v45 = vld [vmem:[#allocation8 + $0x1b0] sm:$0xff]  ;;  %v4949_v48 = vcombine.low %v1454_v36, %v1458_v37  ;;  %v1499_v21 = vld [vmem:[#allocation8 + $0x2b8] sm:$0xff] }
 0x2ce   :  { %5561 = vpow2.f32 %v4903_v41  ;;  %v4943_v41 = vcombine.low %v1447_v27, %v1451_v30  ;;  %v1507_v27 = vld [vmem:[#allocation8 + $0x2f8] sm:$0xff]  ;;  %v1514_v36 = vld [vmem:[#allocation8 + $0x330] sm:$0xff] }
 0x2cf   :  { %5563 = vpow2.f32 %v4904_v49  ;;  %v4951_v49 = vcombine.low %v1455_v38, %v1459_v39  ;;  %v1511_v37 = vld [vmem:[#allocation8 + $0x318] sm:$0xff] }
 0x2d0   :  { %5565 = vtanh.f32 %v1372_v51  ;;  %v1515_v38 = vld [vmem:[#allocation8 + $0x338] sm:$0xff] }
 0x2d2   :  { %v5560_v47 = vpop.eup %5559 }
 0x2d3   :  { %v1393_v50 = vmul.f32 %v5560_v47, %v5558_v46  ;;  %v1463_v46 = vld [vmem:[#allocation8 + $0x198] sm:$0xff] }
 0x2d4   :  { %v1467_v47 = vld [vmem:[#allocation8 + $0x1b8] sm:$0xff] }
 0x2d5   :  { %v6198_v26 = vpack.c.bf16 %v1393_v50, %v1393_v50  ;;  %v4958_v50 = vcombine.high %v1462_v44, %v1466_v45  ;;  %v4960_v51 = vcombine.high %v1463_v46, %v1467_v47 }
 0x2d8   :  { %v5562_v55 = vpop.eup %5561 }
 0x2d9   :  { %v1397_v60 = vadd.f32 1.0, %v5562_v55  ;;  %v5564_v63 = vpop.eup %5563  ;;  %v1470_v55 = vld [vmem:[#allocation8 + $0x1d0] sm:$0xff] }
 0x2da   :  { %v1404_v57 = vadd.f32 1.0, %v5564_v63  ;;  %v5566_v1 = vpop.eup %5565  ;;  %v1471_v63 = vld [vmem:[#allocation8 + $0x1d8] sm:$0xff] }
 0x2db   :  { %5567 = vrcp.f32 %v1397_v60  ;;  %v1474_v60 = vld [vmem:[#allocation8 + $0x1f0] sm:$0xff] }
 0x2dc   :  { %5569 = vrcp.f32 %v1404_v57  ;;  %v1475_v57 = vld [vmem:[#allocation8 + $0x1f8] sm:$0xff]  ;;  %v4965_v23 = vcombine.low %v1470_v55, %v1474_v60 }
 0x2dd   :  { %v4967_v24 = vcombine.low %v1471_v63, %v1475_v57 }
 0x2e5   :  { %v5568_v2 = vpop.eup %5567 }
 0x2e6   :  { %v1407_v3 = vmul.f32 %v5568_v2, %v5566_v1  ;;  %v5570_v5 = vpop.eup %5569  ;;  %v4957_v1 = vcombine.low %v1462_v44, %v1466_v45  ;;  %v4959_v2 = vcombine.low %v1463_v46, %v1467_v47  ;;  %v1522_v44 = vld [vmem:[#allocation8 + $0x370] sm:$0xff]  ;;  %v1519_v45 = vld [vmem:[#allocation8 + $0x358] sm:$0xff] }
 0x2e7   :  { %v1523_v46 = vld [vmem:[#allocation8 + $0x378] sm:$0xff] }
 0x2e8   :  { %5571 = vtanh.f32 %v1407_v3  ;;  %v4966_v3 = vcombine.high %v1470_v55, %v1474_v60  ;;  %v1530_v55 = vld [vmem:[#allocation8 + $0x3b0] sm:$0xff]  ;;  %v1527_v60 = vld [vmem:[#allocation8 + $0x398] sm:$0xff] }
 0x2f2   :  { %v5572_v6 = vpop.eup %5571 }
 0x2f3   :  { %v1409_v7 = vmul.f32 %v5572_v6, %v5570_v5  ;;  %v4968_v5 = vcombine.high %v1471_v63, %v1475_v57  ;;  %v1478_v6 = vld [vmem:[#allocation8 + $0x210] sm:$0xff]  ;;  %v1531_v63 = vld [vmem:[#allocation8 + $0x3b8] sm:$0xff] }
 0x2f5   :  { %v1411_v25 = vpack.c.bf16 %v1409_v7, %v1409_v7  ;;  %v1482_v7 = vld [vmem:[#allocation8 + $0x230] sm:$0xff] }
 0x2f6   :  { %v4973_v12 = vcombine.low %v1478_v6, %v1482_v7 }
 0x2f7   :  { %2266 = vmatprep.mubr.bf16.mxu1 %v1411_v25  ;;  %2306 = vmatprep.mubr.bf16.mxu0 %v1411_v25 }
 0x2f8   :  { %2267 = vmatmul.mubr.bf16.vlgmr.msra.gmra.mrb[16].mxu1 %v6198_v26  ;;  %2307 = vmatmul.mubr.bf16.vlgmr.msra.gmra.mrb[20].mxu0 %v6198_v26 }
 0x2f9   :  { %2316 = vmatpush1.bf16.msra.mxu1 %v4909_v58  ;;  %2356 = vmatpush1.bf16.msra.mxu0 %v4911_v59  ;;  %v1446_v58 = vld [vmem:[#allocation8 + $0x110] sm:$0xff] }
 0x2fa   :  { %2347 = vmatprep.mubr.bf16.mxu1 %v1411_v25  ;;  %2387 = vmatprep.mubr.bf16.mxu0 %v1411_v25  ;;  %v1450_v59 = vld [vmem:[#allocation8 + $0x130] sm:$0xff]  ;;  %v4974_v25 = vcombine.high %v1478_v6, %v1482_v7  ;;  %v1535_v7 = vld [vmem:[#allocation8 + $0x3d8] sm:$0xff] }
 0x2fb   :  { %2317 = vmatprep.subr.bf16.mxu1 %v4918_v29  ;;  %2357 = vmatprep.subr.bf16.mxu0 %v4920_v9  ;;  %v4942_v33 = vcombine.high %v1446_v58, %v1450_v59  ;;  %v4941_v40 = vcombine.low %v1446_v58, %v1450_v59  ;;  %v1486_v29 = vld [vmem:[#allocation8 + $0x250] sm:$0xff]  ;;  %v1503_v59 = vld [vmem:[#allocation8 + $0x2d8] sm:$0xff] }
 0x2fc   :  { %v1490_v9 = vld [vmem:[#allocation8 + $0x270] sm:$0xff] }
 0x2fd   :  { %2318 = vmatpush1.bf16.msra.mxu1 %v4917_v13  ;;  %2358 = vmatpush1.bf16.msra.mxu0 %v4919_v35  ;;  %v4975_v13 = vcombine.low %v1479_v8, %v1483_v61  ;;  %v4982_v35 = vcombine.high %v1486_v29, %v1490_v9  ;;  %v4981_v22 = vcombine.low %v1486_v29, %v1490_v9  ;;  %v1506_v58 = vld [vmem:[#allocation8 + $0x2f0] sm:$0xff]  ;;  %v1539_v8 = vld [vmem:[#allocation8 + $0x3f8] sm:$0xff]  ;;  %v2431_v9 = vld [vmem:[#allocation8 + $0x400] sm:$0xff] }
 0x2fe   :  { %2319 = vmatprep.subr.bf16.mxu1 %v4926_v14  ;;  %2359 = vmatprep.subr.bf16.mxu0 %v4928_v17  ;;  %v4984_v14 = vcombine.high %v1487_v10, %v1491_v11  ;;  %v1494_v17 = vld [vmem:[#allocation8 + $0x290] sm:$0xff]  ;;  %v5031_v29 = vcombine.low %v1535_v7, %v1539_v8 }
 0x2ff   :  { %v4989_v30 = vcombine.low %v1494_v17, %v1498_v18  ;;  %v1538_v6 = vld [vmem:[#allocation8 + $0x3f0] sm:$0xff] }
 0x301   :  { %2320 = vmatpush1.bf16.msra.mxu1 %v4925_v52  ;;  %2360 = vmatpush1.bf16.msra.mxu0 %v4927_v53  ;;  %v4983_v52 = vcombine.low %v1487_v10, %v1491_v11  ;;  %v4990_v53 = vcombine.high %v1494_v17, %v1498_v18  ;;  %v2435_v10 = vld [vmem:[#allocation8 + $0x420] sm:$0xff]  ;;  %v2432_v11 = vld [vmem:[#allocation8 + $0x408] sm:$0xff] }
 0x302   :  { %2321 = vmatprep.subr.bf16.mxu1 %v4934_v54  ;;  %2361 = vmatprep.subr.bf16.mxu0 %v4936_v56  ;;  %v4992_v54 = vcombine.high %v1495_v19, %v1499_v21  ;;  %v1502_v56 = vld [vmem:[#allocation8 + $0x2d0] sm:$0xff]  ;;  %v2443_v17 = vld [vmem:[#allocation8 + $0x460] sm:$0xff] }
 0x303   :  { %v4997_v39 = vcombine.low %v1502_v56, %v1506_v58 }
 0x305   :  { %2322 = vmatpush1.bf16.msra.mxu1 %v4933_v31  ;;  %2362 = vmatpush1.bf16.msra.mxu0 %v4935_v32  ;;  %v4991_v31 = vcombine.low %v1495_v19, %v1499_v21  ;;  %v4998_v32 = vcombine.high %v1502_v56, %v1506_v58  ;;  %v2451_v56 = vld [vmem:[#allocation8 + $0x4a0] sm:$0xff]  ;;  %v2448_v58 = vld [vmem:[#allocation8 + $0x488] sm:$0xff] }
 0x306   :  { %2323 = vmatprep.subr.bf16.mxu1 %v4942_v33  ;;  %2363 = vmatprep.subr.bf16.mxu0 %v4944_v34  ;;  %v5000_v33 = vcombine.high %v1503_v59, %v1507_v27  ;;  %v1510_v34 = vld [vmem:[#allocation8 + $0x310] sm:$0xff] }
 0x307   :  { %v5005_v47 = vcombine.low %v1510_v34, %v1514_v36 }
 0x309   :  { %2324 = vmatpush1.bf16.msra.mxu1 %v4941_v40  ;;  %2364 = vmatpush1.bf16.msra.mxu0 %v4943_v41  ;;  %v4999_v40 = vcombine.low %v1503_v59, %v1507_v27  ;;  %v5006_v41 = vcombine.high %v1510_v34, %v1514_v36  ;;  %v2452_v59 = vld [vmem:[#allocation8 + $0x4a8] sm:$0xff] }
 0x30a   :  { %2325 = vmatprep.subr.bf16.mxu1 %v4950_v42  ;;  %2365 = vmatprep.subr.bf16.mxu0 %v4952_v43  ;;  %v5008_v42 = vcombine.high %v1511_v37, %v1515_v38  ;;  %v1518_v43 = vld [vmem:[#allocation8 + $0x350] sm:$0xff]  ;;  %v2456_v34 = vld [vmem:[#allocation8 + $0x4c8] sm:$0xff] }
 0x30b   :  { %v5013_v57 = vcombine.low %v1518_v43, %v1522_v44  ;;  %v2460_v36 = vld [vmem:[#allocation8 + $0x4e8] sm:$0xff] }
 0x30d   :  { %2326 = vmatpush1.bf16.msra.mxu1 %v4949_v48  ;;  %2366 = vmatpush1.bf16.msra.mxu0 %v4951_v49  ;;  %v5007_v48 = vcombine.low %v1511_v37, %v1515_v38  ;;  %v5014_v49 = vcombine.high %v1518_v43, %v1522_v44  ;;  %v5055_v38 = vcombine.low %v2448_v58, %v2452_v59  ;;  %v2464_v43 = vld [vmem:[#allocation8 + $0x508] sm:$0xff] }
 0x30e   :  { %2327 = vmatprep.subr.bf16.mxu1 %v4958_v50  ;;  %2367 = vmatprep.subr.bf16.mxu0 %v4960_v51  ;;  %v5016_v50 = vcombine.high %v1519_v45, %v1523_v46  ;;  %v1526_v51 = vld [vmem:[#allocation8 + $0x390] sm:$0xff]  ;;  %v2468_v44 = vld [vmem:[#allocation8 + $0x528] sm:$0xff] }
 0x30f   :  { %v5021_v61 = vcombine.low %v1526_v51, %v1530_v55 }
 0x311   :  { %2328 = vmatpush1.bf16.msra.mxu1 %v4957_v1  ;;  %2368 = vmatpush1.bf16.msra.mxu0 %v4959_v2  ;;  %v5015_v1 = vcombine.low %v1519_v45, %v1523_v46  ;;  %v5022_v2 = vcombine.high %v1526_v51, %v1530_v55  ;;  %v5063_v46 = vcombine.low %v2456_v34, %v2460_v36  ;;  %v2471_v51 = vld [vmem:[#allocation8 + $0x540] sm:$0xff] }
 0x312   :  { %2329 = vmatprep.subr.bf16.mxu1 %v4966_v3  ;;  %2369 = vmatprep.subr.bf16.mxu0 %v4968_v5  ;;  %v5024_v3 = vcombine.high %v1527_v60, %v1531_v63  ;;  %v1534_v5 = vld [vmem:[#allocation8 + $0x3d0] sm:$0xff]  ;;  %v2475_v55 = vld [vmem:[#allocation8 + $0x560] sm:$0xff] }
 0x315   :  { %2330 = vmatpush1.bf16.msra.mxu1 %v4965_v23  ;;  %2370 = vmatpush1.bf16.msra.mxu0 %v4967_v24  ;;  %v5023_v23 = vcombine.low %v1527_v60, %v1531_v63  ;;  %v5030_v24 = vcombine.high %v1534_v5, %v1538_v6  ;;  %v2472_v60 = vld [vmem:[#allocation8 + $0x548] sm:$0xff]  ;;  %v5078_v63 = vcombine.high %v2471_v51, %v2475_v55 }
 0x316   :  { %2331 = vmatprep.subr.bf16.mxu1 %v4974_v25  ;;  %2371 = vmatprep.subr.bf16.mxu0 %v4976_v28  ;;  %v5032_v25 = vcombine.high %v1535_v7, %v1539_v8  ;;  %v5029_v28 = vcombine.low %v1534_v5, %v1538_v6  ;;  %v2479_v5 = vld [vmem:[#allocation8 + $0x580] sm:$0xff]  ;;  %v2480_v7 = vld [vmem:[#allocation8 + $0x588] sm:$0xff] }
 0x317   :  { %v2483_v6 = vld [vmem:[#allocation8 + $0x5a0] sm:$0xff] }
 0x318   :  { %v5086_v8 = vcombine.high %v2479_v5, %v2483_v6 }
 0x319   :  { %2332 = vmatpush1.bf16.msra.mxu1 %v4973_v12  ;;  %2372 = vmatpush1.bf16.msra.mxu0 %v4975_v13  ;;  %v5037_v12 = vcombine.low %v2431_v9, %v2435_v10  ;;  %v5038_v13 = vcombine.high %v2431_v9, %v2435_v10  ;;  %v2488_v9 = vld [vmem:[#allocation8 + $0x5c8] sm:$0xff] }
 0x31a   :  { %2333 = vmatprep.subr.bf16.mxu1 %v4982_v35  ;;  %2373 = vmatprep.subr.bf16.mxu0 %v4984_v14  ;;  %v2436_v35 = vld [vmem:[#allocation8 + $0x428] sm:$0xff]  ;;  %v2439_v14 = vld [vmem:[#allocation8 + $0x440] sm:$0xff] }
 0x31b   :  { %v5039_v18 = vcombine.low %v2432_v11, %v2436_v35  ;;  %v5040_v19 = vcombine.high %v2432_v11, %v2436_v35  ;;  %v5046_v21 = vcombine.high %v2439_v14, %v2443_v17  ;;  %v2492_v11 = vld [vmem:[#allocation8 + $0x5e8] sm:$0xff] }
 0x31c   :  { %v5096_v35 = vcombine.high %v2488_v9, %v2492_v11 }
 0x31d   :  { %2334 = vmatpush1.bf16.msra.mxu1 %v4981_v22  ;;  %2374 = vmatpush1.bf16.msra.mxu0 %v4983_v52  ;;  %v2440_v22 = vld [vmem:[#allocation8 + $0x448] sm:$0xff] }
 0x31e   :  { %2335 = vmatprep.subr.bf16.mxu1 %v4990_v53  ;;  %2375 = vmatprep.subr.bf16.mxu0 %v4992_v54  ;;  %v2444_v52 = vld [vmem:[#allocation8 + $0x468] sm:$0xff]  ;;  %v2447_v53 = vld [vmem:[#allocation8 + $0x480] sm:$0xff] }
 0x31f   :  { %v5048_v54 = vcombine.high %v2440_v22, %v2444_v52  ;;  %v5047_v27 = vcombine.low %v2440_v22, %v2444_v52  ;;  %v5053_v37 = vcombine.low %v2447_v53, %v2451_v56 }
 0x321   :  { %2336 = vmatpush1.bf16.msra.mxu1 %v4989_v30  ;;  %2376 = vmatpush1.bf16.msra.mxu0 %v4991_v31  ;;  %v5054_v30 = vcombine.high %v2447_v53, %v2451_v56  ;;  %v5056_v31 = vcombine.high %v2448_v58, %v2452_v59  ;;  %v2507_v56 = vld [vmem:[#allocation8 + $0x660] sm:$0xff]  ;;  %v2504_v58 = vld [vmem:[#allocation8 + $0x648] sm:$0xff] }
 0x322   :  { %2337 = vmatprep.subr.bf16.mxu1 %v4998_v32  ;;  %2377 = vmatprep.subr.bf16.mxu0 %v5000_v33  ;;  %v2455_v32 = vld [vmem:[#allocation8 + $0x4c0] sm:$0xff] }
 0x323   :  { %v2459_v33 = vld [vmem:[#allocation8 + $0x4e0] sm:$0xff] }
 0x324   :  { %v5061_v45 = vcombine.low %v2455_v32, %v2459_v33 }
 0x325   :  { %2338 = vmatpush1.bf16.msra.mxu1 %v4997_v39  ;;  %2378 = vmatpush1.bf16.msra.mxu0 %v4999_v40  ;;  %v5062_v39 = vcombine.high %v2455_v32, %v2459_v33  ;;  %v5064_v40 = vcombine.high %v2456_v34, %v2460_v36  ;;  %v2511_v32 = vld [vmem:[#allocation8 + $0x680] sm:$0xff]  ;;  %v2512_v34 = vld [vmem:[#allocation8 + $0x688] sm:$0xff] }
 0x326   :  { %2339 = vmatprep.subr.bf16.mxu1 %v5006_v41  ;;  %2379 = vmatprep.subr.bf16.mxu0 %v5008_v42  ;;  %v2463_v41 = vld [vmem:[#allocation8 + $0x500] sm:$0xff] }
 0x327   :  { %v2467_v42 = vld [vmem:[#allocation8 + $0x520] sm:$0xff] }
 0x328   :  { %v2515_v33 = vld [vmem:[#allocation8 + $0x6a0] sm:$0xff] }
 0x329   :  { %2340 = vmatpush1.bf16.msra.mxu1 %v5005_v47  ;;  %2380 = vmatpush1.bf16.msra.mxu0 %v5007_v48  ;;  %v5070_v47 = vcombine.high %v2463_v41, %v2467_v42  ;;  %v5072_v48 = vcombine.high %v2464_v43, %v2468_v44  ;;  %v5118_v36 = vcombine.high %v2511_v32, %v2515_v33 }
 0x32a   :  { %2341 = vmatprep.subr.bf16.mxu1 %v5014_v49  ;;  %2381 = vmatprep.subr.bf16.mxu0 %v5016_v50  ;;  %v5069_v49 = vcombine.low %v2463_v41, %v2467_v42  ;;  %v5071_v50 = vcombine.low %v2464_v43, %v2468_v44  ;;  %v2519_v41 = vld [vmem:[#allocation8 + $0x6c0] sm:$0xff]  ;;  %v2520_v43 = vld [vmem:[#allocation8 + $0x6c8] sm:$0xff] }
 0x32b   :  { %v2523_v42 = vld [vmem:[#allocation8 + $0x6e0] sm:$0xff] }
 0x32c   :  { %v5126_v44 = vcombine.high %v2519_v41, %v2523_v42 }
 0x32d   :  { %2342 = vmatpush1.bf16.msra.mxu1 %v5013_v57  ;;  %2382 = vmatpush1.bf16.msra.mxu0 %v5015_v1  ;;  %v2476_v57 = vld [vmem:[#allocation8 + $0x568] sm:$0xff]  ;;  %v5077_v1 = vcombine.low %v2471_v51, %v2475_v55 }
 0x32e   :  { %2343 = vmatprep.subr.bf16.mxu1 %v5022_v2  ;;  %2383 = vmatprep.subr.bf16.mxu0 %v5024_v3  ;;  %v5079_v2 = vcombine.low %v2472_v60, %v2476_v57  ;;  %v5080_v3 = vcombine.high %v2472_v60, %v2476_v57  ;;  %v2528_v51 = vld [vmem:[#allocation8 + $0x708] sm:$0xff] }
 0x32f   :  { %v2532_v60 = vld [vmem:[#allocation8 + $0x728] sm:$0xff] }
 0x330   :  { %v5135_v57 = vcombine.low %v2528_v51, %v2532_v60 }
 0x331   :  { %2344 = vmatpush1.bf16.msra.mxu1 %v5021_v61  ;;  %2384 = vmatpush1.bf16.msra.mxu0 %v5023_v23  ;;  %v2484_v61 = vld [vmem:[#allocation8 + $0x5a8] sm:$0xff]  ;;  %v5085_v23 = vcombine.low %v2479_v5, %v2483_v6 }
 0x332   :  { %2345 = vmatprep.subr.bf16.mxu1 %v5030_v24  ;;  %2385 = vmatprep.subr.bf16.mxu0 %v5032_v25  ;;  %v5087_v24 = vcombine.low %v2480_v7, %v2484_v61  ;;  %v5088_v25 = vcombine.high %v2480_v7, %v2484_v61  ;;  %v2536_v5 = vld [vmem:[#allocation8 + $0x748] sm:$0xff]  ;;  %v2543_v61 = vld [vmem:[#allocation8 + $0x780] sm:$0xff] }
 0x335   :  { %2346 = vmatpush1.bf16.msra.mxu1 %v5029_v28  ;;  %2386 = vmatpush1.bf16.msra.mxu0 %v5031_v29  ;;  %v2487_v28 = vld [vmem:[#allocation8 + $0x5c0] sm:$0xff] }
 0x336   :  { %3253 = vmatprep.subr.bf16.mxu1 %v5038_v13  ;;  %3293 = vmatprep.subr.bf16.mxu0 %v5040_v19  ;;  %v2491_v29 = vld [vmem:[#allocation8 + $0x5e0] sm:$0xff]  ;;  %v5095_v13 = vcombine.low %v2488_v9, %v2492_v11  ;;  %v2548_v9 = vld [vmem:[#allocation8 + $0x7a8] sm:$0xff] }
 0x337   :  { %v5094_v10 = vcombine.high %v2487_v28, %v2491_v29 }
 0x338   :  { %2348 = vmatmul.mubr.bf16.vlgmr.msra.gmra.mrb[20].mxu1 %v6198_v26  ;;  %2388 = vmatmul.mubr.bf16.vlgmr.msra.gmra.mrb[24].mxu0 %v6198_v26  ;;  %v5045_v26 = vcombine.low %v2439_v14, %v2443_v17  ;;  %v2495_v14 = vld [vmem:[#allocation8 + $0x600] sm:$0xff] }
 0x339   :  { %3254 = vmatpush1.bf16.msra.mxu1 %v5037_v12  ;;  %3294 = vmatpush1.bf16.msra.mxu0 %v5039_v18  ;;  %v5093_v12 = vcombine.low %v2487_v28, %v2491_v29  ;;  %v2499_v17 = vld [vmem:[#allocation8 + $0x620] sm:$0xff]  ;;  %v2496_v18 = vld [vmem:[#allocation8 + $0x608] sm:$0xff] }
 0x33a   :  { %3255 = vmatprep.subr.bf16.mxu1 %v5046_v21  ;;  %3295 = vmatprep.subr.bf16.mxu0 %v5048_v54  ;;  %v5102_v19 = vcombine.high %v2495_v14, %v2499_v17  ;;  %v2500_v21 = vld [vmem:[#allocation8 + $0x628] sm:$0xff]  ;;  %v5101_v22 = vcombine.low %v2495_v14, %v2499_v17  ;;  %v2503_v54 = vld [vmem:[#allocation8 + $0x640] sm:$0xff] }
 0x33b   :  { %v5103_v52 = vcombine.low %v2496_v18, %v2500_v21  ;;  %v5104_v53 = vcombine.high %v2496_v18, %v2500_v21  ;;  %v5110_v59 = vcombine.high %v2503_v54, %v2507_v56  ;;  %v2544_v29 = vld [vmem:[#allocation8 + $0x788] sm:$0xff] }
 0x33c   :  { %v5152_v11 = vcombine.high %v2544_v29, %v2548_v9  ;;  %v5151_v17 = vcombine.low %v2544_v29, %v2548_v9 }
 0x33d   :  { %3256 = vmatpush1.bf16.msra.mxu1 %v5045_v26  ;;  %3296 = vmatpush1.bf16.msra.mxu0 %v5047_v27  ;;  %v2508_v26 = vld [vmem:[#allocation8 + $0x668] sm:$0xff]  ;;  %v5109_v27 = vcombine.low %v2503_v54, %v2507_v56  ;;  %v6214_v54 = vld [vmem:[#allocation8 + $0x418] sm:$0xff] }
 0x33e   :  { %3257 = vmatprep.subr.bf16.mxu1 %v5054_v30  ;;  %3297 = vmatprep.subr.bf16.mxu0 %v5056_v31  ;;  %v5111_v30 = vcombine.low %v2504_v58, %v2508_v26  ;;  %v5112_v31 = vcombine.high %v2504_v58, %v2508_v26  ;;  %v6218_v58 = vld [vmem:[#allocation8 + $0x438] sm:$0xff] }
 0x33f   :  { %v5043_v26 = vcombine.low %v6214_v54, %v6218_v58 }
 0x341   :  { %3258 = vmatpush1.bf16.msra.mxu1 %v5053_v37  ;;  %3298 = vmatpush1.bf16.msra.mxu0 %v5055_v38  ;;  %v2516_v37 = vld [vmem:[#allocation8 + $0x6a8] sm:$0xff]  ;;  %v5117_v38 = vcombine.low %v2511_v32, %v2515_v33  ;;  %v1550_v32 = vsub.s32 5, %v6146_v4 }
 0x342   :  { %3259 = vmatprep.subr.bf16.mxu1 %v5062_v39  ;;  %3299 = vmatprep.subr.bf16.mxu0 %v5064_v40  ;;  %v5119_v39 = vcombine.low %v2512_v34, %v2516_v37  ;;  %v5120_v40 = vcombine.high %v2512_v34, %v2516_v37 }
 0x343   :  { %v1551_v34 = vrot.slane %v6187_v0, %v1550_v32 }
 0x345   :  { %3260 = vmatpush1.bf16.msra.mxu1 %v5061_v45  ;;  %3300 = vmatpush1.bf16.msra.mxu0 %v5063_v46  ;;  %v2524_v45 = vld [vmem:[#allocation8 + $0x6e8] sm:$0xff]  ;;  %v5125_v46 = vcombine.low %v2519_v41, %v2523_v42 }
 0x346   :  { %3261 = vmatprep.subr.bf16.mxu1 %v5070_v47  ;;  %3301 = vmatprep.subr.bf16.mxu0 %v5072_v48  ;;  %v5127_v47 = vcombine.low %v2520_v43, %v2524_v45  ;;  %v5128_v48 = vcombine.high %v2520_v43, %v2524_v45 }
 0x349   :  { %3262 = vmatpush1.bf16.msra.mxu1 %v5069_v49  ;;  %3302 = vmatpush1.bf16.msra.mxu0 %v5071_v50  ;;  %v2527_v49 = vld [vmem:[#allocation8 + $0x700] sm:$0xff] }
 0x34a   :  { %3263 = vmatprep.subr.bf16.mxu1 %v5078_v63  ;;  %3303 = vmatprep.subr.bf16.mxu0 %v5080_v3  ;;  %v2531_v50 = vld [vmem:[#allocation8 + $0x720] sm:$0xff] }
 0x34b   :  { %v5134_v55 = vcombine.high %v2527_v49, %v2531_v50  ;;  %v5133_v63 = vcombine.low %v2527_v49, %v2531_v50  ;;  %v2539_v3 = vld [vmem:[#allocation8 + $0x760] sm:$0xff] }
 0x34d   :  { %3264 = vmatpush1.bf16.msra.mxu1 %v5077_v1  ;;  %3304 = vmatpush1.bf16.msra.mxu0 %v5079_v2  ;;  %v5136_v1 = vcombine.high %v2528_v51, %v2532_v60  ;;  %v2535_v2 = vld [vmem:[#allocation8 + $0x740] sm:$0xff] }
 0x34e   :  { %3265 = vmatprep.subr.bf16.mxu1 %v5086_v8  ;;  %3305 = vmatprep.subr.bf16.mxu0 %v5088_v25  ;;  %v5141_v6 = vcombine.low %v2535_v2, %v2539_v3  ;;  %v5142_v7 = vcombine.high %v2535_v2, %v2539_v3  ;;  %v2540_v8 = vld [vmem:[#allocation8 + $0x768] sm:$0xff] }
 0x34f   :  { %v5144_v25 = vcombine.high %v2536_v5, %v2540_v8 }
 0x351   :  { %3266 = vmatpush1.bf16.msra.mxu1 %v5085_v23  ;;  %3306 = vmatpush1.bf16.msra.mxu0 %v5087_v24  ;;  %v2547_v23 = vld [vmem:[#allocation8 + $0x7a0] sm:$0xff]  ;;  %v5143_v24 = vcombine.low %v2536_v5, %v2540_v8  ;;  %v1563_v8 = vrot.slane %v6194_v20, %v1550_v32 }
 0x352   :  { %3267 = vmatprep.subr.bf16.mxu1 %v5094_v10  ;;  %3307 = vmatprep.subr.bf16.mxu0 %v5096_v35  ;;  %v5150_v28 = vcombine.high %v2543_v61, %v2547_v23  ;;  %v2551_v10 = vld [vmem:[#allocation8 + $0x7c0] sm:$0xff]  ;;  %v2556_v35 = vld [vmem:[#allocation8 + $0x7e8] sm:$0xff]  ;;  %v5149_v14 = vcombine.low %v2543_v61, %v2547_v23 }
 0x355   :  { %3268 = vmatpush1.bf16.msra.mxu1 %v5093_v12  ;;  %3308 = vmatpush1.bf16.msra.mxu0 %v5095_v13  ;;  %v2555_v12 = vld [vmem:[#allocation8 + $0x7e0] sm:$0xff]  ;;  %v2552_v13 = vld [vmem:[#allocation8 + $0x7c8] sm:$0xff] }
 0x356   :  { %3269 = vmatprep.subr.bf16.mxu1 %v5102_v19  ;;  %3309 = vmatprep.subr.bf16.mxu0 %v5104_v53  ;;  %v5158_v18 = vcombine.high %v2551_v10, %v2555_v12  ;;  %v5160_v19 = vcombine.high %v2552_v13, %v2556_v35  ;;  %v5157_v21 = vcombine.low %v2551_v10, %v2555_v12  ;;  %v6212_v53 = vld [vmem:[#allocation8 + $0x430] sm:$0xff] }
 0x359   :  { %3270 = vmatpush1.bf16.msra.mxu1 %v5101_v22  ;;  %3310 = vmatpush1.bf16.msra.mxu0 %v5103_v52  ;;  %v5159_v22 = vcombine.low %v2552_v13, %v2556_v35  ;;  %v6210_v52 = vld [vmem:[#allocation8 + $0x410] sm:$0xff] }
 0x35a   :  { %3271 = vmatprep.subr.bf16.mxu1 %v5110_v59  ;;  %3311 = vmatprep.subr.bf16.mxu0 %v5112_v31  ;;  %v5042_v56 = vcombine.high %v6210_v52, %v6212_v53  ;;  %v5041_v59 = vcombine.low %v6210_v52, %v6212_v53 }
 0x35d   :  { %3272 = vmatpush1.bf16.msra.mxu1 %v5109_v27  ;;  %3312 = vmatpush1.bf16.msra.mxu0 %v5111_v30  ;;  %v5044_v27 = vcombine.high %v6214_v54, %v6218_v58  ;;  %v1542_v30 = vsub.s32 1, %v6146_v4 }
 0x35e   :  { %3273 = vmatprep.subr.bf16.mxu1 %v5118_v36  ;;  %3313 = vmatprep.subr.bf16.mxu0 %v5120_v40 }
 0x35f   :  { %v1543_v31 = vrot.slane %v6183_v62, %v1542_v30  ;;  %v1581_v40 = vrot.slane %v1551_v34, %v1542_v30  ;;  %v1559_v35 = vrot.slane %v6194_v20, %v1542_v30  ;;  %v2441_v20 = vld [vmem:[#allocation8 + $0x450] sm:$0xff] }
 0x361   :  { %3274 = vmatpush1.bf16.msra.mxu1 %v5117_v38  ;;  %3314 = vmatpush1.bf16.msra.mxu0 %v5119_v39  ;;  %v1573_v33 = vrot.slane %v1543_v31, %v1542_v30 }
 0x362   :  { %3275 = vmatprep.subr.bf16.mxu1 %v5126_v44  ;;  %3315 = vmatprep.subr.bf16.mxu0 %v5128_v48 }
 0x365   :  { %3276 = vmatpush1.bf16.msra.mxu1 %v5125_v46  ;;  %3316 = vmatpush1.bf16.msra.mxu0 %v5127_v47  ;;  %v1547_v47 = vrot.slane %v6187_v0, %v1542_v30  ;;  %v1555_v0 = vrot.slane %v6191_v15, %v1542_v30 }
 0x366   :  { %3277 = vmatprep.subr.bf16.mxu1 %v5134_v55  ;;  %3317 = vmatprep.subr.bf16.mxu0 %v5136_v1 }
 0x367   :  { %v1577_v48 = vrot.slane %v1547_v47, %v1542_v30 }
 0x369   :  { %3278 = vmatpush1.bf16.msra.mxu1 %v5133_v63  ;;  %3318 = vmatpush1.bf16.msra.mxu0 %v5135_v57 }
 0x36a   :  { %3279 = vmatprep.subr.bf16.mxu1 %v5142_v7  ;;  %3319 = vmatprep.subr.bf16.mxu0 %v5144_v25  ;;  %v1585_v7 = vrot.slane %v1555_v0, %v1542_v30  ;;  %v2477_v0 = vld [vmem:[#allocation8 + $0x570] sm:$0xff] }
 0x36d   :  { %3280 = vmatpush1.bf16.msra.mxu1 %v5141_v6  ;;  %3320 = vmatpush1.bf16.msra.mxu0 %v5143_v24 }
 0x36e   :  { %3281 = vmatprep.subr.bf16.mxu1 %v5150_v28  ;;  %3321 = vmatprep.subr.bf16.mxu0 %v5152_v11  ;;  %v1593_v28 = vrot.slane %v1563_v8, %v1542_v30  ;;  %v2478_v8 = vld [vmem:[#allocation8 + $0x578] sm:$0xff] }
 0x371   :  { %3282 = vmatpush1.bf16.msra.mxu1 %v5149_v14  ;;  %3322 = vmatpush1.bf16.msra.mxu0 %v5151_v17  ;;  %v1589_v17 = vrot.slane %v1559_v35, %v1542_v30  ;;  %v2442_v30 = vld [vmem:[#allocation8 + $0x458] sm:$0xff] }
 0x372   :  { %3283 = vmatprep.subr.bf16.mxu1 %v5158_v18  ;;  %3323 = vmatprep.subr.bf16.mxu0 %v5160_v19 }
 0x375   :  { %3284 = vmatpush1.bf16.msra.mxu1 %v5157_v21  ;;  %3324 = vmatpush1.bf16.msra.mxu0 %v5159_v22 }
 0x376   :  { %3334 = vmatprep.subr.bf16.mxu1 %v5042_v56  ;;  %3374 = vmatprep.subr.bf16.mxu0 %v5044_v27 }
 0x3cb   :  { %v2268_v36 = vpop.f32.mrb[16].mxu1  ;;  %v2308_v37 = vpop.f32.mrb[20].mxu0 }
 0x3cc   :  { %v2269_v38 = vadd.f32 %v2268_v36, %v1573_v33  ;;  %v2270_v39 = vpop.f32.mrb[17].mxu1  ;;  %v2310_v41 = vpop.f32.mrb[21].mxu0  ;;  %v2309_v50 = vadd.f32 %v2308_v37, %v1577_v48  ;;  %v2445_v37 = vld [vmem:[#allocation8 + $0x470] sm:$0xff] }
 0x3cd   :  { %v2271_v42 = vpop.f32.mrb[18].mxu1  ;;  %v2312_v43 = vpop.f32.mrb[22].mxu0  ;;  %v2311_v62 = vadd.f32 %v2310_v41, %v1581_v40  ;;  %v2449_v41 = vld [vmem:[#allocation8 + $0x490] sm:$0xff]  ;;  %v5049_v47 = vcombine.low %v2441_v20, %v2445_v37 }
 0x3ce   :  { %v5033_v44 = vmul.f32 -1.442695, %v2269_v38  ;;  %v2272_v45 = vpop.f32.mrb[19].mxu1  ;;  %v2313_v46 = vpop.f32.mrb[23].mxu0  ;;  %v2446_v38 = vld [vmem:[#allocation8 + $0x478] sm:$0xff]  ;;  %v5050_v42 = vcombine.high %v2441_v20, %v2445_v37 }
 0x3cf   :  { %v5034_v49 = vmul.f32 -1.442695, %v2311_v62  ;;  %v5052_v43 = vcombine.high %v2442_v30, %v2446_v38  ;;  %v2450_v45 = vld [vmem:[#allocation8 + $0x498] sm:$0xff]  ;;  %v5051_v62 = vcombine.low %v2442_v30, %v2446_v38  ;;  %v2505_v30 = vld [vmem:[#allocation8 + $0x650] sm:$0xff] }
 0x3d0   :  { %5573 = vpow2.f32 %v5033_v44  ;;  %v2453_v44 = vld [vmem:[#allocation8 + $0x4b0] sm:$0xff]  ;;  %v2454_v46 = vld [vmem:[#allocation8 + $0x4b8] sm:$0xff] }
 0x3d1   :  { %5575 = vpow2.f32 %v5034_v49  ;;  %v5058_v48 = vcombine.high %v2449_v41, %v2453_v44  ;;  %v5060_v49 = vcombine.high %v2450_v45, %v2454_v46  ;;  %v5057_v52 = vcombine.low %v2449_v41, %v2453_v44  ;;  %v2509_v38 = vld [vmem:[#allocation8 + $0x670] sm:$0xff]  ;;  %v2510_v41 = vld [vmem:[#allocation8 + $0x678] sm:$0xff] }
 0x3d2   :  { %5577 = vtanh.f32 %v2309_v50  ;;  %v2457_v50 = vld [vmem:[#allocation8 + $0x4d0] sm:$0xff]  ;;  %v5059_v53 = vcombine.low %v2450_v45, %v2454_v46  ;;  %v5114_v44 = vcombine.high %v2505_v30, %v2509_v38 }
 0x3d3   :  { %v2513_v46 = vld [vmem:[#allocation8 + $0x690] sm:$0xff] }
 0x3da   :  { %v5574_v51 = vpop.eup %5573 }
 0x3db   :  { %v2399_v55 = vadd.f32 1.0, %v5574_v51  ;;  %v5576_v60 = vpop.eup %5575  ;;  %v2461_v51 = vld [vmem:[#allocation8 + $0x4f0] sm:$0xff] }
 0x3dc   :  { %v2406_v63 = vadd.f32 1.0, %v5576_v60  ;;  %v5578_v57 = vpop.eup %5577  ;;  %v2462_v60 = vld [vmem:[#allocation8 + $0x4f8] sm:$0xff]  ;;  %v5066_v54 = vcombine.high %v2457_v50, %v2461_v51 }
 0x3dd   :  { %5579 = vrcp.f32 %v2399_v55  ;;  %v2458_v55 = vld [vmem:[#allocation8 + $0x4d8] sm:$0xff] }
 0x3de   :  { %5581 = vrcp.f32 %v2406_v63  ;;  %v5068_v58 = vcombine.high %v2458_v55, %v2462_v60  ;;  %v2466_v63 = vld [vmem:[#allocation8 + $0x518] sm:$0xff] }
 0x3e7   :  { %v5580_v1 = vpop.eup %5579 }
 0x3e8   :  { %v2409_v2 = vmul.f32 %v5580_v1, %v5578_v57  ;;  %v5582_v3 = vpop.eup %5581  ;;  %v2470_v57 = vld [vmem:[#allocation8 + $0x538] sm:$0xff]  ;;  %v5065_v1 = vcombine.low %v2457_v50, %v2461_v51 }
 0x3ea   :  { %5583 = vtanh.f32 %v2409_v2  ;;  %v5067_v2 = vcombine.low %v2458_v55, %v2462_v60  ;;  %v2521_v60 = vld [vmem:[#allocation8 + $0x6d0] sm:$0xff] }
 0x3f4   :  { %v5584_v5 = vpop.eup %5583 }
 0x3f5   :  { %v2411_v6 = vmul.f32 %v5584_v5, %v5582_v3  ;;  %v5076_v5 = vcombine.high %v2466_v63, %v2470_v57 }
 0x3f7   :  { %v6234_v40 = vpack.c.bf16 %v2411_v6, %v2411_v6  ;;  %v2473_v6 = vld [vmem:[#allocation8 + $0x550] sm:$0xff] }
 0x40b   :  { %v2349_v61 = vpop.f32.mrb[20].mxu1  ;;  %v2389_v23 = vpop.f32.mrb[24].mxu0 }
 0x40c   :  { %v2350_v24 = vadd.f32 %v2349_v61, %v1585_v7  ;;  %v2351_v25 = vpop.f32.mrb[21].mxu1  ;;  %v2391_v29 = vpop.f32.mrb[25].mxu0  ;;  %v2390_v18 = vadd.f32 %v2389_v23, %v1589_v17  ;;  %v2474_v7 = vld [vmem:[#allocation8 + $0x558] sm:$0xff]  ;;  %v5075_v23 = vcombine.low %v2466_v63, %v2470_v57  ;;  %v2493_v17 = vld [vmem:[#allocation8 + $0x5f0] sm:$0xff] }
 0x40d   :  { %v2352_v9 = vpop.f32.mrb[22].mxu1  ;;  %v2393_v10 = vpop.f32.mrb[26].mxu0  ;;  %v2392_v14 = vadd.f32 %v2391_v29, %v1593_v28  ;;  %v5084_v25 = vcombine.high %v2474_v7, %v2478_v8  ;;  %v2481_v28 = vld [vmem:[#allocation8 + $0x590] sm:$0xff] }
 0x40e   :  { %v5035_v11 = vmul.f32 -1.442695, %v2350_v24  ;;  %v2353_v12 = vpop.f32.mrb[23].mxu1  ;;  %v2394_v13 = vpop.f32.mrb[27].mxu0  ;;  %v5082_v24 = vcombine.high %v2473_v6, %v2477_v0  ;;  %v2485_v29 = vld [vmem:[#allocation8 + $0x5b0] sm:$0xff]  ;;  %v2482_v9 = vld [vmem:[#allocation8 + $0x598] sm:$0xff] }
 0x40f   :  { %v5036_v15 = vmul.f32 -1.442695, %v2392_v14  ;;  %v2486_v10 = vld [vmem:[#allocation8 + $0x5b8] sm:$0xff]  ;;  %v5083_v12 = vcombine.low %v2474_v7, %v2478_v8  ;;  %v5090_v13 = vcombine.high %v2481_v28, %v2485_v29  ;;  %v2489_v14 = vld [vmem:[#allocation8 + $0x5d0] sm:$0xff] }
 0x410   :  { %5585 = vpow2.f32 %v5035_v11  ;;  %v5081_v11 = vcombine.low %v2473_v6, %v2477_v0  ;;  %v5092_v35 = vcombine.high %v2482_v9, %v2486_v10  ;;  %v2529_v57 = vld [vmem:[#allocation8 + $0x710] sm:$0xff] }
 0x411   :  { %5587 = vpow2.f32 %v5036_v15  ;;  %v2490_v15 = vld [vmem:[#allocation8 + $0x5d8] sm:$0xff]  ;;  %v2537_v8 = vld [vmem:[#allocation8 + $0x750] sm:$0xff] }
 0x412   :  { %5589 = vtanh.f32 %v2390_v18  ;;  %v2494_v18 = vld [vmem:[#allocation8 + $0x5f8] sm:$0xff] }
 0x41a   :  { %v5586_v19 = vpop.eup %5585 }
 0x41b   :  { %v2415_v21 = vadd.f32 1.0, %v5586_v19  ;;  %v5588_v22 = vpop.eup %5587  ;;  %v5089_v19 = vcombine.low %v2481_v28, %v2485_v29 }
 0x41c   :  { %v2422_v56 = vadd.f32 1.0, %v5588_v22  ;;  %v5590_v27 = vpop.eup %5589  ;;  %v5098_v22 = vcombine.high %v2489_v14, %v2493_v17 }
 0x41d   :  { %5591 = vrcp.f32 %v2415_v21  ;;  %v5091_v21 = vcombine.low %v2482_v9, %v2486_v10  ;;  %v2545_v10 = vld [vmem:[#allocation8 + $0x790] sm:$0xff] }
 0x41e   :  { %5593 = vrcp.f32 %v2422_v56  ;;  %v5100_v56 = vcombine.high %v2490_v15, %v2494_v18 }
 0x427   :  { %v5592_v31 = vpop.eup %5591 }
 0x428   :  { %v2425_v32 = vmul.f32 %v5592_v31, %v5590_v27  ;;  %v5594_v33 = vpop.eup %5593  ;;  %v2497_v27 = vld [vmem:[#allocation8 + $0x610] sm:$0xff] }
 0x429   :  { %v2501_v31 = vld [vmem:[#allocation8 + $0x630] sm:$0xff] }
 0x42a   :  { %5595 = vtanh.f32 %v2425_v32  ;;  %v2498_v32 = vld [vmem:[#allocation8 + $0x618] sm:$0xff]  ;;  %v5106_v20 = vcombine.high %v2497_v27, %v2501_v31 }
 0x434   :  { %v5596_v34 = vpop.eup %5595 }
 0x435   :  { %v2427_v36 = vmul.f32 %v5596_v34, %v5594_v33  ;;  %v2502_v33 = vld [vmem:[#allocation8 + $0x638] sm:$0xff]  ;;  %v5097_v34 = vcombine.low %v2489_v14, %v2493_v17 }
 0x436   :  { %v5108_v37 = vcombine.high %v2498_v32, %v2502_v33 }
 0x437   :  { %v2429_v39 = vpack.c.bf16 %v2427_v36, %v2427_v36  ;;  %v5099_v36 = vcombine.low %v2490_v15, %v2494_v18  ;;  %v2553_v18 = vld [vmem:[#allocation8 + $0x7d0] sm:$0xff] }
 0x439   :  { %3285 = vmatprep.mubr.bf16.mxu1 %v2429_v39  ;;  %3325 = vmatprep.mubr.bf16.mxu0 %v2429_v39 }
 0x43a   :  { %3286 = vmatmul.mubr.bf16.vlgmr.msra.gmra.mrb[24].mxu1 %v6234_v40  ;;  %3326 = vmatmul.mubr.bf16.vlgmr.msra.gmra.mrb[28].mxu0 %v6234_v40 }
 0x43b   :  { %3335 = vmatpush1.bf16.msra.mxu1 %v5041_v59  ;;  %3375 = vmatpush1.bf16.msra.mxu0 %v5043_v26  ;;  %v2465_v59 = vld [vmem:[#allocation8 + $0x510] sm:$0xff] }
 0x43c   :  { %3366 = vmatprep.mubr.bf16.mxu1 %v2429_v39  ;;  %3406 = vmatprep.mubr.bf16.mxu0 %v2429_v39  ;;  %v2469_v26 = vld [vmem:[#allocation8 + $0x530] sm:$0xff]  ;;  %v2506_v39 = vld [vmem:[#allocation8 + $0x658] sm:$0xff] }
 0x43d   :  { %3336 = vmatprep.subr.bf16.mxu1 %v5050_v42  ;;  %3376 = vmatprep.subr.bf16.mxu0 %v5052_v43  ;;  %v5074_v3 = vcombine.high %v2465_v59, %v2469_v26  ;;  %v5073_v61 = vcombine.low %v2465_v59, %v2469_v26  ;;  %v5105_v42 = vcombine.low %v2497_v27, %v2501_v31 }
 0x43e   :  { %v5107_v43 = vcombine.low %v2498_v32, %v2502_v33  ;;  %v5116_v45 = vcombine.high %v2506_v39, %v2510_v41  ;;  %v5115_v50 = vcombine.low %v2506_v39, %v2510_v41  ;;  %v3455_v39 = vld [vmem:[#allocation8 + $0x828] sm:$0xff]  ;;  %v3458_v41 = vld [vmem:[#allocation8 + $0x840] sm:$0xff] }
 0x43f   :  { %3337 = vmatpush1.bf16.msra.mxu1 %v5049_v47  ;;  %3377 = vmatpush1.bf16.msra.mxu0 %v5051_v62  ;;  %v2517_v47 = vld [vmem:[#allocation8 + $0x6b0] sm:$0xff]  ;;  %v2514_v62 = vld [vmem:[#allocation8 + $0x698] sm:$0xff] }
 0x440   :  { %3338 = vmatprep.subr.bf16.mxu1 %v5058_v48  ;;  %3378 = vmatprep.subr.bf16.mxu0 %v5060_v49  ;;  %v2518_v48 = vld [vmem:[#allocation8 + $0x6b8] sm:$0xff]  ;;  %v5113_v49 = vcombine.low %v2505_v30, %v2509_v38  ;;  %v5122_v51 = vcombine.high %v2513_v46, %v2517_v47 }
 0x441   :  { %v5124_v55 = vcombine.high %v2514_v62, %v2518_v48  ;;  %v5123_v59 = vcombine.low %v2514_v62, %v2518_v48  ;;  %v3466_v62 = vld [vmem:[#allocation8 + $0x880] sm:$0xff] }
 0x443   :  { %3339 = vmatpush1.bf16.msra.mxu1 %v5057_v52  ;;  %3379 = vmatpush1.bf16.msra.mxu0 %v5059_v53  ;;  %v2525_v52 = vld [vmem:[#allocation8 + $0x6f0] sm:$0xff]  ;;  %v2522_v53 = vld [vmem:[#allocation8 + $0x6d8] sm:$0xff] }
 0x444   :  { %3340 = vmatprep.subr.bf16.mxu1 %v5066_v54  ;;  %3380 = vmatprep.subr.bf16.mxu0 %v5068_v58  ;;  %v2526_v54 = vld [vmem:[#allocation8 + $0x6f8] sm:$0xff]  ;;  %v5121_v58 = vcombine.low %v2513_v46, %v2517_v47  ;;  %v5130_v26 = vcombine.high %v2521_v60, %v2525_v52  ;;  %v3459_v46 = vld [vmem:[#allocation8 + $0x848] sm:$0xff] }
 0x445   :  { %v5132_v63 = vcombine.high %v2522_v53, %v2526_v54  ;;  %v5131_v6 = vcombine.low %v2522_v53, %v2526_v54  ;;  %v3463_v47 = vld [vmem:[#allocation8 + $0x868] sm:$0xff]  ;;  %v3474_v53 = vld [vmem:[#allocation8 + $0x8c0] sm:$0xff] }
 0x446   :  { %v5180_v48 = vcombine.high %v3459_v46, %v3463_v47  ;;  %v3478_v54 = vld [vmem:[#allocation8 + $0x8e0] sm:$0xff] }
 0x447   :  { %3341 = vmatpush1.bf16.msra.mxu1 %v5065_v1  ;;  %3381 = vmatpush1.bf16.msra.mxu0 %v5067_v2  ;;  %v2533_v1 = vld [vmem:[#allocation8 + $0x730] sm:$0xff]  ;;  %v2530_v2 = vld [vmem:[#allocation8 + $0x718] sm:$0xff] }
 0x448   :  { %3342 = vmatprep.subr.bf16.mxu1 %v5074_v3  ;;  %3382 = vmatprep.subr.bf16.mxu0 %v5076_v5  ;;  %v2534_v3 = vld [vmem:[#allocation8 + $0x738] sm:$0xff]  ;;  %v5129_v5 = vcombine.low %v2521_v60, %v2525_v52  ;;  %v5138_v0 = vcombine.high %v2529_v57, %v2533_v1 }
 0x449   :  { %v5140_v7 = vcombine.high %v2530_v2, %v2534_v3  ;;  %v5139_v28 = vcombine.low %v2530_v2, %v2534_v3  ;;  %v3482_v2 = vld [vmem:[#allocation8 + $0x900] sm:$0xff] }
 0x44a   :  { %v3486_v3 = vld [vmem:[#allocation8 + $0x920] sm:$0xff] }
 0x44b   :  { %3343 = vmatpush1.bf16.msra.mxu1 %v5073_v61  ;;  %3383 = vmatpush1.bf16.msra.mxu0 %v5075_v23  ;;  %v2541_v61 = vld [vmem:[#allocation8 + $0x770] sm:$0xff]  ;;  %v2538_v23 = vld [vmem:[#allocation8 + $0x758] sm:$0xff] }
 0x44c   :  { %3344 = vmatprep.subr.bf16.mxu1 %v5082_v24  ;;  %3384 = vmatprep.subr.bf16.mxu0 %v5084_v25  ;;  %v2542_v24 = vld [vmem:[#allocation8 + $0x778] sm:$0xff]  ;;  %v5137_v25 = vcombine.low %v2529_v57, %v2533_v1  ;;  %v5146_v29 = vcombine.high %v2537_v8, %v2541_v61  ;;  %v5194_v57 = vcombine.high %v3474_v53, %v3478_v54 }
 0x44d   :  { %v5148_v9 = vcombine.high %v2538_v23, %v2542_v24  ;;  %v5147_v14 = vcombine.low %v2538_v23, %v2542_v24  ;;  %v5201_v23 = vcombine.low %v3482_v2, %v3486_v3 }
 0x44f   :  { %3345 = vmatpush1.bf16.msra.mxu1 %v5081_v11  ;;  %3385 = vmatpush1.bf16.msra.mxu0 %v5083_v12  ;;  %v2549_v11 = vld [vmem:[#allocation8 + $0x7b0] sm:$0xff]  ;;  %v2546_v12 = vld [vmem:[#allocation8 + $0x798] sm:$0xff] }
 0x450   :  { %3346 = vmatprep.subr.bf16.mxu1 %v5090_v13  ;;  %3386 = vmatprep.subr.bf16.mxu0 %v5092_v35  ;;  %v2550_v13 = vld [vmem:[#allocation8 + $0x7b8] sm:$0xff]  ;;  %v5145_v35 = vcombine.low %v2537_v8, %v2541_v61  ;;  %v5154_v17 = vcombine.high %v2545_v10, %v2549_v11  ;;  %v5202_v8 = vcombine.high %v3482_v2, %v3486_v3  ;;  %v3543_v2 = vld [vmem:[#allocation8 + $0xae8] sm:$0xff] }
 0x451   :  { %v5156_v15 = vcombine.high %v2546_v12, %v2550_v13  ;;  %v5155_v27 = vcombine.low %v2546_v12, %v2550_v13 }
 0x453   :  { %3347 = vmatpush1.bf16.msra.mxu1 %v5089_v19  ;;  %3387 = vmatpush1.bf16.msra.mxu0 %v5091_v21  ;;  %v2557_v19 = vld [vmem:[#allocation8 + $0x7f0] sm:$0xff]  ;;  %v2554_v21 = vld [vmem:[#allocation8 + $0x7d8] sm:$0xff] }
 0x454   :  { %3348 = vmatprep.subr.bf16.mxu1 %v5098_v22  ;;  %3388 = vmatprep.subr.bf16.mxu0 %v5100_v56  ;;  %v2558_v22 = vld [vmem:[#allocation8 + $0x7f8] sm:$0xff]  ;;  %v5153_v56 = vcombine.low %v2545_v10, %v2549_v11  ;;  %v5162_v31 = vcombine.high %v2553_v18, %v2557_v19  ;;  %v5161_v33 = vcombine.low %v2553_v18, %v2557_v19  ;;  %v3495_v10 = vld [vmem:[#allocation8 + $0x968] sm:$0xff] }
 0x455   :  { %v5164_v32 = vcombine.high %v2554_v21, %v2558_v22  ;;  %v3503_v18 = vld [vmem:[#allocation8 + $0x9a8] sm:$0xff] }
 0x457   :  { %3349 = vmatpush1.bf16.msra.mxu1 %v5097_v34  ;;  %3389 = vmatpush1.bf16.msra.mxu0 %v5099_v36  ;;  %v5163_v34 = vcombine.low %v2554_v21, %v2558_v22  ;;  %v3450_v36 = vld [vmem:[#allocation8 + $0x800] sm:$0xff] }
 0x458   :  { %3350 = vmatprep.subr.bf16.mxu1 %v5106_v20  ;;  %3390 = vmatprep.subr.bf16.mxu0 %v5108_v37  ;;  %v3454_v20 = vld [vmem:[#allocation8 + $0x820] sm:$0xff]  ;;  %v3451_v37 = vld [vmem:[#allocation8 + $0x808] sm:$0xff] }
 0x459   :  { %v5169_v30 = vcombine.low %v3450_v36, %v3454_v20  ;;  %v5170_v38 = vcombine.high %v3450_v36, %v3454_v20 }
 0x45b   :  { %3351 = vmatpush1.bf16.msra.mxu1 %v5105_v42  ;;  %3391 = vmatpush1.bf16.msra.mxu0 %v5107_v43  ;;  %v3462_v42 = vld [vmem:[#allocation8 + $0x860] sm:$0xff]  ;;  %v5171_v43 = vcombine.low %v3451_v37, %v3455_v39 }
 0x45c   :  { %3352 = vmatprep.subr.bf16.mxu1 %v5114_v44  ;;  %3392 = vmatprep.subr.bf16.mxu0 %v5116_v45  ;;  %v5172_v44 = vcombine.high %v3451_v37, %v3455_v39  ;;  %v5178_v45 = vcombine.high %v3458_v41, %v3462_v42  ;;  %v3514_v37 = vld [vmem:[#allocation8 + $0xa00] sm:$0xff] }
 0x45f   :  { %3353 = vmatpush1.bf16.msra.mxu1 %v5113_v49  ;;  %3393 = vmatpush1.bf16.msra.mxu0 %v5115_v50  ;;  %v3470_v49 = vld [vmem:[#allocation8 + $0x8a0] sm:$0xff]  ;;  %v3467_v50 = vld [vmem:[#allocation8 + $0x888] sm:$0xff] }
 0x460   :  { %3354 = vmatprep.subr.bf16.mxu1 %v5122_v51  ;;  %3394 = vmatprep.subr.bf16.mxu0 %v5124_v55  ;;  %v3471_v51 = vld [vmem:[#allocation8 + $0x8a8] sm:$0xff]  ;;  %v5179_v55 = vcombine.low %v3459_v46, %v3463_v47  ;;  %v5186_v60 = vcombine.high %v3466_v62, %v3470_v49  ;;  %v3526_v46 = vld [vmem:[#allocation8 + $0xa60] sm:$0xff] }
 0x461   :  { %v5188_v52 = vcombine.high %v3467_v50, %v3471_v51  ;;  %v3523_v47 = vld [vmem:[#allocation8 + $0xa48] sm:$0xff] }
 0x463   :  { %3355 = vmatpush1.bf16.msra.mxu1 %v5121_v58  ;;  %3395 = vmatpush1.bf16.msra.mxu0 %v5123_v59  ;;  %v3475_v58 = vld [vmem:[#allocation8 + $0x8c8] sm:$0xff] }
 0x464   :  { %3356 = vmatprep.subr.bf16.mxu1 %v5130_v26  ;;  %3396 = vmatprep.subr.bf16.mxu0 %v5132_v63  ;;  %v3479_v59 = vld [vmem:[#allocation8 + $0x8e8] sm:$0xff]  ;;  %v5185_v26 = vcombine.low %v3466_v62, %v3470_v49  ;;  %v5187_v63 = vcombine.low %v3467_v50, %v3471_v51 }
 0x465   :  { %v5196_v1 = vcombine.high %v3475_v58, %v3479_v59 }
 0x467   :  { %3357 = vmatpush1.bf16.msra.mxu1 %v5129_v5  ;;  %3397 = vmatpush1.bf16.msra.mxu0 %v5131_v6  ;;  %v3483_v5 = vld [vmem:[#allocation8 + $0x908] sm:$0xff] }
 0x468   :  { %3358 = vmatprep.subr.bf16.mxu1 %v5138_v0  ;;  %3398 = vmatprep.subr.bf16.mxu0 %v5140_v7  ;;  %v3487_v6 = vld [vmem:[#allocation8 + $0x928] sm:$0xff]  ;;  %v5193_v0 = vcombine.low %v3474_v53, %v3478_v54  ;;  %v5195_v7 = vcombine.low %v3475_v58, %v3479_v59 }
 0x469   :  { %v5204_v61 = vcombine.high %v3483_v5, %v3487_v6  ;;  %v5203_v24 = vcombine.low %v3483_v5, %v3487_v6  ;;  %v3535_v53 = vld [vmem:[#allocation8 + $0xaa8] sm:$0xff] }
 0x46b   :  { %3359 = vmatpush1.bf16.msra.mxu1 %v5137_v25  ;;  %3399 = vmatpush1.bf16.msra.mxu0 %v5139_v28  ;;  %v3490_v25 = vld [vmem:[#allocation8 + $0x940] sm:$0xff] }
 0x46c   :  { %3360 = vmatprep.subr.bf16.mxu1 %v5146_v29  ;;  %3400 = vmatprep.subr.bf16.mxu0 %v5148_v9  ;;  %v3494_v28 = vld [vmem:[#allocation8 + $0x960] sm:$0xff]  ;;  %v3491_v29 = vld [vmem:[#allocation8 + $0x948] sm:$0xff] }
 0x46d   :  { %v5210_v9 = vcombine.high %v3490_v25, %v3494_v28  ;;  %v5209_v11 = vcombine.low %v3490_v25, %v3494_v28  ;;  %v5211_v12 = vcombine.low %v3491_v29, %v3495_v10  ;;  %v5212_v13 = vcombine.high %v3491_v29, %v3495_v10  ;;  %v3554_v29 = vld [vmem:[#allocation8 + $0xb40] sm:$0xff]  ;;  %v3555_v10 = vld [vmem:[#allocation8 + $0xb48] sm:$0xff] }
 0x46f   :  { %3361 = vmatpush1.bf16.msra.mxu1 %v5145_v35  ;;  %3401 = vmatpush1.bf16.msra.mxu0 %v5147_v14  ;;  %v3498_v35 = vld [vmem:[#allocation8 + $0x980] sm:$0xff] }
 0x470   :  { %3362 = vmatprep.subr.bf16.mxu1 %v5154_v17  ;;  %3402 = vmatprep.subr.bf16.mxu0 %v5156_v15  ;;  %v3502_v14 = vld [vmem:[#allocation8 + $0x9a0] sm:$0xff]  ;;  %v3499_v17 = vld [vmem:[#allocation8 + $0x988] sm:$0xff] }
 0x471   :  { %v5218_v15 = vcombine.high %v3498_v35, %v3502_v14  ;;  %v5217_v19 = vcombine.low %v3498_v35, %v3502_v14  ;;  %v5219_v21 = vcombine.low %v3499_v17, %v3503_v18  ;;  %v5220_v22 = vcombine.high %v3499_v17, %v3503_v18  ;;  %v3562_v35 = vld [vmem:[#allocation8 + $0xb80] sm:$0xff] }
 0x472   :  { %v3566_v14 = vld [vmem:[#allocation8 + $0xba0] sm:$0xff] }
 0x473   :  { %3363 = vmatpush1.bf16.msra.mxu1 %v5153_v56  ;;  %3403 = vmatpush1.bf16.msra.mxu0 %v5155_v27  ;;  %v3506_v56 = vld [vmem:[#allocation8 + $0x9c0] sm:$0xff]  ;;  %v5282_v18 = vcombine.high %v3562_v35, %v3566_v14 }
 0x474   :  { %3364 = vmatprep.subr.bf16.mxu1 %v5162_v31  ;;  %3404 = vmatprep.subr.bf16.mxu0 %v5164_v32  ;;  %v3510_v27 = vld [vmem:[#allocation8 + $0x9e0] sm:$0xff]  ;;  %v3507_v31 = vld [vmem:[#allocation8 + $0x9c8] sm:$0xff] }
 0x475   :  { %v5226_v32 = vcombine.high %v3506_v56, %v3510_v27 }
 0x477   :  { %3365 = vmatpush1.bf16.msra.mxu1 %v5161_v33  ;;  %3405 = vmatpush1.bf16.msra.mxu0 %v5163_v34  ;;  %v3511_v33 = vld [vmem:[#allocation8 + $0x9e8] sm:$0xff]  ;;  %v5225_v34 = vcombine.low %v3506_v56, %v3510_v27  ;;  %v3574_v27 = vld [vmem:[#allocation8 + $0xbe0] sm:$0xff] }
 0x478   :  { %4272 = vmatprep.subr.bf16.mxu1 %v5170_v38  ;;  %4312 = vmatprep.subr.bf16.mxu0 %v5172_v44  ;;  %v5227_v36 = vcombine.low %v3507_v31, %v3511_v33  ;;  %v5228_v20 = vcombine.high %v3507_v31, %v3511_v33  ;;  %v3515_v38 = vld [vmem:[#allocation8 + $0xa08] sm:$0xff]  ;;  %v5281_v33 = vcombine.low %v3562_v35, %v3566_v14  ;;  %v6274_v35 = vld [vmem:[#allocation10 + $0x18] sm:$0xff] }
 0x479   :  { %v3571_v31 = vld [vmem:[#allocation8 + $0xbc8] sm:$0xff] }
 0x47a   :  { %3367 = vmatmul.mubr.bf16.vlgmr.msra.gmra.mrb[28].mxu1 %v6234_v40  ;;  %3407 = vmatmul.mubr.bf16.vlgmr.msra.gmra.mrb[32].mxu0 %v6234_v40  ;;  %v5177_v40 = vcombine.low %v3458_v41, %v3462_v42  ;;  %v3519_v41 = vld [vmem:[#allocation8 + $0xa28] sm:$0xff] }
 0x47b   :  { %4273 = vmatpush1.bf16.msra.mxu1 %v5169_v30  ;;  %4313 = vmatpush1.bf16.msra.mxu0 %v5171_v43  ;;  %v3518_v30 = vld [vmem:[#allocation8 + $0xa20] sm:$0xff]  ;;  %v5235_v43 = vcombine.low %v3515_v38, %v3519_v41  ;;  %v5236_v44 = vcombine.high %v3515_v38, %v3519_v41  ;;  %v6246_v38 = vld [vmem:[#allocation8 + $0x810] sm:$0xff]  ;;  %v6250_v41 = vld [vmem:[#allocation8 + $0x818] sm:$0xff] }
 0x47c   :  { %4274 = vmatprep.subr.bf16.mxu1 %v5178_v45  ;;  %4314 = vmatprep.subr.bf16.mxu0 %v5180_v48  ;;  %v5234_v39 = vcombine.high %v3514_v37, %v3518_v30  ;;  %v5233_v42 = vcombine.low %v3514_v37, %v3518_v30  ;;  %v3522_v45 = vld [vmem:[#allocation8 + $0xa40] sm:$0xff]  ;;  %v3527_v48 = vld [vmem:[#allocation8 + $0xa68] sm:$0xff] }
 0x47d   :  { %v5242_v62 = vcombine.high %v3522_v45, %v3526_v46  ;;  %v5241_v49 = vcombine.low %v3522_v45, %v3526_v46  ;;  %v5243_v50 = vcombine.low %v3523_v47, %v3527_v48  ;;  %v5244_v51 = vcombine.high %v3523_v47, %v3527_v48 }
 0x47e   :  { %v2561_v47 = vsub.s32 2, %v6146_v4 }
 0x47f   :  { %4275 = vmatpush1.bf16.msra.mxu1 %v5177_v40  ;;  %4315 = vmatpush1.bf16.msra.mxu0 %v5179_v55  ;;  %v3530_v40 = vld [vmem:[#allocation8 + $0xa80] sm:$0xff] }
 0x480   :  { %4276 = vmatprep.subr.bf16.mxu1 %v5186_v60  ;;  %4316 = vmatprep.subr.bf16.mxu0 %v5188_v52  ;;  %v3534_v55 = vld [vmem:[#allocation8 + $0xaa0] sm:$0xff]  ;;  %v3531_v60 = vld [vmem:[#allocation8 + $0xa88] sm:$0xff] }
 0x481   :  { %v5250_v52 = vcombine.high %v3530_v40, %v3534_v55  ;;  %v5249_v54 = vcombine.low %v3530_v40, %v3534_v55  ;;  %v5251_v58 = vcombine.low %v3531_v60, %v3535_v53  ;;  %v5252_v59 = vcombine.high %v3531_v60, %v3535_v53 }
 0x483   :  { %4277 = vmatpush1.bf16.msra.mxu1 %v5185_v26  ;;  %4317 = vmatpush1.bf16.msra.mxu0 %v5187_v63  ;;  %v3538_v26 = vld [vmem:[#allocation8 + $0xac0] sm:$0xff] }
 0x484   :  { %4278 = vmatprep.subr.bf16.mxu1 %v5194_v57  ;;  %4318 = vmatprep.subr.bf16.mxu0 %v5196_v1  ;;  %v3542_v63 = vld [vmem:[#allocation8 + $0xae0] sm:$0xff]  ;;  %v3539_v57 = vld [vmem:[#allocation8 + $0xac8] sm:$0xff] }
 0x485   :  { %v5258_v1 = vcombine.high %v3538_v26, %v3542_v63  ;;  %v5257_v3 = vcombine.low %v3538_v26, %v3542_v63  ;;  %v5259_v5 = vcombine.low %v3539_v57, %v3543_v2  ;;  %v5260_v6 = vcombine.high %v3539_v57, %v3543_v2 }
 0x487   :  { %4279 = vmatpush1.bf16.msra.mxu1 %v5193_v0  ;;  %4319 = vmatpush1.bf16.msra.mxu0 %v5195_v7  ;;  %v3546_v0 = vld [vmem:[#allocation8 + $0xb00] sm:$0xff] }
 0x488   :  { %4280 = vmatprep.subr.bf16.mxu1 %v5202_v8  ;;  %4320 = vmatprep.subr.bf16.mxu0 %v5204_v61  ;;  %v3550_v7 = vld [vmem:[#allocation8 + $0xb20] sm:$0xff]  ;;  %v3547_v8 = vld [vmem:[#allocation8 + $0xb08] sm:$0xff] }
 0x489   :  { %v5266_v61 = vcombine.high %v3546_v0, %v3550_v7 }
 0x48b   :  { %4281 = vmatpush1.bf16.msra.mxu1 %v5201_v23  ;;  %4321 = vmatpush1.bf16.msra.mxu0 %v5203_v24  ;;  %v3551_v23 = vld [vmem:[#allocation8 + $0xb28] sm:$0xff]  ;;  %v5265_v24 = vcombine.low %v3546_v0, %v3550_v7 }
 0x48c   :  { %4282 = vmatprep.subr.bf16.mxu1 %v5210_v9  ;;  %4322 = vmatprep.subr.bf16.mxu0 %v5212_v13  ;;  %v5267_v25 = vcombine.low %v3547_v8, %v3551_v23  ;;  %v5268_v28 = vcombine.high %v3547_v8, %v3551_v23  ;;  %v3558_v9 = vld [vmem:[#allocation8 + $0xb60] sm:$0xff]  ;;  %v3559_v13 = vld [vmem:[#allocation8 + $0xb68] sm:$0xff] }
 0x48d   :  { %v5275_v17 = vcombine.low %v3555_v10, %v3559_v13 }
 0x48f   :  { %4283 = vmatpush1.bf16.msra.mxu1 %v5209_v11  ;;  %4323 = vmatpush1.bf16.msra.mxu0 %v5211_v12  ;;  %v5273_v11 = vcombine.low %v3554_v29, %v3558_v9  ;;  %v5274_v12 = vcombine.high %v3554_v29, %v3558_v9 }
 0x490   :  { %4284 = vmatprep.subr.bf16.mxu1 %v5218_v15  ;;  %4324 = vmatprep.subr.bf16.mxu0 %v5220_v22  ;;  %v5276_v15 = vcombine.high %v3555_v10, %v3559_v13  ;;  %v3570_v22 = vld [vmem:[#allocation8 + $0xbc0] sm:$0xff] }
 0x491   :  { %v5289_v37 = vcombine.low %v3570_v22, %v3574_v27 }
 0x493   :  { %4285 = vmatpush1.bf16.msra.mxu1 %v5217_v19  ;;  %4325 = vmatpush1.bf16.msra.mxu0 %v5219_v21  ;;  %v3563_v19 = vld [vmem:[#allocation8 + $0xb88] sm:$0xff] }
 0x494   :  { %4286 = vmatprep.subr.bf16.mxu1 %v5226_v32  ;;  %4326 = vmatprep.subr.bf16.mxu0 %v5228_v20  ;;  %v3567_v21 = vld [vmem:[#allocation8 + $0xba8] sm:$0xff] }
 0x495   :  { %v5284_v56 = vcombine.high %v3563_v19, %v3567_v21  ;;  %v3575_v32 = vld [vmem:[#allocation8 + $0xbe8] sm:$0xff] }
 0x496   :  { %v5292_v20 = vcombine.high %v3571_v31, %v3575_v32  ;;  %v5291_v30 = vcombine.low %v3571_v31, %v3575_v32 }
 0x497   :  { %4287 = vmatpush1.bf16.msra.mxu1 %v5225_v34  ;;  %4327 = vmatpush1.bf16.msra.mxu0 %v5227_v36  ;;  %v5283_v34 = vcombine.low %v3563_v19, %v3567_v21  ;;  %v5290_v36 = vcombine.high %v3570_v22, %v3574_v27 }
 0x498   :  { %4288 = vmatprep.subr.bf16.mxu1 %v5234_v39  ;;  %4328 = vmatprep.subr.bf16.mxu0 %v5236_v44  ;;  %v6248_v39 = vld [vmem:[#allocation8 + $0x830] sm:$0xff] }
 0x499   :  { %v5173_v44 = vcombine.low %v6246_v38, %v6248_v39 }
 0x49b   :  { %4289 = vmatpush1.bf16.msra.mxu1 %v5233_v42  ;;  %4329 = vmatpush1.bf16.msra.mxu0 %v5235_v43  ;;  %v5174_v42 = vcombine.high %v6246_v38, %v6248_v39  ;;  %v6254_v43 = vld [vmem:[#allocation8 + $0x838] sm:$0xff] }
 0x49c   :  { %4290 = vmatprep.subr.bf16.mxu1 %v5242_v62  ;;  %4330 = vmatprep.subr.bf16.mxu0 %v5244_v51  ;;  %v5175_v45 = vcombine.low %v6250_v41, %v6254_v43  ;;  %v5176_v46 = vcombine.high %v6250_v41, %v6254_v43  ;;  %v6263_v62 = vld [vmem:[#allocation10] sm:$0xff]  ;;  %v6267_v51 = vld [vmem:[#allocation10 + $0x8] sm:$0xff] }
 0x49d   :  { %v2562_v48 = vrot.slane %v6263_v62, %v2561_v47  ;;  %v2566_v2 = vrot.slane %v6267_v51, %v2561_v47 }
 0x49f   :  { %4291 = vmatpush1.bf16.msra.mxu1 %v5241_v49  ;;  %4331 = vmatpush1.bf16.msra.mxu0 %v5243_v50  ;;  %v2569_v49 = vsub.s32 6, %v6146_v4  ;;  %v2592_v50 = vrot.slane %v2562_v48, %v2561_v47 }
 0x4a0   :  { %4292 = vmatprep.subr.bf16.mxu1 %v5250_v52  ;;  %4332 = vmatprep.subr.bf16.mxu0 %v5252_v59 }
 0x4a1   :  { %v2570_v40 = vrot.slane %v6267_v51, %v2569_v49  ;;  %v2582_v14 = vrot.slane %v6274_v35, %v2569_v49 }
 0x4a3   :  { %4293 = vmatpush1.bf16.msra.mxu1 %v5249_v54  ;;  %4333 = vmatpush1.bf16.msra.mxu0 %v5251_v58  ;;  %v2600_v54 = vrot.slane %v2570_v40, %v2561_v47  ;;  %v2612_v21 = vrot.slane %v2582_v14, %v2561_v47 }
 0x4a4   :  { %4294 = vmatprep.subr.bf16.mxu1 %v5258_v1  ;;  %4334 = vmatprep.subr.bf16.mxu0 %v5260_v6 }
 0x4a7   :  { %4295 = vmatpush1.bf16.msra.mxu1 %v5257_v3  ;;  %4335 = vmatpush1.bf16.msra.mxu0 %v5259_v5  ;;  %v2596_v5 = vrot.slane %v2566_v2, %v2561_v47 }
 0x4a8   :  { %4296 = vmatprep.subr.bf16.mxu1 %v5266_v61  ;;  %4336 = vmatprep.subr.bf16.mxu0 %v5268_v28 }
 0x4ab   :  { %4297 = vmatpush1.bf16.msra.mxu1 %v5265_v24  ;;  %4337 = vmatpush1.bf16.msra.mxu0 %v5267_v25 }
 0x4ac   :  { %4298 = vmatprep.subr.bf16.mxu1 %v5274_v12  ;;  %4338 = vmatprep.subr.bf16.mxu0 %v5276_v15 }
 0x4af   :  { %4299 = vmatpush1.bf16.msra.mxu1 %v5273_v11  ;;  %4339 = vmatpush1.bf16.msra.mxu0 %v5275_v17  ;;  %v6271_v11 = vld [vmem:[#allocation10 + $0x10] sm:$0xff] }
 0x4b0   :  { %4300 = vmatprep.subr.bf16.mxu1 %v5282_v18  ;;  %4340 = vmatprep.subr.bf16.mxu0 %v5284_v56  ;;  %v2574_v12 = vrot.slane %v6271_v11, %v2561_v47 }
 0x4b2   :  { %v2604_v13 = vrot.slane %v2574_v12, %v2561_v47 }
 0x4b3   :  { %4301 = vmatpush1.bf16.msra.mxu1 %v5281_v33  ;;  %4341 = vmatpush1.bf16.msra.mxu0 %v5283_v34  ;;  %v2578_v34 = vrot.slane %v6274_v35, %v2561_v47 }
 0x4b4   :  { %4302 = vmatprep.subr.bf16.mxu1 %v5290_v36  ;;  %4342 = vmatprep.subr.bf16.mxu0 %v5292_v20 }
 0x4b5   :  { %v2608_v20 = vrot.slane %v2578_v34, %v2561_v47  ;;  %v3461_v47 = vld [vmem:[#allocation8 + $0x858] sm:$0xff] }
 0x4b6   :  { %v3505_v34 = vld [vmem:[#allocation8 + $0x9b8] sm:$0xff] }
 0x4b7   :  { %4303 = vmatpush1.bf16.msra.mxu1 %v5289_v37  ;;  %4343 = vmatpush1.bf16.msra.mxu0 %v5291_v30 }
 0x4b8   :  { %4353 = vmatprep.subr.bf16.mxu1 %v5174_v42  ;;  %4393 = vmatprep.subr.bf16.mxu0 %v5176_v46 }
 0x50d   :  { %v3287_v55 = vpop.f32.mrb[24].mxu1  ;;  %v3327_v60 = vpop.f32.mrb[28].mxu0 }
 0x50e   :  { %v3288_v52 = vadd.f32 %v3287_v55, %v2592_v50  ;;  %v3289_v53 = vpop.f32.mrb[25].mxu1  ;;  %v3329_v58 = vpop.f32.mrb[29].mxu0  ;;  %v3328_v0 = vadd.f32 %v3327_v60, %v2596_v5  ;;  %v3469_v5 = vld [vmem:[#allocation8 + $0x898] sm:$0xff] }
 0x50f   :  { %v3290_v59 = vpop.f32.mrb[26].mxu1  ;;  %v3331_v26 = vpop.f32.mrb[30].mxu0  ;;  %v3330_v3 = vadd.f32 %v3329_v58, %v2600_v54  ;;  %v3460_v54 = vld [vmem:[#allocation8 + $0x850] sm:$0xff] }
 0x510   :  { %v5165_v63 = vmul.f32 -1.442695, %v3288_v52  ;;  %v3291_v57 = vpop.f32.mrb[27].mxu1  ;;  %v3332_v1 = vpop.f32.mrb[31].mxu0  ;;  %v3464_v58 = vld [vmem:[#allocation8 + $0x870] sm:$0xff]  ;;  %v3465_v59 = vld [vmem:[#allocation8 + $0x878] sm:$0xff] }
 0x511   :  { %v5166_v6 = vmul.f32 -1.442695, %v3330_v3  ;;  %v3468_v57 = vld [vmem:[#allocation8 + $0x890] sm:$0xff]  ;;  %v5182_v1 = vcombine.high %v3460_v54, %v3464_v58  ;;  %v5184_v2 = vcombine.high %v3461_v47, %v3465_v59 }
 0x512   :  { %5597 = vpow2.f32 %v5165_v63  ;;  %v3472_v3 = vld [vmem:[#allocation8 + $0x8b0] sm:$0xff] }
 0x513   :  { %5599 = vpow2.f32 %v5166_v6  ;;  %v3473_v6 = vld [vmem:[#allocation8 + $0x8b8] sm:$0xff]  ;;  %v5189_v38 = vcombine.low %v3468_v57, %v3472_v3 }
 0x514   :  { %5601 = vtanh.f32 %v3328_v0  ;;  %v5181_v0 = vcombine.low %v3460_v54, %v3464_v58  ;;  %v5191_v39 = vcombine.low %v3469_v5, %v3473_v6  ;;  %v3517_v54 = vld [vmem:[#allocation8 + $0xa18] sm:$0xff] }
 0x515   :  { %v3521_v58 = vld [vmem:[#allocation8 + $0xa38] sm:$0xff] }
 0x51c   :  { %v5598_v7 = vpop.eup %5597 }
 0x51d   :  { %v3418_v8 = vadd.f32 1.0, %v5598_v7  ;;  %v5600_v61 = vpop.eup %5599  ;;  %v5183_v7 = vcombine.low %v3461_v47, %v3465_v59 }
 0x51e   :  { %v3425_v23 = vadd.f32 1.0, %v5600_v61  ;;  %v5602_v24 = vpop.eup %5601  ;;  %v5192_v61 = vcombine.high %v3469_v5, %v3473_v6  ;;  %v3529_v5 = vld [vmem:[#allocation8 + $0xa78] sm:$0xff] }
 0x51f   :  { %5603 = vrcp.f32 %v3418_v8  ;;  %v5190_v8 = vcombine.high %v3468_v57, %v3472_v3  ;;  %v5240_v57 = vcombine.high %v3517_v54, %v3521_v58  ;;  %v3525_v3 = vld [vmem:[#allocation8 + $0xa58] sm:$0xff] }
 0x520   :  { %5605 = vrcp.f32 %v3425_v23  ;;  %v3476_v23 = vld [vmem:[#allocation8 + $0x8d0] sm:$0xff] }
 0x529   :  { %v5604_v25 = vpop.eup %5603 }
 0x52a   :  { %v3428_v28 = vmul.f32 %v5604_v25, %v5602_v24  ;;  %v5606_v29 = vpop.eup %5605  ;;  %v3480_v24 = vld [vmem:[#allocation8 + $0x8f0] sm:$0xff]  ;;  %v3477_v25 = vld [vmem:[#allocation8 + $0x8d8] sm:$0xff] }
 0x52b   :  { %v5198_v41 = vcombine.high %v3476_v23, %v3480_v24 }
 0x52c   :  { %5607 = vtanh.f32 %v3428_v28  ;;  %v3481_v28 = vld [vmem:[#allocation8 + $0x8f8] sm:$0xff] }
 0x52d   :  { %v5200_v43 = vcombine.high %v3477_v25, %v3481_v28  ;;  %v5199_v12 = vcombine.low %v3477_v25, %v3481_v28  ;;  %v3537_v25 = vld [vmem:[#allocation8 + $0xab8] sm:$0xff] }
 0x536   :  { %v5608_v9 = vpop.eup %5607 }
 0x537   :  { %v3430_v10 = vmul.f32 %v5608_v9, %v5606_v29  ;;  %v3485_v29 = vld [vmem:[#allocation8 + $0x918] sm:$0xff] }
 0x538   :  { %v3489_v9 = vld [vmem:[#allocation8 + $0x938] sm:$0xff] }
 0x539   :  { %v6278_v63 = vpack.c.bf16 %v3430_v10, %v3430_v10  ;;  %v5197_v10 = vcombine.low %v3476_v23, %v3480_v24  ;;  %v5208_v14 = vcombine.high %v3485_v29, %v3489_v9  ;;  %v3536_v23 = vld [vmem:[#allocation8 + $0xab0] sm:$0xff]  ;;  %v3533_v24 = vld [vmem:[#allocation8 + $0xa98] sm:$0xff] }
 0x54d   :  { %v3368_v17 = vpop.f32.mrb[28].mxu1  ;;  %v3408_v15 = vpop.f32.mrb[32].mxu0 }
 0x54e   :  { %v3369_v18 = vadd.f32 %v3368_v17, %v2604_v13  ;;  %v3370_v19 = vpop.f32.mrb[29].mxu1  ;;  %v3410_v22 = vpop.f32.mrb[33].mxu0  ;;  %v3409_v30 = vadd.f32 %v3408_v15, %v2608_v20  ;;  %v3492_v17 = vld [vmem:[#allocation8 + $0x950] sm:$0xff] }
 0x54f   :  { %v3371_v56 = vpop.f32.mrb[30].mxu1  ;;  %v3412_v27 = vpop.f32.mrb[34].mxu0  ;;  %v3411_v36 = vadd.f32 %v3410_v22, %v2612_v21  ;;  %v3496_v15 = vld [vmem:[#allocation8 + $0x970] sm:$0xff]  ;;  %v3497_v19 = vld [vmem:[#allocation8 + $0x978] sm:$0xff]  ;;  %v5207_v22 = vcombine.low %v3485_v29, %v3489_v9 }
 0x550   :  { %v5167_v31 = vmul.f32 -1.442695, %v3369_v18  ;;  %v3372_v32 = vpop.f32.mrb[31].mxu1  ;;  %v3413_v33 = vpop.f32.mrb[35].mxu0  ;;  %v3493_v18 = vld [vmem:[#allocation8 + $0x958] sm:$0xff]  ;;  %v5214_v56 = vcombine.high %v3492_v17, %v3496_v15 }
 0x551   :  { %v5168_v37 = vmul.f32 -1.442695, %v3411_v36  ;;  %v5216_v27 = vcombine.high %v3493_v18, %v3497_v19  ;;  %v3504_v32 = vld [vmem:[#allocation8 + $0x9b0] sm:$0xff]  ;;  %v3501_v33 = vld [vmem:[#allocation8 + $0x998] sm:$0xff]  ;;  %v5213_v36 = vcombine.low %v3492_v17, %v3496_v15  ;;  %v5215_v20 = vcombine.low %v3493_v18, %v3497_v19 }
 0x552   :  { %5609 = vpow2.f32 %v5167_v31  ;;  %v3500_v31 = vld [vmem:[#allocation8 + $0x990] sm:$0xff]  ;;  %v3545_v29 = vld [vmem:[#allocation8 + $0xaf8] sm:$0xff] }
 0x553   :  { %5611 = vpow2.f32 %v5168_v37  ;;  %v5222_v37 = vcombine.high %v3500_v31, %v3504_v32  ;;  %v3552_v17 = vld [vmem:[#allocation8 + $0xb30] sm:$0xff]  ;;  %v3549_v15 = vld [vmem:[#allocation8 + $0xb18] sm:$0xff] }
 0x554   :  { %5613 = vtanh.f32 %v3409_v30  ;;  %v5224_v30 = vcombine.high %v3501_v33, %v3505_v34  ;;  %v3553_v18 = vld [vmem:[#allocation8 + $0xb38] sm:$0xff] }
 0x55c   :  { %v5610_v42 = vpop.eup %5609 }
 0x55d   :  { %v3434_v46 = vadd.f32 1.0, %v5610_v42  ;;  %v5612_v48 = vpop.eup %5611  ;;  %v3508_v42 = vld [vmem:[#allocation8 + $0x9d0] sm:$0xff] }
 0x55e   :  { %v3441_v49 = vadd.f32 1.0, %v5612_v48  ;;  %v5614_v50 = vpop.eup %5613  ;;  %v3509_v48 = vld [vmem:[#allocation8 + $0x9d8] sm:$0xff] }
 0x55f   :  { %5615 = vrcp.f32 %v3434_v46  ;;  %v3512_v46 = vld [vmem:[#allocation8 + $0x9f0] sm:$0xff] }
 0x560   :  { %5617 = vrcp.f32 %v3441_v49  ;;  %v3513_v49 = vld [vmem:[#allocation8 + $0x9f8] sm:$0xff]  ;;  %v5229_v47 = vcombine.low %v3508_v42, %v3512_v46 }
 0x561   :  { %v5231_v59 = vcombine.low %v3509_v48, %v3513_v49 }
 0x569   :  { %v5616_v40 = vpop.eup %5615 }
 0x56a   :  { %v3444_v55 = vmul.f32 %v5616_v40, %v5614_v50  ;;  %v5618_v60 = vpop.eup %5617  ;;  %v5221_v50 = vcombine.low %v3500_v31, %v3504_v32  ;;  %v5223_v40 = vcombine.low %v3501_v33, %v3505_v34  ;;  %v3560_v31 = vld [vmem:[#allocation8 + $0xb70] sm:$0xff]  ;;  %v3557_v32 = vld [vmem:[#allocation8 + $0xb58] sm:$0xff] }
 0x56b   :  { %v3561_v33 = vld [vmem:[#allocation8 + $0xb78] sm:$0xff] }
 0x56c   :  { %5619 = vtanh.f32 %v3444_v55  ;;  %v5230_v55 = vcombine.high %v3508_v42, %v3512_v46  ;;  %v3568_v42 = vld [vmem:[#allocation8 + $0xbb0] sm:$0xff]  ;;  %v3565_v46 = vld [vmem:[#allocation8 + $0xb98] sm:$0xff] }
 0x576   :  { %v5620_v52 = vpop.eup %5619 }
 0x577   :  { %v3446_v53 = vmul.f32 %v5620_v52, %v5618_v60  ;;  %v5232_v60 = vcombine.high %v3509_v48, %v3513_v49  ;;  %v3516_v52 = vld [vmem:[#allocation8 + $0xa10] sm:$0xff]  ;;  %v3569_v48 = vld [vmem:[#allocation8 + $0xbb8] sm:$0xff] }
 0x579   :  { %v3448_v26 = vpack.c.bf16 %v3446_v53, %v3446_v53  ;;  %v3520_v53 = vld [vmem:[#allocation8 + $0xa30] sm:$0xff] }
 0x57a   :  { %v5237_v6 = vcombine.low %v3516_v52, %v3520_v53 }
 0x57b   :  { %4304 = vmatprep.mubr.bf16.mxu1 %v3448_v26  ;;  %4344 = vmatprep.mubr.bf16.mxu0 %v3448_v26 }
 0x57c   :  { %4305 = vmatmul.mubr.bf16.vlgmr.msra.gmra.mrb[32].mxu1 %v6278_v63  ;;  %4345 = vmatmul.mubr.bf16.vlgmr.msra.gmra.mrb[36].mxu0 %v6278_v63 }
 0x57d   :  { %4354 = vmatpush1.bf16.msra.mxu1 %v5173_v44  ;;  %4394 = vmatpush1.bf16.msra.mxu0 %v5175_v45  ;;  %v3484_v44 = vld [vmem:[#allocation8 + $0x910] sm:$0xff] }
 0x57e   :  { %4385 = vmatprep.mubr.bf16.mxu1 %v3448_v26  ;;  %4425 = vmatprep.mubr.bf16.mxu0 %v3448_v26  ;;  %v3488_v45 = vld [vmem:[#allocation8 + $0x930] sm:$0xff]  ;;  %v5238_v26 = vcombine.high %v3516_v52, %v3520_v53  ;;  %v3573_v53 = vld [vmem:[#allocation8 + $0xbd8] sm:$0xff] }
 0x57f   :  { %4355 = vmatprep.subr.bf16.mxu1 %v5182_v1  ;;  %4395 = vmatprep.subr.bf16.mxu0 %v5184_v2  ;;  %v5206_v13 = vcombine.high %v3484_v44, %v3488_v45  ;;  %v5205_v21 = vcombine.low %v3484_v44, %v3488_v45  ;;  %v3524_v1 = vld [vmem:[#allocation8 + $0xa50] sm:$0xff]  ;;  %v3541_v45 = vld [vmem:[#allocation8 + $0xad8] sm:$0xff] }
 0x580   :  { %v3528_v2 = vld [vmem:[#allocation8 + $0xa70] sm:$0xff] }
 0x581   :  { %4356 = vmatpush1.bf16.msra.mxu1 %v5181_v0  ;;  %4396 = vmatpush1.bf16.msra.mxu0 %v5183_v7  ;;  %v5239_v0 = vcombine.low %v3517_v54, %v3521_v58  ;;  %v5246_v7 = vcombine.high %v3524_v1, %v3528_v2  ;;  %v5245_v28 = vcombine.low %v3524_v1, %v3528_v2  ;;  %v3544_v44 = vld [vmem:[#allocation8 + $0xaf0] sm:$0xff]  ;;  %v3577_v54 = vld [vmem:[#allocation8 + $0xbf8] sm:$0xff]  ;;  %v5525_v2 = vld [vmem:[#allocation11 + $0x40] sm:$0xff]  }
 0x582   :  { %4357 = vmatprep.subr.bf16.mxu1 %v5190_v8  ;;  %4397 = vmatprep.subr.bf16.mxu0 %v5192_v61  ;;  %v5248_v8 = vcombine.high %v3525_v3, %v3529_v5  ;;  %v3532_v61 = vld [vmem:[#allocation8 + $0xa90] sm:$0xff]  ;;  %v5295_v1 = vcombine.low %v3573_v53, %v3577_v54 }
 0x583   :  { %v5253_v9 = vcombine.low %v3532_v61, %v3536_v23  ;;  %v3576_v52 = vld [vmem:[#allocation8 + $0xbf0] sm:$0xff] }
 0x585   :  { %4358 = vmatpush1.bf16.msra.mxu1 %v5189_v38  ;;  %4398 = vmatpush1.bf16.msra.mxu0 %v5191_v39  ;;  %v5247_v38 = vcombine.low %v3525_v3, %v3529_v5  ;;  %v5254_v39 = vcombine.high %v3532_v61, %v3536_v23  ;;  %v5526_v3 = vld [vmem:[#allocation11] sm:$0xff]   ;;  %v5527_v5 = vld [vmem:[#allocation11 + $0x48] sm:$0xff]   ;;  %v5532_v61 = vld [vmem:[#allocation11 + $0x18] sm:$0xff]  }
 0x586   :  { %4359 = vmatprep.subr.bf16.mxu1 %v5198_v41  ;;  %4399 = vmatprep.subr.bf16.mxu0 %v5200_v43  ;;  %v5256_v41 = vcombine.high %v3533_v24, %v3537_v25  ;;  %v3540_v43 = vld [vmem:[#allocation8 + $0xad0] sm:$0xff]  ;;  %v5533_v23 = vld [vmem:[#allocation11 + $0x60] sm:$0xff]  }
 0x587   :  { %v5261_v19 = vcombine.low %v3540_v43, %v3544_v44 }
 0x589   :  { %4360 = vmatpush1.bf16.msra.mxu1 %v5197_v10  ;;  %4400 = vmatpush1.bf16.msra.mxu0 %v5199_v12  ;;  %v5255_v10 = vcombine.low %v3533_v24, %v3537_v25  ;;  %v5262_v12 = vcombine.high %v3540_v43, %v3544_v44  ;;  %v5534_v24 = vld [vmem:[#allocation11 + $0x20] sm:$0xff]   ;;  %v5536_v25 = vld [vmem:[#allocation11 + $0x28] sm:$0xff]  }
 0x58a   :  { %4361 = vmatprep.subr.bf16.mxu1 %v5206_v13  ;;  %4401 = vmatprep.subr.bf16.mxu0 %v5208_v14  ;;  %v5264_v13 = vcombine.high %v3541_v45, %v3545_v29  ;;  %v3548_v14 = vld [vmem:[#allocation8 + $0xb10] sm:$0xff]  ;;  %v5541_v43 = vld [vmem:[#allocation14] sm:$0xff]  }
 0x58b   :  { %v5269_v34 = vcombine.low %v3548_v14, %v3552_v17  ;;  %v5542_v44 = vld [vmem:[#allocation14 + $0x8] sm:$0xff]  }
 0x58d   :  { %4362 = vmatpush1.bf16.msra.mxu1 %v5205_v21  ;;  %4402 = vmatpush1.bf16.msra.mxu0 %v5207_v22  ;;  %v5263_v21 = vcombine.low %v3541_v45, %v3545_v29  ;;  %v5270_v22 = vcombine.high %v3548_v14, %v3552_v17  ;;  %v6293_v45 = vsub.s32 3, %v6146_v4  ;;  %v5543_v29 = vld [vmem:[#allocation14 + $0x10] sm:$0xff]   ;;  %v5545_v17 = vld [vmem:[#allocation14 + $0x20] sm:$0xff]  }
 0x58e   :  { %4363 = vmatprep.subr.bf16.mxu1 %v5214_v56  ;;  %4403 = vmatprep.subr.bf16.mxu0 %v5216_v27  ;;  %v5272_v56 = vcombine.high %v3549_v15, %v3553_v18  ;;  %v3556_v27 = vld [vmem:[#allocation8 + $0xb50] sm:$0xff] }
 0x58f   :  { %v5277_v49 = vcombine.low %v3556_v27, %v3560_v31 }
 0x591   :  { %4364 = vmatpush1.bf16.msra.mxu1 %v5213_v36  ;;  %4404 = vmatpush1.bf16.msra.mxu0 %v5215_v20  ;;  %v5271_v36 = vcombine.low %v3549_v15, %v3553_v18  ;;  %v5278_v20 = vcombine.high %v3556_v27, %v3560_v31 }
 0x592   :  { %4365 = vmatprep.subr.bf16.mxu1 %v5222_v37  ;;  %4405 = vmatprep.subr.bf16.mxu0 %v5224_v30  ;;  %v5280_v37 = vcombine.high %v3557_v32, %v3561_v33  ;;  %v3564_v30 = vld [vmem:[#allocation8 + $0xb90] sm:$0xff] }
 0x593   :  { %v5285_v58 = vcombine.low %v3564_v30, %v3568_v42 }
 0x595   :  { %4366 = vmatpush1.bf16.msra.mxu1 %v5221_v50  ;;  %4406 = vmatpush1.bf16.msra.mxu0 %v5223_v40  ;;  %v5279_v50 = vcombine.low %v3557_v32, %v3561_v33  ;;  %v5286_v40 = vcombine.high %v3564_v30, %v3568_v42  ;;  %v3585_v33 = vrot.slane %v6267_v51, %v6293_v45 }
 0x596   :  { %4367 = vmatprep.subr.bf16.mxu1 %v5230_v55  ;;  %4407 = vmatprep.subr.bf16.mxu0 %v5232_v60  ;;  %v5288_v55 = vcombine.high %v3565_v46, %v3569_v48  ;;  %v3572_v60 = vld [vmem:[#allocation8 + $0xbd0] sm:$0xff] }
 0x599   :  { %4368 = vmatpush1.bf16.msra.mxu1 %v5229_v47  ;;  %4408 = vmatpush1.bf16.msra.mxu0 %v5231_v59  ;;  %v5287_v47 = vcombine.low %v3565_v46, %v3569_v48  ;;  %v5294_v59 = vcombine.high %v3572_v60, %v3576_v52 }
 0x59a   :  { %4369 = vmatprep.subr.bf16.mxu1 %v5238_v26  ;;  %4409 = vmatprep.subr.bf16.mxu0 %v5240_v57  ;;  %v5296_v26 = vcombine.high %v3573_v53, %v3577_v54  ;;  %v5293_v57 = vcombine.low %v3572_v60, %v3576_v52  ;;  %v3593_v52 = vrot.slane %v6271_v11, %v6293_v45 }
 0x59b   :  { %v3597_v11 = vrot.slane %v6274_v35, %v6293_v45 }
 0x59c   :  { %v3623_v53 = vrot.slane %v3593_v52, %v6293_v45 }
 0x59d   :  { %4370 = vmatpush1.bf16.msra.mxu1 %v5237_v6  ;;  %4410 = vmatpush1.bf16.msra.mxu0 %v5239_v0  ;;  %v5528_v6 = vld [vmem:[#allocation11 + $0x8] sm:$0xff]   ;;  %v5529_v0 = vld [vmem:[#allocation11 + $0x50] sm:$0xff]  }
 0x59e   :  { %4371 = vmatprep.subr.bf16.mxu1 %v5246_v7  ;;  %4411 = vmatprep.subr.bf16.mxu0 %v5248_v8  ;;  %v5530_v7 = vld [vmem:[#allocation11 + $0x10] sm:$0xff]   ;;  %v5531_v8 = vld [vmem:[#allocation11 + $0x58] sm:$0xff]  }
 0x5a1   :  { %4372 = vmatpush1.bf16.msra.mxu1 %v5245_v28  ;;  %4412 = vmatpush1.bf16.msra.mxu0 %v5247_v38  ;;  %v5537_v28 = vld [vmem:[#allocation11 + $0x70] sm:$0xff]  }
 0x5a2   :  { %4373 = vmatprep.subr.bf16.mxu1 %v5254_v39  ;;  %4413 = vmatprep.subr.bf16.mxu0 %v5256_v41  ;;  %v5538_v38 = vld [vmem:[#allocation11 + $0x30] sm:$0xff]   ;;  %v5539_v39 = vld [vmem:[#allocation11 + $0x78] sm:$0xff]  }
 0x5a3   :  { %v5540_v41 = vld [vmem:[#allocation11 + $0x38] sm:$0xff]  }
 0x5a5   :  { %4374 = vmatpush1.bf16.msra.mxu1 %v5253_v9  ;;  %4414 = vmatpush1.bf16.msra.mxu0 %v5255_v10  ;;  %v3581_v9 = vrot.slane %v6263_v62, %v6293_v45  ;;  %v3588_v10 = vsub.s32 7, %v6146_v4 }
 0x5a6   :  { %4375 = vmatprep.subr.bf16.mxu1 %v5262_v12  ;;  %4415 = vmatprep.subr.bf16.mxu0 %v5264_v13  ;;  %v5544_v12 = vld [vmem:[#allocation14 + $0x18] sm:$0xff]  }
 0x5a7   :  { %v3611_v13 = vrot.slane %v3581_v9, %v6293_v45  ;;  %v3589_v14 = vrot.slane %v6267_v51, %v3588_v10  ;;  %v3601_v54 = vrot.slane %v6274_v35, %v3588_v10  ;;  %v5547_v10 = vld [vmem:[#allocation14 + $0x30] sm:$0xff]  }
 0x5a9   :  { %4376 = vmatpush1.bf16.msra.mxu1 %v5261_v19  ;;  %4416 = vmatpush1.bf16.msra.mxu0 %v5263_v21  ;;  %v3619_v62 = vrot.slane %v3589_v14, %v6293_v45  ;;  %v5301_v14 = vld [vmem:[#allocation13] ss:$0 sm:$0xff] }
 0x5aa   :  { %4377 = vmatprep.subr.bf16.mxu1 %v5270_v22  ;;  %4417 = vmatprep.subr.bf16.mxu0 %v5272_v56 }
 0x5ad   :  { %4378 = vmatpush1.bf16.msra.mxu1 %v5269_v34  ;;  %4418 = vmatpush1.bf16.msra.mxu0 %v5271_v36  ;;  %v3615_v36 = vrot.slane %v3585_v33, %v6293_v45 }
 0x5ae   :  { %4379 = vmatprep.subr.bf16.mxu1 %v5278_v20  ;;  %4419 = vmatprep.subr.bf16.mxu0 %v5280_v37 }
 0x5b1   :  { %4380 = vmatpush1.bf16.msra.mxu1 %v5277_v49  ;;  %4420 = vmatpush1.bf16.msra.mxu0 %v5279_v50 }
 0x5b2   :  { %4381 = vmatprep.subr.bf16.mxu1 %v5286_v40  ;;  %4421 = vmatprep.subr.bf16.mxu0 %v5288_v55 }
 0x5b5   :  { %4382 = vmatpush1.bf16.msra.mxu1 %v5285_v58  ;;  %4422 = vmatpush1.bf16.msra.mxu0 %v5287_v47 }
 0x5b6   :  { %4383 = vmatprep.subr.bf16.mxu1 %v5294_v59  ;;  %4423 = vmatprep.subr.bf16.mxu0 %v5296_v26 }
 0x5b9   :  { %4384 = vmatpush1.bf16.msra.mxu1 %v5293_v57  ;;  %4424 = vmatpush1.bf16.msra.mxu0 %v5295_v1  ;;  %v3631_v57 = vrot.slane %v3601_v54, %v6293_v45 }
 0x5ba   :  { %5444 = vmatprep.subr.bf16.mxu0 %v5899_v16  ;;  %5393 = vmatprep.subr.bf16.mxu1 %v5525_v2 }
 0x5bc   :  { %4386 = vmatmul.mubr.bf16.vlgmr.msra.gmra.mrb[36].mxu1 %v6278_v63  ;;  %4426 = vmatmul.mubr.bf16.vlgmr.msra.gmra.mrb[40].mxu0 %v6278_v63  ;;  %v5535_v63 = vld [vmem:[#allocation11 + $0x68] sm:$0xff]  }
 0x5bd   :  { %5394 = vmatpush3.bf16.msra.mxu1 %v5526_v3  ;;  %5445 = vmatpush3.bf16.msra.mxu0 %v5541_v43 }
 0x5be   :  { %5395 = vmatprep.subr.bf16.mxu1 %v5527_v5  ;;  %5446 = vmatprep.subr.bf16.mxu0 %v5899_v16 }
 0x5bf   :  { %5460 = vmatprep.mubr.msk.bf16.mxu0 %vm5900_vm14, %v5899_v16 }
 0x5c1   :  { %5396 = vmatpush3.bf16.msra.mxu1 %v5528_v6  ;;  %5447 = vmatpush3.bf16.msra.mxu0 %v5542_v44 }
 0x5c2   :  { %5397 = vmatprep.subr.bf16.mxu1 %v5529_v0  ;;  %5448 = vmatprep.subr.bf16.mxu0 %v5899_v16 }
 0x5c5   :  { %5398 = vmatpush3.bf16.msra.mxu1 %v5530_v7  ;;  %5449 = vmatpush3.bf16.msra.mxu0 %v5543_v29 }
 0x5c6   :  { %5399 = vmatprep.subr.bf16.mxu1 %v5531_v8  ;;  %5450 = vmatprep.subr.bf16.mxu0 %v5899_v16  ;;  %v3627_v8 = vrot.slane %v3597_v11, %v6293_v45  ;;  %v5546_v45 = vld [vmem:[#allocation14 + $0x28] sm:$0xff]  }
 0x5c9   :  { %5400 = vmatpush3.bf16.msra.mxu1 %v5532_v61  ;;  %5451 = vmatpush3.bf16.msra.mxu0 %v5544_v12  ;;  %v5548_v12 = vld [vmem:[#allocation14 + $0x38] sm:$0xff]  }
 0x5ca   :  { %5401 = vmatprep.subr.bf16.mxu1 %v5533_v23  ;;  %5452 = vmatprep.subr.bf16.mxu0 %v5899_v16 }
 0x5cd   :  { %5402 = vmatpush3.bf16.msra.mxu1 %v5534_v24  ;;  %5453 = vmatpush3.bf16.msra.mxu0 %v5545_v17 }
 0x5ce   :  { %5403 = vmatprep.subr.bf16.mxu1 %v5535_v63  ;;  %5454 = vmatprep.subr.bf16.mxu0 %v5899_v16 }
 0x5d1   :  { %5404 = vmatpush3.bf16.msra.mxu1 %v5536_v25  ;;  %5455 = vmatpush3.bf16.msra.mxu0 %v5546_v45 }
 0x5d2   :  { %5405 = vmatprep.subr.bf16.mxu1 %v5537_v28  ;;  %5456 = vmatprep.subr.bf16.mxu0 %v5899_v16 }
 0x5d5   :  { %5406 = vmatpush3.bf16.msra.mxu1 %v5538_v38  ;;  %5457 = vmatpush3.bf16.msra.mxu0 %v5547_v10 }
 0x5d6   :  { %5407 = vmatprep.subr.bf16.mxu1 %v5539_v39  ;;  %5458 = vmatprep.subr.bf16.mxu0 %v5899_v16 }
 0x5d9   :  { %5408 = vmatpush3.bf16.msra.mxu1 %v5540_v41  ;;  %5459 = vmatpush3.bf16.msra.mxu0 %v5548_v12 }
 0x64f   :  { %v4306_v15 = vpop.f32.mrb[32].mxu1  ;;  %v4346_v18 = vpop.f32.mrb[36].mxu0 }
 0x650   :  { %v4307_v19 = vadd.f32 %v4306_v15, %v3611_v13  ;;  %v4308_v21 = vpop.f32.mrb[33].mxu1  ;;  %v4348_v22 = vpop.f32.mrb[37].mxu0  ;;  %v4347_v37 = vadd.f32 %v4346_v18, %v3615_v36 }
 0x651   :  { %v4309_v4 = vpop.f32.mrb[34].mxu1  ;;  %v4350_v56 = vpop.f32.mrb[38].mxu0  ;;  %v4349_v34 = vadd.f32 %v4348_v22, %v3619_v62 }
 0x652   :  { %v5297_v27 = vmul.f32 -1.442695, %v4307_v19  ;;  %v4310_v31 = vpop.f32.mrb[35].mxu1  ;;  %v4351_v32 = vpop.f32.mrb[39].mxu0  ;;  %v5318_v56 = vld [vmem:[#allocation16] ss:$0 sm:$0xff] }
 0x653   :  { %v5298_v20 = vmul.f32 -1.442695, %v4349_v34 }
 0x654   :  { %5621 = vpow2.f32 %v5297_v27 }
 0x655   :  { %5623 = vpow2.f32 %v5298_v20 }
 0x656   :  { %5625 = vtanh.f32 %v4347_v37 }
 0x65e   :  { %v5622_v30 = vpop.eup %5621 }
 0x65f   :  { %v4437_v42 = vadd.f32 1.0, %v5622_v30  ;;  %v5624_v46 = vpop.eup %5623 }
 0x660   :  { %v4444_v48 = vadd.f32 1.0, %v5624_v46  ;;  %v5626_v49 = vpop.eup %5625 }
 0x661   :  { %5627 = vrcp.f32 %v4437_v42 }
 0x662   :  { %5629 = vrcp.f32 %v4444_v48 }
 0x66b   :  { %v5628_v50 = vpop.eup %5627 }
 0x66c   :  { %v4447_v40 = vmul.f32 %v5628_v50, %v5626_v49  ;;  %v5630_v55 = vpop.eup %5629 }
 0x66e   :  { %5631 = vtanh.f32 %v4447_v40 }
 0x678   :  { %v5632_v60 = vpop.eup %5631 }
 0x679   :  { %v4449_v51 = vmul.f32 %v5632_v60, %v5630_v55 }
 0x67b   :  { %v4466_v9 = vpack.c.bf16 %v4449_v51, %v4449_v51 }
 0x68f   :  { %v4387_v58 = vpop.f32.mrb[36].mxu1  ;;  %v4427_v47 = vpop.f32.mrb[40].mxu0 }
 0x690   :  { %v4388_v59 = vadd.f32 %v4387_v58, %v3623_v53  ;;  %v4389_v26 = vpop.f32.mrb[37].mxu1  ;;  %v4429_v1 = vpop.f32.mrb[41].mxu0  ;;  %v4428_v23 = vadd.f32 %v4427_v47, %v3627_v8 }
 0x691   :  { %v4390_v2 = vpop.f32.mrb[38].mxu1  ;;  %v4431_v3 = vpop.f32.mrb[42].mxu0  ;;  %v4430_v7 = vadd.f32 %v4429_v1, %v3631_v57 }
 0x692   :  { %v5299_v5 = vmul.f32 -1.442695, %v4388_v59  ;;  %v4391_v6 = vpop.f32.mrb[39].mxu1  ;;  %v4432_v0 = vpop.f32.mrb[43].mxu0 }
 0x693   :  { %v5300_v61 = vmul.f32 -1.442695, %v4430_v7 }
 0x694   :  { %5633 = vpow2.f32 %v5299_v5 }
 0x695   :  { %5635 = vpow2.f32 %v5300_v61 }
 0x696   :  { %5637 = vtanh.f32 %v4428_v23 }
 0x69e   :  { %v5634_v24 = vpop.eup %5633 }
 0x69f   :  { %v4453_v63 = vadd.f32 1.0, %v5634_v24  ;;  %v5636_v25 = vpop.eup %5635 }
 0x6a0   :  { %v4460_v28 = vadd.f32 1.0, %v5636_v25  ;;  %v5638_v38 = vpop.eup %5637 }
 0x6a1   :  { %5639 = vrcp.f32 %v4453_v63 }
 0x6a2   :  { %5641 = vrcp.f32 %v4460_v28 }
 0x6ab   :  { %v5640_v39 = vpop.eup %5639 }
 0x6ac   :  { %v4463_v41 = vmul.f32 %v5640_v39, %v5638_v38  ;;  %v5642_v43 = vpop.eup %5641 }
 0x6ae   :  { %5643 = vtanh.f32 %v4463_v41 }
 0x6b8   :  { %v5644_v44 = vpop.eup %5643 }
 0x6b9   :  { %v4465_v35 = vmul.f32 %v5644_v44, %v5642_v43 }
 0x6bb   :  { %v4467_v29 = vpack.c.bf16 %v4465_v35, %v4465_v35 }
 0x6bd   :  { %4635 = vmatprep.mubr.bf16.mxu1 %v4467_v29 }
 0x6be   :  { %4636 = vmatmul.mubr.bf16.vlgmr.msra.gmra.mrb[40].mxu1 %v4466_v9 }
 0x791   :  { %v5409_v13 = vpop.f32.mrb[40].mxu1 }
 0x792   :  { %v5410_v17 = vpop.f32.mrb[41].mxu1 }
 0x793   :  { %v5411_v15 = vadd.f32 %v5410_v17, %v5409_v13  ;;  %v5412_v18 = vpop.f32.mrb[42].mxu1 }
 0x794   :  { %v5413_v19 = vpop.f32.mrb[43].mxu1 }
 0x795   :  { %v4638_v21 = vadd.f32 %v5411_v15, %v5301_v14 }
 0x797   :  { %vm4643_vm15 = vcmp.gt.f32.partialorder %v4638_v21, 0.0  ;;  %v4644_v62 = vmul.f32 0.1, %v4638_v21 }
 0x799   :  { %v4645_v22 = vsel %vm4643_vm15, %v4638_v21, %v4644_v62 }
 0x79a   :  { %v4646_v4 = vpack.c.bf16 %v4645_v22, %v4645_v22 }
 0x79c   :  { %5461 = vmatmul.mubr.bf16.vlgmr.msra.gmra.mrb[44].mxu0 %v4646_v4 }
 0x86f   :  { %v4752_v27 = vpop.f32.mrb[44].mxu0 }
 0x870   :  { %v4753_v31 = vadd.f32 %v5318_v56, %v4752_v27  ;;  %v5462_v32 = vpop.f32.mrb[45].mxu0 }
 0x871   :  { %v4755_v33 = vpop.f32.mrb[46].mxu0 }
 0x872   :  { %v5463_v34 = vpop.f32.mrb[47].mxu0  ;;  %v4759_v16 = vsel %vm4758_vm0, %v4753_v31, -inf }
 0x873   :  { %4760 = vmax.xlane.f32.xlu0 %v4759_v16 }
 0x900   :  { %v4761_v36 = vpop.xlane.xlu0 %4760 }
 0x901   :  { %v4762_v20 = vsub.f32 %v4753_v31, %v4761_v36 }
 0x903   :  { %v4763_v37 = vmul.f32 1.442695, %v4762_v20 }
 0x905   :  { %5645 = vpow2.f32 %v4763_v37 }
 0x90f   :  { %v5646_v30 = vpop.eup %5645 }
 0x910   :  { %v4765_v42 = vsel %vm4758_vm0, %v5646_v30, 0.0 }
 0x911   :  { %4766 = vadd.xlane.f32.xlu0 %v4765_v42 }
 0x99e   :  { %v4767_v46 = vpop.xlane.xlu0 %4766 }
 0x99f   :  { %5647 = vrcp.f32 %v4767_v46 }
 0x9a9   :  { %v5648_v48 = vpop.eup %5647 }
 0x9aa   :  { %v4769_v49 = vmul.f32 %v5648_v48, %v5646_v30 }
 0x9ac   :  { %4770 = vst [vmem:[#allocation17] sm:$0x3] %v4769_v49 }
 0x9ad   :  { %5862 = shalt.err (!%p5859_p6)
}
 0x9ae   :  { %s5863_s20 = scalar_lea.hbm %s6341_s10, 32 }
 0x9af   :  { %p5864_p7 = scmp.ne.s32.totalorder %s6341_s10, %s5863_s20  ;;  %p5867_p8 = scmp.lt.u32.totalorder %s5863_s20, %s6341_s10 }
 0x9b1   :  { %p5869_p9 = pnand %p5867_p8, %p5864_p7 }
 0x9b3   :  { %5872 = shalt.err (!%p5869_p9)
}
 0x9b4   :  { %4780 = dma.vmem_to_hbm [thread:$0]  %s4778_s21, 32, %s6341_s10, [#allocation4]  }
 0x9b5   :  { %5883 = dma.done.wait [#allocation4], 32  }
 0x9b6   :  { %5884 = vsyncadd [#allocation4], 4294967264 }
 0x9b7   :  { %4784 = vsyncpa [#allocation3], 1 }
 0x9b8   :  { %4785 = vsyncpa [#allocation6], 1 }
 0x9b9   :  { %4786 = vsyncpa [#allocation9], 1 }
 0x9ba   :  { %4787 = vsyncpa [#allocation12], 1 }
 0x9bb   :  { %4788 = vsyncpa [#allocation15], 1 }
 0x9bc   :  { %4789 = vsyncpa [#allocation4], 1 }

</bundles_post_ra>
